<compile_context>
chip_gen: v7x
topology: tpu7x:2x2x1
jax: 0.10.0
libtpu: 0.0.40
codegen_flags: <defaults>
</compile_context>

<pallas_src>
import functools
import math

import jax
import jax.numpy as jnp
from jax.experimental import pallas as pl
from jax.experimental.pallas import tpu as pltpu


# ---------------------------------------------------------------------------
# Helpers
# ---------------------------------------------------------------------------
def _cdiv(a, b):
    return -(-a // b)


def _layer_norm(x, gamma, beta, eps=1e-5):
    mean = jnp.mean(x, axis=-1, keepdims=True)
    var = jnp.mean(jnp.square(x - mean), axis=-1, keepdims=True)
    return (x - mean) * jax.lax.rsqrt(var + eps) * gamma + beta


def _vmem_budget_bytes():
    """VMEM budget used for tiling and CompilerParams.vmem_limit_bytes.

    v5e/v6e have 128 MiB VMEM per TensorCore, v7x only 64 MiB; keep ~25%
    headroom for compiler-internal scratch.  Falls back to 48 MiB (safe on
    every generation) if the trace-time hardware query is unavailable.
    """
    try:
        cap = int(pltpu.get_tpu_info().vmem_capacity_bytes)
    except Exception:
        cap = 64 * 1024 * 1024
    return min(cap * 3 // 4, 100 * 1024 * 1024)


def _choose_tile_t(t_out, kw, n_batch, f, vmem_budget):
    """Time-tile length (in time steps) for one fused block.

      * multiple of (kw - 1) so the halo operand's Blocked index is integral,
      * capped by the VMEM budget (~8 resident tile-sized buffers),
      * targets >= 2 grid steps so ("parallel",) can use both v7x TensorCores,
      * never degenerates to 1 (the wrapper pads T_out up to a tile multiple).
    """
    step = max(kw - 1, 1)
    per_row = n_batch * f * 4                       # f32 bytes per time step
    cap = max(step, vmem_budget // (8 * per_row))   # VMEM-derived ceiling
    cap = min(cap, 512)                             # per-step overhead amortized long before this
    half = _cdiv(t_out, 2)
    tile = min(cap, max(step, half))
    return max(step, (tile // step) * step)


# ---------------------------------------------------------------------------
# Fused kernel: TDSConv2dBlock + TDSFullyConnectedBlock for one time-tile.
# All activations are 2-D (rows = time * batch, lanes = num_features).
# ---------------------------------------------------------------------------
def _make_block_kernel(kw, tile_t, n_batch, f):
    m = tile_t * n_batch        # output rows per grid step
    halo = (kw - 1) * n_batch   # extra input rows needed by the temporal conv

    def kernel(xc_ref, xh_ref, wc_ref, bc_ref, g1_ref, be1_ref,
               w1_ref, b1_ref, w2_ref, b2_ref, g2_ref, be2_ref,
               o_ref, xw_ref, acc_ref):
        # Assemble the (tile + halo) input window once in VMEM scratch so every
        # conv tap is a cheap, statically-offset row slice (no lane-axis concat,
        # no kw-times-materialized im2col tensor).
        xw_ref[0:m, :] = xc_ref[...]
        xw_ref[m:m + halo, :] = xh_ref[...]

        # --- TDSConv2dBlock: grouped temporal conv as kw per-tap matmuls ------
        # The residual rows (inputs[-T_out:]) are exactly the last conv tap;
        # load them once and reuse for both the matmul and the residual add.
        residual = xw_ref[halo:halo + m, :]
        acc_ref[...] = jnp.dot(residual.astype(jnp.bfloat16), wc_ref[kw - 1],
                               preferred_element_type=jnp.float32)
        for k in range(kw - 1):     # kw is a small compile-time constant
            tap = xw_ref[k * n_batch:k * n_batch + m, :]
            acc_ref[...] += jnp.dot(tap.astype(jnp.bfloat16), wc_ref[k],
                                    preferred_element_type=jnp.float32)
        y = jnp.maximum(acc_ref[...] + bc_ref[...], 0.0)
        z = _layer_norm(y + residual, g1_ref[...], be1_ref[...])

        # --- TDSFullyConnectedBlock (fused on the same tile) ------------------
        h = jnp.maximum(
            jnp.dot(z.astype(jnp.bfloat16), w1_ref[...],
                    preferred_element_type=jnp.float32) + b1_ref[...], 0.0)
        y2 = jnp.dot(h.astype(jnp.bfloat16), w2_ref[...],
                     preferred_element_type=jnp.float32) + b2_ref[...]
        o_ref[...] = _layer_norm(y2 + z, g2_ref[...], be2_ref[...])

    return kernel


def tds_block_apply(x2d, blk, kernel_width, n_batch, vmem_budget):
    """One fused (TDSConv2dBlock + TDSFullyConnectedBlock) on a (T*N, F) slab."""
    rows_in, f = x2d.shape
    kw = kernel_width
    t_in = rows_in // n_batch
    t_out = t_in - kw + 1
    assert t_out >= 1, "sequence shorter than the conv kernel width"

    tile_t = _choose_tile_t(t_out, kw, n_batch, f, vmem_budget)
    n_tiles = _cdiv(t_out, tile_t)
    t_out_pad = n_tiles * tile_t
    t_in_pad = t_out_pad + kw - 1

    m = tile_t * n_batch
    halo = (kw - 1) * n_batch
    stride = tile_t // (kw - 1)     # halo Blocked-index stride (tile_t % (kw-1) == 0)

    # (8, 128)-tiling constraint on the row-blocked operands.
    # TODO(synk): for batch sizes that are not a multiple of 8, pad N before the
    # 2-D flatten instead of asserting.
    assert m % 8 == 0 and halo % 8 == 0, (m, halo)

    # Pad the time axis so the grid covers T_out exactly; padded rows are sliced
    # off below and never feed a valid output row.
    pad_rows = (t_in_pad - t_in) * n_batch
    if pad_rows:
        x2d = jnp.pad(x2d, ((0, pad_rows), (0, 0)))

    # TODO(synk): at real (emg2qwerty) scale, single-buffer these constant-index
    # operands (pipeline_mode=pl.Buffered(1)) to halve their resident VMEM.
    def const_spec(arr):
        nd = arr.ndim
        return pl.BlockSpec(arr.shape, lambda i, _nd=nd: (0,) * _nd)

    in_specs = [
        pl.BlockSpec((m, f), lambda i: (i, 0)),                    # tile rows
        pl.BlockSpec((halo, f), lambda i: ((i + 1) * stride, 0)),  # kw-1 halo rows
        const_spec(blk["wconv"]), const_spec(blk["bconv"]),
        const_spec(blk["ln1_g"]), const_spec(blk["ln1_b"]),
        const_spec(blk["fc_w1"]), const_spec(blk["fc_b1"]),
        const_spec(blk["fc_w2"]), const_spec(blk["fc_b2"]),
        const_spec(blk["ln2_g"]), const_spec(blk["ln2_b"]),
    ]

    out = pl.pallas_call(
        _make_block_kernel(kw, tile_t, n_batch, f),
        out_shape=jax.ShapeDtypeStruct((t_out_pad * n_batch, f), jnp.float32),
        grid_spec=pltpu.PrefetchScalarGridSpec(
            num_scalar_prefetch=0,
            grid=(n_tiles,),
            in_specs=in_specs,
            out_specs=pl.BlockSpec((m, f), lambda i: (i, 0)),
            scratch_shapes=[pltpu.VMEM((m + halo, f), jnp.float32),   # input window
                            pltpu.VMEM((m, f), jnp.float32)]),        # conv accumulator
        compiler_params=pltpu.CompilerParams(
            dimension_semantics=("parallel",),
            vmem_limit_bytes=vmem_budget),
    )(x2d, x2d, blk["wconv"], blk["bconv"], blk["ln1_g"], blk["ln1_b"],
      blk["fc_w1"], blk["fc_b1"], blk["fc_w2"], blk["fc_b2"],
      blk["ln2_g"], blk["ln2_b"])

    return out[:t_out * n_batch]


# ---------------------------------------------------------------------------
# Parameters (PyTorch-equivalent init) and kernel-ready packing.
# ---------------------------------------------------------------------------
def init_params(key, num_features, block_channels, kernel_width):
    f = num_features
    blocks = []
    for channels in block_channels:
        assert f % channels == 0, "block_channels must evenly divide num_features"
        width = f // channels
        key, k0, k1, k2, k3, k4, k5 = jax.random.split(key, 7)

        def u(k, shape, s):
            return jax.random.uniform(k, shape, jnp.float32, -s, s)

        s_conv = 1.0 / math.sqrt(channels * kernel_width)  # Conv2d fan_in = Ci*1*kw
        s_fc = 1.0 / math.sqrt(f)                          # Linear fan_in = F
        blocks.append(dict(
            channels=channels, width=width,
            # conv_w[k, ci, co] == torch_conv.weight[co, ci, 0, k]
            conv_w=u(k0, (kernel_width, channels, channels), s_conv),
            conv_b=u(k1, (channels,), s_conv),
            ln1_g=jnp.ones((1, f), jnp.float32), ln1_b=jnp.zeros((1, f), jnp.float32),
            fc_w1=u(k2, (f, f), s_fc), fc_b1=u(k3, (1, f), s_fc),   # stored as x @ w
            fc_w2=u(k4, (f, f), s_fc), fc_b2=u(k5, (1, f), s_fc),
            ln2_g=jnp.ones((1, f), jnp.float32), ln2_b=jnp.zeros((1, f), jnp.float32),
        ))
    return blocks


def prepare_block_params(blk, num_features):
    """Kernel-ready params: per-tap conv matrices + bf16 matmul weights."""
    f = num_features
    width = blk["width"]
    kw = blk["conv_w"].shape[0]
    eye = jnp.eye(width, dtype=jnp.float32)
    # Per-tap block-diagonal expansion of the grouped conv (canonical feature
    # ordering f = channel*width + w):
    #   wconv[k, ci*width + wi, co*width + wo] = conv_w[k, ci, co] * (wi == wo)
    # TODO(synk): the true grouped contraction ((rows*width, channels) @
    # (channels, channels)) removes the width-fold zero FLOPs and the kw*F*F
    # weight footprint, but needs a lane-splitting (rows, F)->(rows*width,
    # channels) relayout inside the kernel whose Mosaic reshape support is
    # generation/version dependent; the per-tap block-diagonal form is kept here.
    wconv = jnp.einsum("kic,wv->kiwcv", blk["conv_w"], eye).reshape(kw, f, f)
    bconv = jnp.repeat(blk["conv_b"], width).reshape(1, f)
    return dict(
        wconv=wconv.astype(jnp.bfloat16), bconv=bconv,
        ln1_g=blk["ln1_g"], ln1_b=blk["ln1_b"],
        fc_w1=blk["fc_w1"].astype(jnp.bfloat16), fc_b1=blk["fc_b1"],
        fc_w2=blk["fc_w2"].astype(jnp.bfloat16), fc_b2=blk["fc_b2"],
        ln2_g=blk["ln2_g"], ln2_b=blk["ln2_b"],
    )


# ---------------------------------------------------------------------------
# Encoder forward: sequence of fused (conv-block + fc-block) kernels.
# ---------------------------------------------------------------------------
def encoder_forward(x, blocks, kernel_width, vmem_budget):
    t, n, f = x.shape
    assert kernel_width >= 2
    h = x.reshape(t * n, f)       # lane-dense 2-D activation slab
    # TODO(synk): for bandwidth-limited v5e, emit the inter-block activation as
    # bf16 (or fuse adjacent block pairs into one pallas_call) to halve the
    # inter-block HBM round trip.
    for blk in blocks:
        h = tds_block_apply(h, blk, kernel_width, n, vmem_budget)
    return h.reshape(h.shape[0] // n, n, f)


# ---------------------------------------------------------------------------
# Pure-JAX f32 reference with the exact PyTorch semantics (for tolerance check).
# ---------------------------------------------------------------------------
def encoder_reference(x, raw_blocks, kernel_width):
    kw = kernel_width
    hi = jax.lax.Precision.HIGHEST
    for blk in raw_blocks:
        c, wd = blk["channels"], blk["width"]
        t_in, n, f = x.shape
        t_out = t_in - kw + 1
        x4 = x.reshape(t_in, n, c, wd)
        y = jnp.broadcast_to(blk["conv_b"][None, None, :, None], (t_out, n, c, wd))
        for k in range(kw):
            y = y + jnp.einsum("tnid,ic->tncd", x4[k:k + t_out], blk["conv_w"][k],
                               precision=hi)
        y = jnp.maximum(y, 0.0).reshape(t_out, n, f)
        z = _layer_norm(y + x[kw - 1:], blk["ln1_g"][0], blk["ln1_b"][0])
        h = jnp.maximum(jnp.dot(z, blk["fc_w1"], precision=hi) + blk["fc_b1"][0], 0.0)
        y2 = jnp.dot(h, blk["fc_w2"], precision=hi) + blk["fc_b2"][0]
        x = _layer_norm(y2 + z, blk["ln2_g"][0], blk["ln2_b"][0])
    return x


if __name__ == "__main__":
    num_features = 128            # lane-aligned (multiple of 128)
    block_channels = (16, 16)     # width = 8 per block
    kernel_width = 5
    T, N = 40, 8

    key = jax.random.PRNGKey(0)
    key, xk = jax.random.split(key)
    x = jax.random.normal(xk, (T, N, num_features), jnp.float32)

    raw = init_params(key, num_features, block_channels, kernel_width)
    blocks = [prepare_block_params(b, num_features) for b in raw]

    budget = _vmem_budget_bytes()
    fwd = jax.jit(functools.partial(encoder_forward, kernel_width=kernel_width,
                                    vmem_budget=budget))
    out = jax.block_until_ready(fwd(x, blocks))

    expected_t = T - len(block_channels) * (kernel_width - 1)
    assert out.shape == (expected_t, N, num_features), out.shape
    assert bool(jnp.all(jnp.isfinite(out)))

    # Tolerance check against an f32 reference with the exact PyTorch semantics
    # (kernel matmuls run with bf16 inputs / f32 accumulation).
    ref = encoder_reference(x, raw, kernel_width)
    err = float(jnp.max(jnp.abs(out - ref)))
    assert err < 0.2, f"max abs error vs f32 reference: {err}"
    print("KERNEL_OK")
</pallas_src>

<mosaic_0001>
module attributes {stable_mosaic.version = 11 : i64} {
  func.func @kernel(%arg0: i32, %arg1: memref<128x128xf32, #tpu.memory_space<vmem>>, %arg2: memref<32x128xf32, #tpu.memory_space<vmem>>, %arg3: memref<5x128x128xbf16, #tpu.memory_space<vmem>>, %arg4: memref<1x128xf32, #tpu.memory_space<vmem>>, %arg5: memref<1x128xf32, #tpu.memory_space<vmem>>, %arg6: memref<1x128xf32, #tpu.memory_space<vmem>>, %arg7: memref<128x128xbf16, #tpu.memory_space<vmem>>, %arg8: memref<1x128xf32, #tpu.memory_space<vmem>>, %arg9: memref<128x128xbf16, #tpu.memory_space<vmem>>, %arg10: memref<1x128xf32, #tpu.memory_space<vmem>>, %arg11: memref<1x128xf32, #tpu.memory_space<vmem>>, %arg12: memref<1x128xf32, #tpu.memory_space<vmem>>, %arg13: memref<128x128xf32, #tpu.memory_space<vmem>>, %arg14: memref<160x128xf32, #tpu.memory_space<vmem>>, %arg15: memref<128x128xf32, #tpu.memory_space<vmem>>) attributes {dimension_semantics = [#tpu.dimension_semantics<parallel>], iteration_bounds = array<i64: 3>, scalar_prefetch = 0 : i64, scratch_operands = 2 : i64, tpu.core_type = #tpu.core_type<tc>, window_params = [{transform_indices = @transform_0, window_bounds = array<i64: 128, 128>}, {transform_indices = @transform_1, window_bounds = array<i64: 32, 128>}, {pipeline_mode = #tpu.pipeline_mode<synchronous>, transform_indices = @transform_2, window_bounds = array<i64: 5, 128, 128>}, {pipeline_mode = #tpu.pipeline_mode<synchronous>, transform_indices = @transform_3, window_bounds = array<i64: 1, 128>}, {pipeline_mode = #tpu.pipeline_mode<synchronous>, transform_indices = @transform_4, window_bounds = array<i64: 1, 128>}, {pipeline_mode = #tpu.pipeline_mode<synchronous>, transform_indices = @transform_5, window_bounds = array<i64: 1, 128>}, {pipeline_mode = #tpu.pipeline_mode<synchronous>, transform_indices = @transform_6, window_bounds = array<i64: 128, 128>}, {pipeline_mode = #tpu.pipeline_mode<synchronous>, transform_indices = @transform_7, window_bounds = array<i64: 1, 128>}, {pipeline_mode = #tpu.pipeline_mode<synchronous>, transform_indices = @transform_8, window_bounds = array<i64: 128, 128>}, {pipeline_mode = #tpu.pipeline_mode<synchronous>, transform_indices = @transform_9, window_bounds = array<i64: 1, 128>}, {pipeline_mode = #tpu.pipeline_mode<synchronous>, transform_indices = @transform_10, window_bounds = array<i64: 1, 128>}, {pipeline_mode = #tpu.pipeline_mode<synchronous>, transform_indices = @transform_11, window_bounds = array<i64: 1, 128>}, {transform_indices = @transform_12, window_bounds = array<i64: 128, 128>}]} {
    %c0 = arith.constant 0 : index
    %c0_0 = arith.constant 0 : index
    %0 = vector.load %arg1[%c0, %c0_0] : memref<128x128xf32, #tpu.memory_space<vmem>>, vector<128x128xf32>
    %c0_1 = arith.constant 0 : index
    %c0_2 = arith.constant 0 : index
    %1 = vector.load %arg14[%c0_1, %c0_2] : memref<160x128xf32, #tpu.memory_space<vmem>>, vector<128x128xf32>
    tpu.vector_store %arg14[%c0_1, %c0_2], %0 {strides = array<i32>} : memref<160x128xf32, #tpu.memory_space<vmem>>, vector<128x128xf32>,
    %c0_3 = arith.constant 0 : index
    %c0_4 = arith.constant 0 : index
    %2 = vector.load %arg2[%c0_3, %c0_4] : memref<32x128xf32, #tpu.memory_space<vmem>>, vector<32x128xf32>
    %c128 = arith.constant 128 : index
    %c0_5 = arith.constant 0 : index
    %3 = vector.load %arg14[%c128, %c0_5] : memref<160x128xf32, #tpu.memory_space<vmem>>, vector<32x128xf32>
    tpu.vector_store %arg14[%c128, %c0_5], %2 {strides = array<i32>} : memref<160x128xf32, #tpu.memory_space<vmem>>, vector<32x128xf32>,
    %c32 = arith.constant 32 : index
    %c0_6 = arith.constant 0 : index
    %4 = vector.load %arg14[%c32, %c0_6] : memref<160x128xf32, #tpu.memory_space<vmem>>, vector<128x128xf32>
    %5 = arith.truncf %4 : vector<128x128xf32> to vector<128x128xbf16>
    %c4 = arith.constant 4 : index
    %c0_7 = arith.constant 0 : index
    %c0_8 = arith.constant 0 : index
    %6 = vector.load %arg3[%c4, %c0_7, %c0_8] : memref<5x128x128xbf16, #tpu.memory_space<vmem>>, vector<1x128x128xbf16>
    %7 = vector.shape_cast %6 : vector<1x128x128xbf16> to vector<128x128xbf16>
    %cst = arith.constant dense<0.000000e+00> : vector<128x128xf32>
    %8 = tpu.matmul %5, %7, %cst {dimension_numbers = #tpu.dot_dimension_numbers<[1], [0], [0], [1], [0, 0, 1, 1], [], []>} : vector<128x128xbf16>, vector<128x128xbf16>, vector<128x128xf32> -> vector<128x128xf32>
    %c0_9 = arith.constant 0 : index
    %c0_10 = arith.constant 0 : index
    %9 = vector.load %arg15[%c0_9, %c0_10] : memref<128x128xf32, #tpu.memory_space<vmem>>, vector<128x128xf32>
    tpu.vector_store %arg15[%c0_9, %c0_10], %8 {strides = array<i32>} : memref<128x128xf32, #tpu.memory_space<vmem>>, vector<128x128xf32>,
    %c0_11 = arith.constant 0 : index
    %c0_12 = arith.constant 0 : index
    %10 = vector.load %arg14[%c0_11, %c0_12] : memref<160x128xf32, #tpu.memory_space<vmem>>, vector<128x128xf32>
    %c0_13 = arith.constant 0 : index
    %c0_14 = arith.constant 0 : index
    %11 = vector.load %arg15[%c0_13, %c0_14] : memref<128x128xf32, #tpu.memory_space<vmem>>, vector<128x128xf32>
    %12 = arith.truncf %10 : vector<128x128xf32> to vector<128x128xbf16>
    %c0_15 = arith.constant 0 : index
    %c0_16 = arith.constant 0 : index
    %c0_17 = arith.constant 0 : index
    %13 = vector.load %arg3[%c0_15, %c0_16, %c0_17] : memref<5x128x128xbf16, #tpu.memory_space<vmem>>, vector<1x128x128xbf16>
    %14 = vector.shape_cast %13 : vector<1x128x128xbf16> to vector<128x128xbf16>
    %cst_18 = arith.constant dense<0.000000e+00> : vector<128x128xf32>
    %15 = tpu.matmul %12, %14, %cst_18 {dimension_numbers = #tpu.dot_dimension_numbers<[1], [0], [0], [1], [0, 0, 1, 1], [], []>} : vector<128x128xbf16>, vector<128x128xbf16>, vector<128x128xf32> -> vector<128x128xf32>
    %16 = arith.addf %11, %15 : vector<128x128xf32>
    %c0_19 = arith.constant 0 : index
    %c0_20 = arith.constant 0 : index
    %17 = vector.load %arg15[%c0_19, %c0_20] : memref<128x128xf32, #tpu.memory_space<vmem>>, vector<128x128xf32>
    tpu.vector_store %arg15[%c0_19, %c0_20], %16 {strides = array<i32>} : memref<128x128xf32, #tpu.memory_space<vmem>>, vector<128x128xf32>,
    %c8 = arith.constant 8 : index
    %c0_21 = arith.constant 0 : index
    %18 = vector.load %arg14[%c8, %c0_21] : memref<160x128xf32, #tpu.memory_space<vmem>>, vector<128x128xf32>
    %c0_22 = arith.constant 0 : index
    %c0_23 = arith.constant 0 : index
    %19 = vector.load %arg15[%c0_22, %c0_23] : memref<128x128xf32, #tpu.memory_space<vmem>>, vector<128x128xf32>
    %20 = arith.truncf %18 : vector<128x128xf32> to vector<128x128xbf16>
    %c1 = arith.constant 1 : index
    %c0_24 = arith.constant 0 : index
    %c0_25 = arith.constant 0 : index
    %21 = vector.load %arg3[%c1, %c0_24, %c0_25] : memref<5x128x128xbf16, #tpu.memory_space<vmem>>, vector<1x128x128xbf16>
    %22 = vector.shape_cast %21 : vector<1x128x128xbf16> to vector<128x128xbf16>
    %cst_26 = arith.constant dense<0.000000e+00> : vector<128x128xf32>
    %23 = tpu.matmul %20, %22, %cst_26 {dimension_numbers = #tpu.dot_dimension_numbers<[1], [0], [0], [1], [0, 0, 1, 1], [], []>} : vector<128x128xbf16>, vector<128x128xbf16>, vector<128x128xf32> -> vector<128x128xf32>
    %24 = arith.addf %19, %23 : vector<128x128xf32>
    %c0_27 = arith.constant 0 : index
    %c0_28 = arith.constant 0 : index
    %25 = vector.load %arg15[%c0_27, %c0_28] : memref<128x128xf32, #tpu.memory_space<vmem>>, vector<128x128xf32>
    tpu.vector_store %arg15[%c0_27, %c0_28], %24 {strides = array<i32>} : memref<128x128xf32, #tpu.memory_space<vmem>>, vector<128x128xf32>,
    %c16 = arith.constant 16 : index
    %c0_29 = arith.constant 0 : index
    %26 = vector.load %arg14[%c16, %c0_29] : memref<160x128xf32, #tpu.memory_space<vmem>>, vector<128x128xf32>
    %c0_30 = arith.constant 0 : index
    %c0_31 = arith.constant 0 : index
    %27 = vector.load %arg15[%c0_30, %c0_31] : memref<128x128xf32, #tpu.memory_space<vmem>>, vector<128x128xf32>
    %28 = arith.truncf %26 : vector<128x128xf32> to vector<128x128xbf16>
    %c2 = arith.constant 2 : index
    %c0_32 = arith.constant 0 : index
    %c0_33 = arith.constant 0 : index
    %29 = vector.load %arg3[%c2, %c0_32, %c0_33] : memref<5x128x128xbf16, #tpu.memory_space<vmem>>, vector<1x128x128xbf16>
    %30 = vector.shape_cast %29 : vector<1x128x128xbf16> to vector<128x128xbf16>
    %cst_34 = arith.constant dense<0.000000e+00> : vector<128x128xf32>
    %31 = tpu.matmul %28, %30, %cst_34 {dimension_numbers = #tpu.dot_dimension_numbers<[1], [0], [0], [1], [0, 0, 1, 1], [], []>} : vector<128x128xbf16>, vector<128x128xbf16>, vector<128x128xf32> -> vector<128x128xf32>
    %32 = arith.addf %27, %31 : vector<128x128xf32>
    %c0_35 = arith.constant 0 : index
    %c0_36 = arith.constant 0 : index
    %33 = vector.load %arg15[%c0_35, %c0_36] : memref<128x128xf32, #tpu.memory_space<vmem>>, vector<128x128xf32>
    tpu.vector_store %arg15[%c0_35, %c0_36], %32 {strides = array<i32>} : memref<128x128xf32, #tpu.memory_space<vmem>>, vector<128x128xf32>,
    %c24 = arith.constant 24 : index
    %c0_37 = arith.constant 0 : index
    %34 = vector.load %arg14[%c24, %c0_37] : memref<160x128xf32, #tpu.memory_space<vmem>>, vector<128x128xf32>
    %c0_38 = arith.constant 0 : index
    %c0_39 = arith.constant 0 : index
    %35 = vector.load %arg15[%c0_38, %c0_39] : memref<128x128xf32, #tpu.memory_space<vmem>>, vector<128x128xf32>
    %36 = arith.truncf %34 : vector<128x128xf32> to vector<128x128xbf16>
    %c3 = arith.constant 3 : index
    %c0_40 = arith.constant 0 : index
    %c0_41 = arith.constant 0 : index
    %37 = vector.load %arg3[%c3, %c0_40, %c0_41] : memref<5x128x128xbf16, #tpu.memory_space<vmem>>, vector<1x128x128xbf16>
    %38 = vector.shape_cast %37 : vector<1x128x128xbf16> to vector<128x128xbf16>
    %cst_42 = arith.constant dense<0.000000e+00> : vector<128x128xf32>
    %39 = tpu.matmul %36, %38, %cst_42 {dimension_numbers = #tpu.dot_dimension_numbers<[1], [0], [0], [1], [0, 0, 1, 1], [], []>} : vector<128x128xbf16>, vector<128x128xbf16>, vector<128x128xf32> -> vector<128x128xf32>
    %40 = arith.addf %35, %39 : vector<128x128xf32>
    %c0_43 = arith.constant 0 : index
    %c0_44 = arith.constant 0 : index
    %41 = vector.load %arg15[%c0_43, %c0_44] : memref<128x128xf32, #tpu.memory_space<vmem>>, vector<128x128xf32>
    tpu.vector_store %arg15[%c0_43, %c0_44], %40 {strides = array<i32>} : memref<128x128xf32, #tpu.memory_space<vmem>>, vector<128x128xf32>,
    %c0_45 = arith.constant 0 : index
    %c0_46 = arith.constant 0 : index
    %42 = vector.load %arg15[%c0_45, %c0_46] : memref<128x128xf32, #tpu.memory_space<vmem>>, vector<128x128xf32>
    %c0_47 = arith.constant 0 : index
    %c0_48 = arith.constant 0 : index
    %43 = vector.load %arg4[%c0_47, %c0_48] : memref<1x128xf32, #tpu.memory_space<vmem>>, vector<1x128xf32>
    %44 = vector.broadcast %43 : vector<1x128xf32> to vector<128x128xf32>
    %45 = arith.addf %42, %44 : vector<128x128xf32>
    %cst_49 = arith.constant 0.000000e+00 : f32
    %46 = vector.broadcast %cst_49 : f32 to vector<128x128xf32>
    %47 = arith.maximumf %45, %46 : vector<128x128xf32>
    %48 = arith.addf %47, %4 : vector<128x128xf32>
    %c0_50 = arith.constant 0 : index
    %c0_51 = arith.constant 0 : index
    %49 = vector.load %arg5[%c0_50, %c0_51] : memref<1x128xf32, #tpu.memory_space<vmem>>, vector<1x128xf32>
    %c0_52 = arith.constant 0 : index
    %c0_53 = arith.constant 0 : index
    %50 = vector.load %arg6[%c0_52, %c0_53] : memref<1x128xf32, #tpu.memory_space<vmem>>, vector<1x128xf32>
    %cst_54 = arith.constant dense<0.000000e+00> : vector<128xf32>
    %51 = vector.multi_reduction <add>, %48, %cst_54 [1] : vector<128x128xf32> to vector<128xf32>
    %52 = vector.shape_cast %51 : vector<128xf32> to vector<128x1xf32>
    %cst_55 = arith.constant 1.280000e+02 : f32
    %53 = vector.broadcast %cst_55 : f32 to vector<128x1xf32>
    %54 = arith.divf %52, %53 : vector<128x1xf32>
    %55 = vector.broadcast %54 : vector<128x1xf32> to vector<128x128xf32>
    %56 = arith.subf %48, %55 : vector<128x128xf32>
    %57 = arith.mulf %56, %56 : vector<128x128xf32>
    %cst_56 = arith.constant dense<0.000000e+00> : vector<128xf32>
    %58 = vector.multi_reduction <add>, %57, %cst_56 [1] : vector<128x128xf32> to vector<128xf32>
    %59 = vector.shape_cast %58 : vector<128xf32> to vector<128x1xf32>
    %cst_57 = arith.constant 1.280000e+02 : f32
    %60 = vector.broadcast %cst_57 : f32 to vector<128x1xf32>
    %61 = arith.divf %59, %60 : vector<128x1xf32>
    %62 = vector.broadcast %54 : vector<128x1xf32> to vector<128x128xf32>
    %63 = arith.subf %48, %62 : vector<128x128xf32>
    %cst_58 = arith.constant 9.99999974E-6 : f32
    %64 = vector.broadcast %cst_58 : f32 to vector<128x1xf32>
    %65 = arith.addf %61, %64 : vector<128x1xf32>
    %66 = math.rsqrt %65 : vector<128x1xf32>
    %67 = vector.broadcast %66 : vector<128x1xf32> to vector<128x128xf32>
    %68 = arith.mulf %63, %67 : vector<128x128xf32>
    %69 = vector.broadcast %49 : vector<1x128xf32> to vector<128x128xf32>
    %70 = arith.mulf %68, %69 : vector<128x128xf32>
    %71 = vector.broadcast %50 : vector<1x128xf32> to vector<128x128xf32>
    %72 = arith.addf %70, %71 : vector<128x128xf32>
    %73 = arith.truncf %72 : vector<128x128xf32> to vector<128x128xbf16>
    %c0_59 = arith.constant 0 : index
    %c0_60 = arith.constant 0 : index
    %74 = vector.load %arg7[%c0_59, %c0_60] : memref<128x128xbf16, #tpu.memory_space<vmem>>, vector<128x128xbf16>
    %cst_61 = arith.constant dense<0.000000e+00> : vector<128x128xf32>
    %75 = tpu.matmul %73, %74, %cst_61 {dimension_numbers = #tpu.dot_dimension_numbers<[1], [0], [0], [1], [0, 0, 1, 1], [], []>} : vector<128x128xbf16>, vector<128x128xbf16>, vector<128x128xf32> -> vector<128x128xf32>
    %c0_62 = arith.constant 0 : index
    %c0_63 = arith.constant 0 : index
    %76 = vector.load %arg8[%c0_62, %c0_63] : memref<1x128xf32, #tpu.memory_space<vmem>>, vector<1x128xf32>
    %77 = vector.broadcast %76 : vector<1x128xf32> to vector<128x128xf32>
    %78 = arith.addf %75, %77 : vector<128x128xf32>
    %cst_64 = arith.constant 0.000000e+00 : f32
    %79 = vector.broadcast %cst_64 : f32 to vector<128x128xf32>
    %80 = arith.maximumf %78, %79 : vector<128x128xf32>
    %81 = arith.truncf %80 : vector<128x128xf32> to vector<128x128xbf16>
    %c0_65 = arith.constant 0 : index
    %c0_66 = arith.constant 0 : index
    %82 = vector.load %arg9[%c0_65, %c0_66] : memref<128x128xbf16, #tpu.memory_space<vmem>>, vector<128x128xbf16>
    %cst_67 = arith.constant dense<0.000000e+00> : vector<128x128xf32>
    %83 = tpu.matmul %81, %82, %cst_67 {dimension_numbers = #tpu.dot_dimension_numbers<[1], [0], [0], [1], [0, 0, 1, 1], [], []>} : vector<128x128xbf16>, vector<128x128xbf16>, vector<128x128xf32> -> vector<128x128xf32>
    %c0_68 = arith.constant 0 : index
    %c0_69 = arith.constant 0 : index
    %84 = vector.load %arg10[%c0_68, %c0_69] : memref<1x128xf32, #tpu.memory_space<vmem>>, vector<1x128xf32>
    %85 = vector.broadcast %84 : vector<1x128xf32> to vector<128x128xf32>
    %86 = arith.addf %83, %85 : vector<128x128xf32>
    %87 = arith.addf %86, %72 : vector<128x128xf32>
    %c0_70 = arith.constant 0 : index
    %c0_71 = arith.constant 0 : index
    %88 = vector.load %arg11[%c0_70, %c0_71] : memref<1x128xf32, #tpu.memory_space<vmem>>, vector<1x128xf32>
    %c0_72 = arith.constant 0 : index
    %c0_73 = arith.constant 0 : index
    %89 = vector.load %arg12[%c0_72, %c0_73] : memref<1x128xf32, #tpu.memory_space<vmem>>, vector<1x128xf32>
    %cst_74 = arith.constant dense<0.000000e+00> : vector<128xf32>
    %90 = vector.multi_reduction <add>, %87, %cst_74 [1] : vector<128x128xf32> to vector<128xf32>
    %91 = vector.shape_cast %90 : vector<128xf32> to vector<128x1xf32>
    %cst_75 = arith.constant 1.280000e+02 : f32
    %92 = vector.broadcast %cst_75 : f32 to vector<128x1xf32>
    %93 = arith.divf %91, %92 : vector<128x1xf32>
    %94 = vector.broadcast %93 : vector<128x1xf32> to vector<128x128xf32>
    %95 = arith.subf %87, %94 : vector<128x128xf32>
    %96 = arith.mulf %95, %95 : vector<128x128xf32>
    %cst_76 = arith.constant dense<0.000000e+00> : vector<128xf32>
    %97 = vector.multi_reduction <add>, %96, %cst_76 [1] : vector<128x128xf32> to vector<128xf32>
    %98 = vector.shape_cast %97 : vector<128xf32> to vector<128x1xf32>
    %cst_77 = arith.constant 1.280000e+02 : f32
    %99 = vector.broadcast %cst_77 : f32 to vector<128x1xf32>
    %100 = arith.divf %98, %99 : vector<128x1xf32>
    %101 = vector.broadcast %93 : vector<128x1xf32> to vector<128x128xf32>
    %102 = arith.subf %87, %101 : vector<128x128xf32>
    %cst_78 = arith.constant 9.99999974E-6 : f32
    %103 = vector.broadcast %cst_78 : f32 to vector<128x1xf32>
    %104 = arith.addf %100, %103 : vector<128x1xf32>
    %105 = math.rsqrt %104 : vector<128x1xf32>
    %106 = vector.broadcast %105 : vector<128x1xf32> to vector<128x128xf32>
    %107 = arith.mulf %102, %106 : vector<128x128xf32>
    %108 = vector.broadcast %88 : vector<1x128xf32> to vector<128x128xf32>
    %109 = arith.mulf %107, %108 : vector<128x128xf32>
    %110 = vector.broadcast %89 : vector<1x128xf32> to vector<128x128xf32>
    %111 = arith.addf %109, %110 : vector<128x128xf32>
    %c0_79 = arith.constant 0 : index
    %c0_80 = arith.constant 0 : index
    %112 = vector.load %arg13[%c0_79, %c0_80] : memref<128x128xf32, #tpu.memory_space<vmem>>, vector<128x128xf32>
    tpu.vector_store %arg13[%c0_79, %c0_80], %111 {strides = array<i32>} : memref<128x128xf32, #tpu.memory_space<vmem>>, vector<128x128xf32>,
    return
  }
  func.func @transform_0(%arg0: i32) -> (i32, i32) {
    %c0_i32 = arith.constant 0 : i32
    %c0_i32_0 = arith.constant 0 : i32
    return %arg0, %c0_i32 : i32, i32
  }
  func.func @transform_1(%arg0: i32) -> (i32, i32) {
    %c1_i32 = arith.constant 1 : i32
    %0 = arith.addi %arg0, %c1_i32 : i32
    %c4_i32 = arith.constant 4 : i32
    %1 = arith.muli %0, %c4_i32 : i32
    %c0_i32 = arith.constant 0 : i32
    %c0_i32_0 = arith.constant 0 : i32
    return %1, %c0_i32 : i32, i32
  }
  func.func @transform_2(%arg0: i32) -> (i32, i32, i32) {
    %c0_i32 = arith.constant 0 : i32
    %c0_i32_0 = arith.constant 0 : i32
    %c0_i32_1 = arith.constant 0 : i32
    %c0_i32_2 = arith.constant 0 : i32
    return %c0_i32, %c0_i32_0, %c0_i32_1 : i32, i32, i32
  }
  func.func @transform_3(%arg0: i32) -> (i32, i32) {
    %c0_i32 = arith.constant 0 : i32
    %c0_i32_0 = arith.constant 0 : i32
    %c0_i32_1 = arith.constant 0 : i32
    return %c0_i32, %c0_i32_0 : i32, i32
  }
  func.func @transform_4(%arg0: i32) -> (i32, i32) {
    %c0_i32 = arith.constant 0 : i32
    %c0_i32_0 = arith.constant 0 : i32
    %c0_i32_1 = arith.constant 0 : i32
    return %c0_i32, %c0_i32_0 : i32, i32
  }
  func.func @transform_5(%arg0: i32) -> (i32, i32) {
    %c0_i32 = arith.constant 0 : i32
    %c0_i32_0 = arith.constant 0 : i32
    %c0_i32_1 = arith.constant 0 : i32
    return %c0_i32, %c0_i32_0 : i32, i32
  }
  func.func @transform_6(%arg0: i32) -> (i32, i32) {
    %c0_i32 = arith.constant 0 : i32
    %c0_i32_0 = arith.constant 0 : i32
    %c0_i32_1 = arith.constant 0 : i32
    return %c0_i32, %c0_i32_0 : i32, i32
  }
  func.func @transform_7(%arg0: i32) -> (i32, i32) {
    %c0_i32 = arith.constant 0 : i32
    %c0_i32_0 = arith.constant 0 : i32
    %c0_i32_1 = arith.constant 0 : i32
    return %c0_i32, %c0_i32_0 : i32, i32
  }
  func.func @transform_8(%arg0: i32) -> (i32, i32) {
    %c0_i32 = arith.constant 0 : i32
    %c0_i32_0 = arith.constant 0 : i32
    %c0_i32_1 = arith.constant 0 : i32
    return %c0_i32, %c0_i32_0 : i32, i32
  }
  func.func @transform_9(%arg0: i32) -> (i32, i32) {
    %c0_i32 = arith.constant 0 : i32
    %c0_i32_0 = arith.constant 0 : i32
    %c0_i32_1 = arith.constant 0 : i32
    return %c0_i32, %c0_i32_0 : i32, i32
  }
  func.func @transform_10(%arg0: i32) -> (i32, i32) {
    %c0_i32 = arith.constant 0 : i32
    %c0_i32_0 = arith.constant 0 : i32
    %c0_i32_1 = arith.constant 0 : i32
    return %c0_i32, %c0_i32_0 : i32, i32
  }
  func.func @transform_11(%arg0: i32) -> (i32, i32) {
    %c0_i32 = arith.constant 0 : i32
    %c0_i32_0 = arith.constant 0 : i32
    %c0_i32_1 = arith.constant 0 : i32
    return %c0_i32, %c0_i32_0 : i32, i32
  }
  func.func @transform_12(%arg0: i32) -> (i32, i32) {
    %c0_i32 = arith.constant 0 : i32
    %c0_i32_0 = arith.constant 0 : i32
    return %arg0, %c0_i32 : i32, i32
  }
}

module attributes {stable_mosaic.version = 11 : i64} {
  func.func @kernel(%arg0: i32, %arg1: memref<128x128xf32, #tpu.memory_space<vmem>>, %arg2: memref<32x128xf32, #tpu.memory_space<vmem>>, %arg3: memref<5x128x128xbf16, #tpu.memory_space<vmem>>, %arg4: memref<1x128xf32, #tpu.memory_space<vmem>>, %arg5: memref<1x128xf32, #tpu.memory_space<vmem>>, %arg6: memref<1x128xf32, #tpu.memory_space<vmem>>, %arg7: memref<128x128xbf16, #tpu.memory_space<vmem>>, %arg8: memref<1x128xf32, #tpu.memory_space<vmem>>, %arg9: memref<128x128xbf16, #tpu.memory_space<vmem>>, %arg10: memref<1x128xf32, #tpu.memory_space<vmem>>, %arg11: memref<1x128xf32, #tpu.memory_space<vmem>>, %arg12: memref<1x128xf32, #tpu.memory_space<vmem>>, %arg13: memref<128x128xf32, #tpu.memory_space<vmem>>, %arg14: memref<160x128xf32, #tpu.memory_space<vmem>>, %arg15: memref<128x128xf32, #tpu.memory_space<vmem>>) attributes {dimension_semantics = [#tpu.dimension_semantics<parallel>], iteration_bounds = array<i64: 2>, scalar_prefetch = 0 : i64, scratch_operands = 2 : i64, tpu.core_type = #tpu.core_type<tc>, window_params = [{transform_indices = @transform_0, window_bounds = array<i64: 128, 128>}, {transform_indices = @transform_1, window_bounds = array<i64: 32, 128>}, {pipeline_mode = #tpu.pipeline_mode<synchronous>, transform_indices = @transform_2, window_bounds = array<i64: 5, 128, 128>}, {pipeline_mode = #tpu.pipeline_mode<synchronous>, transform_indices = @transform_3, window_bounds = array<i64: 1, 128>}, {pipeline_mode = #tpu.pipeline_mode<synchronous>, transform_indices = @transform_4, window_bounds = array<i64: 1, 128>}, {pipeline_mode = #tpu.pipeline_mode<synchronous>, transform_indices = @transform_5, window_bounds = array<i64: 1, 128>}, {pipeline_mode = #tpu.pipeline_mode<synchronous>, transform_indices = @transform_6, window_bounds = array<i64: 128, 128>}, {pipeline_mode = #tpu.pipeline_mode<synchronous>, transform_indices = @transform_7, window_bounds = array<i64: 1, 128>}, {pipeline_mode = #tpu.pipeline_mode<synchronous>, transform_indices = @transform_8, window_bounds = array<i64: 128, 128>}, {pipeline_mode = #tpu.pipeline_mode<synchronous>, transform_indices = @transform_9, window_bounds = array<i64: 1, 128>}, {pipeline_mode = #tpu.pipeline_mode<synchronous>, transform_indices = @transform_10, window_bounds = array<i64: 1, 128>}, {pipeline_mode = #tpu.pipeline_mode<synchronous>, transform_indices = @transform_11, window_bounds = array<i64: 1, 128>}, {transform_indices = @transform_12, window_bounds = array<i64: 128, 128>}]} {
    %c0 = arith.constant 0 : index
    %c0_0 = arith.constant 0 : index
    %0 = vector.load %arg1[%c0, %c0_0] : memref<128x128xf32, #tpu.memory_space<vmem>>, vector<128x128xf32>
    %c0_1 = arith.constant 0 : index
    %c0_2 = arith.constant 0 : index
    %1 = vector.load %arg14[%c0_1, %c0_2] : memref<160x128xf32, #tpu.memory_space<vmem>>, vector<128x128xf32>
    tpu.vector_store %arg14[%c0_1, %c0_2], %0 {strides = array<i32>} : memref<160x128xf32, #tpu.memory_space<vmem>>, vector<128x128xf32>,
    %c0_3 = arith.constant 0 : index
    %c0_4 = arith.constant 0 : index
    %2 = vector.load %arg2[%c0_3, %c0_4] : memref<32x128xf32, #tpu.memory_space<vmem>>, vector<32x128xf32>
    %c128 = arith.constant 128 : index
    %c0_5 = arith.constant 0 : index
    %3 = vector.load %arg14[%c128, %c0_5] : memref<160x128xf32, #tpu.memory_space<vmem>>, vector<32x128xf32>
    tpu.vector_store %arg14[%c128, %c0_5], %2 {strides = array<i32>} : memref<160x128xf32, #tpu.memory_space<vmem>>, vector<32x128xf32>,
    %c32 = arith.constant 32 : index
    %c0_6 = arith.constant 0 : index
    %4 = vector.load %arg14[%c32, %c0_6] : memref<160x128xf32, #tpu.memory_space<vmem>>, vector<128x128xf32>
    %5 = arith.truncf %4 : vector<128x128xf32> to vector<128x128xbf16>
    %c4 = arith.constant 4 : index
    %c0_7 = arith.constant 0 : index
    %c0_8 = arith.constant 0 : index
    %6 = vector.load %arg3[%c4, %c0_7, %c0_8] : memref<5x128x128xbf16, #tpu.memory_space<vmem>>, vector<1x128x128xbf16>
    %7 = vector.shape_cast %6 : vector<1x128x128xbf16> to vector<128x128xbf16>
    %cst = arith.constant dense<0.000000e+00> : vector<128x128xf32>
    %8 = tpu.matmul %5, %7, %cst {dimension_numbers = #tpu.dot_dimension_numbers<[1], [0], [0], [1], [0, 0, 1, 1], [], []>} : vector<128x128xbf16>, vector<128x128xbf16>, vector<128x128xf32> -> vector<128x128xf32>
    %c0_9 = arith.constant 0 : index
    %c0_10 = arith.constant 0 : index
    %9 = vector.load %arg15[%c0_9, %c0_10] : memref<128x128xf32, #tpu.memory_space<vmem>>, vector<128x128xf32>
    tpu.vector_store %arg15[%c0_9, %c0_10], %8 {strides = array<i32>} : memref<128x128xf32, #tpu.memory_space<vmem>>, vector<128x128xf32>,
    %c0_11 = arith.constant 0 : index
    %c0_12 = arith.constant 0 : index
    %10 = vector.load %arg14[%c0_11, %c0_12] : memref<160x128xf32, #tpu.memory_space<vmem>>, vector<128x128xf32>
    %c0_13 = arith.constant 0 : index
    %c0_14 = arith.constant 0 : index
    %11 = vector.load %arg15[%c0_13, %c0_14] : memref<128x128xf32, #tpu.memory_space<vmem>>, vector<128x128xf32>
    %12 = arith.truncf %10 : vector<128x128xf32> to vector<128x128xbf16>
    %c0_15 = arith.constant 0 : index
    %c0_16 = arith.constant 0 : index
    %c0_17 = arith.constant 0 : index
    %13 = vector.load %arg3[%c0_15, %c0_16, %c0_17] : memref<5x128x128xbf16, #tpu.memory_space<vmem>>, vector<1x128x128xbf16>
    %14 = vector.shape_cast %13 : vector<1x128x128xbf16> to vector<128x128xbf16>
    %cst_18 = arith.constant dense<0.000000e+00> : vector<128x128xf32>
    %15 = tpu.matmul %12, %14, %cst_18 {dimension_numbers = #tpu.dot_dimension_numbers<[1], [0], [0], [1], [0, 0, 1, 1], [], []>} : vector<128x128xbf16>, vector<128x128xbf16>, vector<128x128xf32> -> vector<128x128xf32>
    %16 = arith.addf %11, %15 : vector<128x128xf32>
    %c0_19 = arith.constant 0 : index
    %c0_20 = arith.constant 0 : index
    %17 = vector.load %arg15[%c0_19, %c0_20] : memref<128x128xf32, #tpu.memory_space<vmem>>, vector<128x128xf32>
    tpu.vector_store %arg15[%c0_19, %c0_20], %16 {strides = array<i32>} : memref<128x128xf32, #tpu.memory_space<vmem>>, vector<128x128xf32>,
    %c8 = arith.constant 8 : index
    %c0_21 = arith.constant 0 : index
    %18 = vector.load %arg14[%c8, %c0_21] : memref<160x128xf32, #tpu.memory_space<vmem>>, vector<128x128xf32>
    %c0_22 = arith.constant 0 : index
    %c0_23 = arith.constant 0 : index
    %19 = vector.load %arg15[%c0_22, %c0_23] : memref<128x128xf32, #tpu.memory_space<vmem>>, vector<128x128xf32>
    %20 = arith.truncf %18 : vector<128x128xf32> to vector<128x128xbf16>
    %c1 = arith.constant 1 : index
    %c0_24 = arith.constant 0 : index
    %c0_25 = arith.constant 0 : index
    %21 = vector.load %arg3[%c1, %c0_24, %c0_25] : memref<5x128x128xbf16, #tpu.memory_space<vmem>>, vector<1x128x128xbf16>
    %22 = vector.shape_cast %21 : vector<1x128x128xbf16> to vector<128x128xbf16>
    %cst_26 = arith.constant dense<0.000000e+00> : vector<128x128xf32>
    %23 = tpu.matmul %20, %22, %cst_26 {dimension_numbers = #tpu.dot_dimension_numbers<[1], [0], [0], [1], [0, 0, 1, 1], [], []>} : vector<128x128xbf16>, vector<128x128xbf16>, vector<128x128xf32> -> vector<128x128xf32>
    %24 = arith.addf %19, %23 : vector<128x128xf32>
    %c0_27 = arith.constant 0 : index
    %c0_28 = arith.constant 0 : index
    %25 = vector.load %arg15[%c0_27, %c0_28] : memref<128x128xf32, #tpu.memory_space<vmem>>, vector<128x128xf32>
    tpu.vector_store %arg15[%c0_27, %c0_28], %24 {strides = array<i32>} : memref<128x128xf32, #tpu.memory_space<vmem>>, vector<128x128xf32>,
    %c16 = arith.constant 16 : index
    %c0_29 = arith.constant 0 : index
    %26 = vector.load %arg14[%c16, %c0_29] : memref<160x128xf32, #tpu.memory_space<vmem>>, vector<128x128xf32>
    %c0_30 = arith.constant 0 : index
    %c0_31 = arith.constant 0 : index
    %27 = vector.load %arg15[%c0_30, %c0_31] : memref<128x128xf32, #tpu.memory_space<vmem>>, vector<128x128xf32>
    %28 = arith.truncf %26 : vector<128x128xf32> to vector<128x128xbf16>
    %c2 = arith.constant 2 : index
    %c0_32 = arith.constant 0 : index
    %c0_33 = arith.constant 0 : index
    %29 = vector.load %arg3[%c2, %c0_32, %c0_33] : memref<5x128x128xbf16, #tpu.memory_space<vmem>>, vector<1x128x128xbf16>
    %30 = vector.shape_cast %29 : vector<1x128x128xbf16> to vector<128x128xbf16>
    %cst_34 = arith.constant dense<0.000000e+00> : vector<128x128xf32>
    %31 = tpu.matmul %28, %30, %cst_34 {dimension_numbers = #tpu.dot_dimension_numbers<[1], [0], [0], [1], [0, 0, 1, 1], [], []>} : vector<128x128xbf16>, vector<128x128xbf16>, vector<128x128xf32> -> vector<128x128xf32>
    %32 = arith.addf %27, %31 : vector<128x128xf32>
    %c0_35 = arith.constant 0 : index
    %c0_36 = arith.constant 0 : index
    %33 = vector.load %arg15[%c0_35, %c0_36] : memref<128x128xf32, #tpu.memory_space<vmem>>, vector<128x128xf32>
    tpu.vector_store %arg15[%c0_35, %c0_36], %32 {strides = array<i32>} : memref<128x128xf32, #tpu.memory_space<vmem>>, vector<128x128xf32>,
    %c24 = arith.constant 24 : index
    %c0_37 = arith.constant 0 : index
    %34 = vector.load %arg14[%c24, %c0_37] : memref<160x128xf32, #tpu.memory_space<vmem>>, vector<128x128xf32>
    %c0_38 = arith.constant 0 : index
    %c0_39 = arith.constant 0 : index
    %35 = vector.load %arg15[%c0_38, %c0_39] : memref<128x128xf32, #tpu.memory_space<vmem>>, vector<128x128xf32>
    %36 = arith.truncf %34 : vector<128x128xf32> to vector<128x128xbf16>
    %c3 = arith.constant 3 : index
    %c0_40 = arith.constant 0 : index
    %c0_41 = arith.constant 0 : index
    %37 = vector.load %arg3[%c3, %c0_40, %c0_41] : memref<5x128x128xbf16, #tpu.memory_space<vmem>>, vector<1x128x128xbf16>
    %38 = vector.shape_cast %37 : vector<1x128x128xbf16> to vector<128x128xbf16>
    %cst_42 = arith.constant dense<0.000000e+00> : vector<128x128xf32>
    %39 = tpu.matmul %36, %38, %cst_42 {dimension_numbers = #tpu.dot_dimension_numbers<[1], [0], [0], [1], [0, 0, 1, 1], [], []>} : vector<128x128xbf16>, vector<128x128xbf16>, vector<128x128xf32> -> vector<128x128xf32>
    %40 = arith.addf %35, %39 : vector<128x128xf32>
    %c0_43 = arith.constant 0 : index
    %c0_44 = arith.constant 0 : index
    %41 = vector.load %arg15[%c0_43, %c0_44] : memref<128x128xf32, #tpu.memory_space<vmem>>, vector<128x128xf32>
    tpu.vector_store %arg15[%c0_43, %c0_44], %40 {strides = array<i32>} : memref<128x128xf32, #tpu.memory_space<vmem>>, vector<128x128xf32>,
    %c0_45 = arith.constant 0 : index
    %c0_46 = arith.constant 0 : index
    %42 = vector.load %arg15[%c0_45, %c0_46] : memref<128x128xf32, #tpu.memory_space<vmem>>, vector<128x128xf32>
    %c0_47 = arith.constant 0 : index
    %c0_48 = arith.constant 0 : index
    %43 = vector.load %arg4[%c0_47, %c0_48] : memref<1x128xf32, #tpu.memory_space<vmem>>, vector<1x128xf32>
    %44 = vector.broadcast %43 : vector<1x128xf32> to vector<128x128xf32>
    %45 = arith.addf %42, %44 : vector<128x128xf32>
    %cst_49 = arith.constant 0.000000e+00 : f32
    %46 = vector.broadcast %cst_49 : f32 to vector<128x128xf32>
    %47 = arith.maximumf %45, %46 : vector<128x128xf32>
    %48 = arith.addf %47, %4 : vector<128x128xf32>
    %c0_50 = arith.constant 0 : index
    %c0_51 = arith.constant 0 : index
    %49 = vector.load %arg5[%c0_50, %c0_51] : memref<1x128xf32, #tpu.memory_space<vmem>>, vector<1x128xf32>
    %c0_52 = arith.constant 0 : index
    %c0_53 = arith.constant 0 : index
    %50 = vector.load %arg6[%c0_52, %c0_53] : memref<1x128xf32, #tpu.memory_space<vmem>>, vector<1x128xf32>
    %cst_54 = arith.constant dense<0.000000e+00> : vector<128xf32>
    %51 = vector.multi_reduction <add>, %48, %cst_54 [1] : vector<128x128xf32> to vector<128xf32>
    %52 = vector.shape_cast %51 : vector<128xf32> to vector<128x1xf32>
    %cst_55 = arith.constant 1.280000e+02 : f32
    %53 = vector.broadcast %cst_55 : f32 to vector<128x1xf32>
    %54 = arith.divf %52, %53 : vector<128x1xf32>
    %55 = vector.broadcast %54 : vector<128x1xf32> to vector<128x128xf32>
    %56 = arith.subf %48, %55 : vector<128x128xf32>
    %57 = arith.mulf %56, %56 : vector<128x128xf32>
    %cst_56 = arith.constant dense<0.000000e+00> : vector<128xf32>
    %58 = vector.multi_reduction <add>, %57, %cst_56 [1] : vector<128x128xf32> to vector<128xf32>
    %59 = vector.shape_cast %58 : vector<128xf32> to vector<128x1xf32>
    %cst_57 = arith.constant 1.280000e+02 : f32
    %60 = vector.broadcast %cst_57 : f32 to vector<128x1xf32>
    %61 = arith.divf %59, %60 : vector<128x1xf32>
    %62 = vector.broadcast %54 : vector<128x1xf32> to vector<128x128xf32>
    %63 = arith.subf %48, %62 : vector<128x128xf32>
    %cst_58 = arith.constant 9.99999974E-6 : f32
    %64 = vector.broadcast %cst_58 : f32 to vector<128x1xf32>
    %65 = arith.addf %61, %64 : vector<128x1xf32>
    %66 = math.rsqrt %65 : vector<128x1xf32>
    %67 = vector.broadcast %66 : vector<128x1xf32> to vector<128x128xf32>
    %68 = arith.mulf %63, %67 : vector<128x128xf32>
    %69 = vector.broadcast %49 : vector<1x128xf32> to vector<128x128xf32>
    %70 = arith.mulf %68, %69 : vector<128x128xf32>
    %71 = vector.broadcast %50 : vector<1x128xf32> to vector<128x128xf32>
    %72 = arith.addf %70, %71 : vector<128x128xf32>
    %73 = arith.truncf %72 : vector<128x128xf32> to vector<128x128xbf16>
    %c0_59 = arith.constant 0 : index
    %c0_60 = arith.constant 0 : index
    %74 = vector.load %arg7[%c0_59, %c0_60] : memref<128x128xbf16, #tpu.memory_space<vmem>>, vector<128x128xbf16>
    %cst_61 = arith.constant dense<0.000000e+00> : vector<128x128xf32>
    %75 = tpu.matmul %73, %74, %cst_61 {dimension_numbers = #tpu.dot_dimension_numbers<[1], [0], [0], [1], [0, 0, 1, 1], [], []>} : vector<128x128xbf16>, vector<128x128xbf16>, vector<128x128xf32> -> vector<128x128xf32>
    %c0_62 = arith.constant 0 : index
    %c0_63 = arith.constant 0 : index
    %76 = vector.load %arg8[%c0_62, %c0_63] : memref<1x128xf32, #tpu.memory_space<vmem>>, vector<1x128xf32>
    %77 = vector.broadcast %76 : vector<1x128xf32> to vector<128x128xf32>
    %78 = arith.addf %75, %77 : vector<128x128xf32>
    %cst_64 = arith.constant 0.000000e+00 : f32
    %79 = vector.broadcast %cst_64 : f32 to vector<128x128xf32>
    %80 = arith.maximumf %78, %79 : vector<128x128xf32>
    %81 = arith.truncf %80 : vector<128x128xf32> to vector<128x128xbf16>
    %c0_65 = arith.constant 0 : index
    %c0_66 = arith.constant 0 : index
    %82 = vector.load %arg9[%c0_65, %c0_66] : memref<128x128xbf16, #tpu.memory_space<vmem>>, vector<128x128xbf16>
    %cst_67 = arith.constant dense<0.000000e+00> : vector<128x128xf32>
    %83 = tpu.matmul %81, %82, %cst_67 {dimension_numbers = #tpu.dot_dimension_numbers<[1], [0], [0], [1], [0, 0, 1, 1], [], []>} : vector<128x128xbf16>, vector<128x128xbf16>, vector<128x128xf32> -> vector<128x128xf32>
    %c0_68 = arith.constant 0 : index
    %c0_69 = arith.constant 0 : index
    %84 = vector.load %arg10[%c0_68, %c0_69] : memref<1x128xf32, #tpu.memory_space<vmem>>, vector<1x128xf32>
    %85 = vector.broadcast %84 : vector<1x128xf32> to vector<128x128xf32>
    %86 = arith.addf %83, %85 : vector<128x128xf32>
    %87 = arith.addf %86, %72 : vector<128x128xf32>
    %c0_70 = arith.constant 0 : index
    %c0_71 = arith.constant 0 : index
    %88 = vector.load %arg11[%c0_70, %c0_71] : memref<1x128xf32, #tpu.memory_space<vmem>>, vector<1x128xf32>
    %c0_72 = arith.constant 0 : index
    %c0_73 = arith.constant 0 : index
    %89 = vector.load %arg12[%c0_72, %c0_73] : memref<1x128xf32, #tpu.memory_space<vmem>>, vector<1x128xf32>
    %cst_74 = arith.constant dense<0.000000e+00> : vector<128xf32>
    %90 = vector.multi_reduction <add>, %87, %cst_74 [1] : vector<128x128xf32> to vector<128xf32>
    %91 = vector.shape_cast %90 : vector<128xf32> to vector<128x1xf32>
    %cst_75 = arith.constant 1.280000e+02 : f32
    %92 = vector.broadcast %cst_75 : f32 to vector<128x1xf32>
    %93 = arith.divf %91, %92 : vector<128x1xf32>
    %94 = vector.broadcast %93 : vector<128x1xf32> to vector<128x128xf32>
    %95 = arith.subf %87, %94 : vector<128x128xf32>
    %96 = arith.mulf %95, %95 : vector<128x128xf32>
    %cst_76 = arith.constant dense<0.000000e+00> : vector<128xf32>
    %97 = vector.multi_reduction <add>, %96, %cst_76 [1] : vector<128x128xf32> to vector<128xf32>
    %98 = vector.shape_cast %97 : vector<128xf32> to vector<128x1xf32>
    %cst_77 = arith.constant 1.280000e+02 : f32
    %99 = vector.broadcast %cst_77 : f32 to vector<128x1xf32>
    %100 = arith.divf %98, %99 : vector<128x1xf32>
    %101 = vector.broadcast %93 : vector<128x1xf32> to vector<128x128xf32>
    %102 = arith.subf %87, %101 : vector<128x128xf32>
    %cst_78 = arith.constant 9.99999974E-6 : f32
    %103 = vector.broadcast %cst_78 : f32 to vector<128x1xf32>
    %104 = arith.addf %100, %103 : vector<128x1xf32>
    %105 = math.rsqrt %104 : vector<128x1xf32>
    %106 = vector.broadcast %105 : vector<128x1xf32> to vector<128x128xf32>
    %107 = arith.mulf %102, %106 : vector<128x128xf32>
    %108 = vector.broadcast %88 : vector<1x128xf32> to vector<128x128xf32>
    %109 = arith.mulf %107, %108 : vector<128x128xf32>
    %110 = vector.broadcast %89 : vector<1x128xf32> to vector<128x128xf32>
    %111 = arith.addf %109, %110 : vector<128x128xf32>
    %c0_79 = arith.constant 0 : index
    %c0_80 = arith.constant 0 : index
    %112 = vector.load %arg13[%c0_79, %c0_80] : memref<128x128xf32, #tpu.memory_space<vmem>>, vector<128x128xf32>
    tpu.vector_store %arg13[%c0_79, %c0_80], %111 {strides = array<i32>} : memref<128x128xf32, #tpu.memory_space<vmem>>, vector<128x128xf32>,
    return
  }
  func.func @transform_0(%arg0: i32) -> (i32, i32) {
    %c0_i32 = arith.constant 0 : i32
    %c0_i32_0 = arith.constant 0 : i32
    return %arg0, %c0_i32 : i32, i32
  }
  func.func @transform_1(%arg0: i32) -> (i32, i32) {
    %c1_i32 = arith.constant 1 : i32
    %0 = arith.addi %arg0, %c1_i32 : i32
    %c4_i32 = arith.constant 4 : i32
    %1 = arith.muli %0, %c4_i32 : i32
    %c0_i32 = arith.constant 0 : i32
    %c0_i32_0 = arith.constant 0 : i32
    return %1, %c0_i32 : i32, i32
  }
  func.func @transform_2(%arg0: i32) -> (i32, i32, i32) {
    %c0_i32 = arith.constant 0 : i32
    %c0_i32_0 = arith.constant 0 : i32
    %c0_i32_1 = arith.constant 0 : i32
    %c0_i32_2 = arith.constant 0 : i32
    return %c0_i32, %c0_i32_0, %c0_i32_1 : i32, i32, i32
  }
  func.func @transform_3(%arg0: i32) -> (i32, i32) {
    %c0_i32 = arith.constant 0 : i32
    %c0_i32_0 = arith.constant 0 : i32
    %c0_i32_1 = arith.constant 0 : i32
    return %c0_i32, %c0_i32_0 : i32, i32
  }
  func.func @transform_4(%arg0: i32) -> (i32, i32) {
    %c0_i32 = arith.constant 0 : i32
    %c0_i32_0 = arith.constant 0 : i32
    %c0_i32_1 = arith.constant 0 : i32
    return %c0_i32, %c0_i32_0 : i32, i32
  }
  func.func @transform_5(%arg0: i32) -> (i32, i32) {
    %c0_i32 = arith.constant 0 : i32
    %c0_i32_0 = arith.constant 0 : i32
    %c0_i32_1 = arith.constant 0 : i32
    return %c0_i32, %c0_i32_0 : i32, i32
  }
  func.func @transform_6(%arg0: i32) -> (i32, i32) {
    %c0_i32 = arith.constant 0 : i32
    %c0_i32_0 = arith.constant 0 : i32
    %c0_i32_1 = arith.constant 0 : i32
    return %c0_i32, %c0_i32_0 : i32, i32
  }
  func.func @transform_7(%arg0: i32) -> (i32, i32) {
    %c0_i32 = arith.constant 0 : i32
    %c0_i32_0 = arith.constant 0 : i32
    %c0_i32_1 = arith.constant 0 : i32
    return %c0_i32, %c0_i32_0 : i32, i32
  }
  func.func @transform_8(%arg0: i32) -> (i32, i32) {
    %c0_i32 = arith.constant 0 : i32
    %c0_i32_0 = arith.constant 0 : i32
    %c0_i32_1 = arith.constant 0 : i32
    return %c0_i32, %c0_i32_0 : i32, i32
  }
  func.func @transform_9(%arg0: i32) -> (i32, i32) {
    %c0_i32 = arith.constant 0 : i32
    %c0_i32_0 = arith.constant 0 : i32
    %c0_i32_1 = arith.constant 0 : i32
    return %c0_i32, %c0_i32_0 : i32, i32
  }
  func.func @transform_10(%arg0: i32) -> (i32, i32) {
    %c0_i32 = arith.constant 0 : i32
    %c0_i32_0 = arith.constant 0 : i32
    %c0_i32_1 = arith.constant 0 : i32
    return %c0_i32, %c0_i32_0 : i32, i32
  }
  func.func @transform_11(%arg0: i32) -> (i32, i32) {
    %c0_i32 = arith.constant 0 : i32
    %c0_i32_0 = arith.constant 0 : i32
    %c0_i32_1 = arith.constant 0 : i32
    return %c0_i32, %c0_i32_0 : i32, i32
  }
  func.func @transform_12(%arg0: i32) -> (i32, i32) {
    %c0_i32 = arith.constant 0 : i32
    %c0_i32_0 = arith.constant 0 : i32
    return %arg0, %c0_i32 : i32, i32
  }
}

</mosaic_0001>

<bundles_post_ra>
// kernel: encoder_forward.3
= control target key start
LH: loop header
LB: loop body
LE: loop exit
PB: predicated region body
PF: predicated region fallthrough
CT: control target
= control target key end

     0   :  { %17 = vsyncpa [#allocation5], 0  ;;  %s4419_s0 = inlined_call_operand.vmem [shape: f32[288,128], index: 0, kind: input, shape index: {}, may-alias: {0,1}]   ;;  %s4420_s1 = inlined_call_operand.vmem [shape: f32[288,128], index: 1, kind: input, shape index: {}, may-alias: {0,1}]   ;;  %s4421_s2 = inlined_call_operand.vmem [shape: bf16[5,128,128], index: 2, kind: input, shape index: {}]   ;;  %s4422_s3 = inlined_call_operand.vmem [shape: f32[1,128], index: 3, kind: input, shape index: {}]   ;;  %s4423_s4 = inlined_call_operand.vmem [shape: f32[1,128], index: 4, kind: input, shape index: {}]   ;;  %s4424_s5 = inlined_call_operand.vmem [shape: f32[1,128], index: 5, kind: input, shape index: {}]   ;;  %s4425_s6 = inlined_call_operand.vmem [shape: bf16[128,128], index: 6, kind: input, shape index: {}]   ;;  %s4426_s7 = inlined_call_operand.vmem [shape: f32[1,128], index: 7, kind: input, shape index: {}]   ;;  %s4427_s8 = inlined_call_operand.vmem [shape: bf16[128,128], index: 8, kind: input, shape index: {}]   ;;  %s4428_s9 = inlined_call_operand.vmem [shape: f32[1,128], index: 9, kind: input, shape index: {}]   ;;  %s4429_s10 = inlined_call_operand.vmem [shape: f32[1,128], index: 10, kind: input, shape index: {}]   ;;  %s4430_s11 = inlined_call_operand.vmem [shape: f32[1,128], index: 11, kind: input, shape index: {}]   ;;  %s4431_s12 = inlined_call_operand.hbm [shape: f32[256,128], index: 12, kind: output, shape index: {}]  }
   0x1   :  { %19 = vsyncpa [#allocation5 + $0x1], 0  ;;  %s3500_s21 = smov 0   ;;  %s3502_s22 = smov 0  }
   0x2   :  { %s3504_s23 = smov 0   ;;  %s3506_s24 = smov 0  }
   0x3 LB: > { %s3521_s25 = sadd.s32 4294967295, %s3430_s24   ;;  %s2653_s26 = sadd.s32 4294967294, %s3430_s24   ;;  %s3430_s24 = sphi %s3506_s24, %s4439_s24   ;;  %s3426_s23 = sphi %s3504_s23, %s4438_s23   ;;  %s3422_s22 = sphi %s3502_s22, %s4437_s22   ;;  %s3418_s21 = sphi %s3500_s21, %s4436_s21  }
   0x4   : > { %s3525_s27 = sadd.s32 1, %s3430_s24   ;;  %s298_s28 = sadd.s32 1, %s3426_s23 }
   0x5   : > { %s295_s29 = ssub.s32 %s3430_s24, %s3525_s27  ;;  %p308_p0 = scmp.ne.s32.totalorder %s3426_s23, %s3422_s22 }
   0x6   : > { %p296_p1 = scmp.eq.s32.totalorder %s295_s29, 0  ;;  %p309_p2 = scmp.eq.s32.totalorder %s3521_s25, 1 }
   0x7   : > { %p314_p3 = scmp.ne.s32.totalorder %s3422_s22, %s3418_s21  ;;  %p315_p4 = scmp.eq.s32.totalorder %s2653_s26, 1 }
   0x8   : > { %s3536_s30 = scalar_select %p296_p1, %s3426_s23, %s298_s28  }
   0x9   : > { %p3538_p5 = por %p309_p2, %p308_p0  ;;  %p3542_p6 = por %p315_p4, %p314_p3 }
   0xa   : > { %4432 = sst [smem:[#allocation7_spill]] %s3536_s30  ;;  %p2658_p7 = scmp.ge.s32.totalorder %s3430_s24, 1 }
   0xb   : > { %p393_p8 = scmp.lt.s32.totalorder %s3430_s24, 3 }
   0xd   : > { %p394_p9 = pnand %p2658_p7, %p393_p8 }
   0xe   : > { %v3248_v0 = vld [vmem:[%s4421_s2] sm:$0xff] (!%p394_p9)   ;;  %s3552_s17 = sshll.u32 (!%p394_p9), %s3521_s25, 4  ;;  %v3249_v1 = vld [vmem:[%s4421_s2 + $0x8] sm:$0xff] (!%p394_p9)   ;;  %v3250_v2 = vld [vmem:[%s4421_s2 + $0x10] sm:$0xff] (!%p394_p9)   ;;  %s2804_s15 = sshll.u32 (!%p394_p9), %s3521_s25, 11 }
   0xf   : > { %397 = sbr.rel (%p394_p9) target bundleno = 1481 (0x5c9), region = 68  ;;  %p451_p10 = scmp.lt.s32.totalorder (!%p394_p9), %s3552_s17, 35  ;;  %2951 = vmatprep.subr.bf16.mxu0 (!%p394_p9), %v3248_v0  ;;  %v3251_v3 = vld [vmem:[%s4421_s2 + $0x18] sm:$0xff] (!%p394_p9)   ;;  %v3252_v9 = vld [vmem:[%s4421_s2 + $0x20] sm:$0xff] (!%p394_p9)   ;;  %v3253_v11 = vld [vmem:[%s4421_s2 + $0x28] sm:$0xff] (!%p394_p9)  }
  0x10   : > { %2952 = vmatpush3.bf16.msra.mxu0 (!%p394_p9), %v3248_v0  ;;  %v3254_v12 = vld [vmem:[%s4421_s2 + $0x30] sm:$0xff] (!%p394_p9)   ;;  %v3255_v13 = vld [vmem:[%s4421_s2 + $0x38] sm:$0xff] (!%p394_p9)   ;;  %v3256_v16 = vld [vmem:[%s4421_s2 + $0x40] sm:$0xff] (!%p394_p9)   ;;  %s2806_s26 = sadd.s32 (!%p394_p9), 16, %s3552_s17 }
  0x11   : > { %2953 = vmatprep.subr.bf16.mxu0 (!%p394_p9), %v3249_v1  ;;  %v3272_v18 = vld [vmem:[%s4421_s2 + $0x100] sm:$0xff] (!%p394_p9)   ;;  %v3257_v19 = vld [vmem:[%s4421_s2 + $0x48] sm:$0xff] (!%p394_p9)   ;;  %v3258_v23 = vld [vmem:[%s4421_s2 + $0x50] sm:$0xff] (!%p394_p9)   ;;  %p463_p11 = scmp.lt.s32.totalorder (!%p394_p9), %s2806_s26, 35 }
  0x12   : > { %2919 = vmatprep.subr.bf16.mxu1 (!%p394_p9), %v3272_v18  ;;  %v3274_v20 = vld [vmem:[%s4421_s2 + $0x108] sm:$0xff] (!%p394_p9)   ;;  %v3276_v24 = vld [vmem:[%s4421_s2 + $0x110] sm:$0xff] (!%p394_p9)   ;;  %v3278_v28 = vld [vmem:[%s4421_s2 + $0x118] sm:$0xff] (!%p394_p9)  }
  0x13   : > { %2920 = vmatpush3.bf16.msra.mxu1 (!%p394_p9), %v3272_v18  ;;  %v3259_v30 = vld [vmem:[%s4421_s2 + $0x58] sm:$0xff] (!%p394_p9)   ;;  %v3260_v33 = vld [vmem:[%s4421_s2 + $0x60] sm:$0xff] (!%p394_p9)   ;;  %v3261_v38 = vld [vmem:[%s4421_s2 + $0x68] sm:$0xff] (!%p394_p9)  }
  0x14   : > { %2954 = vmatpush3.bf16.msra.mxu0 (!%p394_p9), %v3249_v1  ;;  %2921 = vmatprep.subr.bf16.mxu1 (!%p394_p9), %v3274_v20  ;;  %v3280_v34 = vld [vmem:[%s4421_s2 + $0x120] sm:$0xff] (!%p394_p9)   ;;  %v3282_v39 = vld [vmem:[%s4421_s2 + $0x128] sm:$0xff] (!%p394_p9)   ;;  %v3284_v41 = vld [vmem:[%s4421_s2 + $0x130] sm:$0xff] (!%p394_p9)  }
  0x15   : > { %2955 = vmatprep.subr.bf16.mxu0 (!%p394_p9), %v3250_v2  ;;  %v3262_v44 = vld [vmem:[%s4421_s2 + $0x70] sm:$0xff] (!%p394_p9)   ;;  %v3286_v45 = vld [vmem:[%s4421_s2 + $0x138] sm:$0xff] (!%p394_p9)   ;;  %v3264_v49 = vld [vmem:[%s4421_s2 + $0x80] sm:$0xff] (!%p394_p9)  }
  0x16   : > { %s452_s20 = scalar_select %p451_p10, %s3552_s17, 35  ;;  %v3263_v47 = vld [vmem:[%s4421_s2 + $0x78] sm:$0xff]   ;;  %v3265_v52 = vld [vmem:[%s4421_s2 + $0x88] sm:$0xff]   ;;  %v3266_v53 = vld [vmem:[%s4421_s2 + $0x90] sm:$0xff]  }
  0x17   : > { %2922 = vmatpush3.bf16.msra.mxu1 %v3274_v20  ;;  %s4441_s26 = smov (!%p463_p11, %s2806_s26), 35  ;;  %v3267_v56 = vld [vmem:[%s4421_s2 + $0x98] sm:$0xff]   ;;  %v3268_v57 = vld [vmem:[%s4421_s2 + $0xa0] sm:$0xff]   ;;  %v3269_v63 = vld [vmem:[%s4421_s2 + $0xa8] sm:$0xff]  }
  0x18   : > { %s2661_s29 = sshll.u32 %s452_s20, 3  ;;  %2956 = vmatpush3.bf16.msra.mxu0 %v3250_v2  ;;  %2923 = vmatprep.subr.bf16.mxu1 %v3276_v24  ;;  %s2664_s18 = sshll.u32 %s4441_s26, 3  ;;  %v3270_v2 = vld [vmem:[%s4421_s2 + $0xb0] sm:$0xff]  }
  0x19   : > { %s3565_s30 = scalar_lea.vmem %s4419_s0, %s2661_s29  ;;  %2957 = vmatprep.subr.bf16.mxu0 %v3251_v3  ;;  %s466_s28 = scalar_lea.vmem %s4420_s1, %s2664_s18 }
  0x1a   : > { %v472_v4 = vld [vmem:[%s3565_s30] sm:$0xff]  ;;  %v3572_v5 = vld [vmem:[%s3565_s30 + $0x8] sm:$0xff]  ;;  %v3599_v14 = vld [vmem:[%s3565_s30 + $0x10] sm:$0xff]  ;;  %s443_s18 = sand.u32 1, %s3422_s22   ;;  %s4369_s20 = scalar_lea.hbm %s4431_s12, %s2804_s15 }
  0x1b   : > { %v746_v6 = vpack.c.bf16 %v3572_v5, %v472_v4  ;;  %v3576_v7 = vld [vmem:[%s3565_s30 + $0x20] sm:$0xff]  ;;  %v3579_v8 = vld [vmem:[%s3565_s30 + $0x28] sm:$0xff]  ;;  %v3602_v15 = vld [vmem:[%s3565_s30 + $0x18] sm:$0xff]  ;;  %2924 = vmatpush3.bf16.msra.mxu1 %v3276_v24  ;;  %v979_v48 = vpack.c.bf16 %v3599_v14, %v3572_v5  ;;  %s4378_s25 = scalar_lea.sflag [#allocation5], %s443_s18  ;;  %s3432_s29 = smov [#allocation4]  }
  0x1c   : > { %v3586_v10 = vpack.c.bf16 %v3579_v8, %v3576_v7  ;;  %2958 = vmatpush3.bf16.msra.mxu0 %v3251_v3  ;;  %v3609_v17 = vpack.c.bf16 %v3602_v15, %v3599_v14  ;;  %v3621_v21 = vld [vmem:[%s3565_s30 + $0x30] sm:$0xff]  ;;  %v3624_v22 = vld [vmem:[%s3565_s30 + $0x38] sm:$0xff]  ;;  %v3635_v25 = vld [vmem:[%s3565_s30 + $0x40] sm:$0xff]  ;;  %2925 = vmatprep.subr.bf16.mxu1 %v3278_v28  ;;  %v3721_v50 = vpack.c.bf16 %v3576_v7, %v3602_v15  ;;  %s3372_s17 = sshll.u32 %s3432_s29, 4  ;;  %s3373_s17 = int_to_ptr.vmem [resolvable:$false] %s3372_s17 }
  0x1d   : > { %2967 = vmatprep.mubr.bf16.mxu0 %v746_v6  ;;  %2959 = vmatprep.subr.bf16.mxu0 %v3252_v9  ;;  %v3638_v26 = vld [vmem:[%s3565_s30 + $0x48] sm:$0xff]  ;;  %v3642_v27 = vpack.c.bf16 %v3624_v22, %v3621_v21  ;;  %v3655_v31 = vld [vmem:[%s3565_s30 + $0x50] sm:$0xff]  ;;  %v3658_v32 = vld [vmem:[%s3565_s30 + $0x58] sm:$0xff]  ;;  %v3725_v51 = vpack.c.bf16 %v3621_v21, %v3579_v8  ;;  %v3739_v54 = vpack.c.bf16 %v3635_v25, %v3624_v22  ;;  %s3374_s15 = scalar_lea.vmem %s3373_s17, 4096 }
  0x1e   : > { %2935 = vmatprep.mubr.bf16.mxu1 %v3586_v10  ;;  %v3649_v29 = vpack.c.bf16 %v3638_v26, %v3635_v25  ;;  %v3669_v35 = vld [vmem:[%s3565_s30 + $0x60] sm:$0xff]  ;;  %v3672_v36 = vld [vmem:[%s3565_s30 + $0x68] sm:$0xff]  ;;  %v3676_v37 = vpack.c.bf16 %v3658_v32, %v3655_v31  ;;  %v3692_v42 = vld [vmem:[%s3565_s30 + $0x70] sm:$0xff]  ;;  %v3743_v55 = vpack.c.bf16 %v3655_v31, %v3638_v26 }
  0x1f   : > { %2926 = vmatpush3.bf16.msra.mxu1 %v3278_v28  ;;  %v3686_v40 = vpack.c.bf16 %v3672_v36, %v3669_v35  ;;  %v3695_v43 = vld [vmem:[%s3565_s30 + $0x78] sm:$0xff]  ;;  %v3758_v58 = vld [vmem:[%s466_s28 + $0x8] sm:$0xff]  ;;  %v984_v59 = vpack.c.bf16 %v3669_v35, %v3658_v32  ;;  %v3762_v60 = vld [vmem:[%s466_s28] sm:$0xff]  ;;  %v985_v61 = vpack.c.bf16 %v3692_v42, %v3672_v36 }
  0x20   : > { %2960 = vmatpush3.bf16.msra.mxu0 %v3252_v9  ;;  %2927 = vmatprep.subr.bf16.mxu1 %v3280_v34  ;;  %v3707_v46 = vpack.c.bf16 %v3695_v43, %v3692_v42  ;;  %v534_v62 = vpack.c.bf16 %v3758_v58, %v3762_v60  ;;  %v3772_v0 = vld [vmem:[%s466_s28 + $0x10] sm:$0xff]  ;;  %v3774_v1 = vld [vmem:[%s466_s28 + $0x18] sm:$0xff]  ;;  %v986_v4 = vpack.c.bf16 %v3762_v60, %v3695_v43  ;;  %v3273_v6 = vld [vmem:[%s4421_s2 + $0xc0] sm:$0xff]   ;;  %s2659_s28 = sshll.u32 %s443_s18, 7 }
  0x21   : > { %2961 = vmatprep.subr.bf16.mxu0 %v3253_v11  ;;  %v535_v3 = vpack.c.bf16 %v3774_v1, %v3772_v0  ;;  %v3271_v5 = vld [vmem:[%s4421_s2 + $0xb8] sm:$0xff]   ;;  %v3275_v9 = vld [vmem:[%s4421_s2 + $0xc8] sm:$0xff]   ;;  %v3285_v14 = vld [vmem:[%s4421_s2 + $0xf0] sm:$0xff]   ;;  %s4307_s26 = scalar_lea.vmem [#allocation4], %s2659_s28 }
  0x22   : > { %v3287_v15 = vld [vmem:[%s4421_s2 + $0xf8] sm:$0xff]   ;;  %s2579_s16 = sshll.u32 %s4307_s26, 4  ;;  %s4371_s16 = int_to_ptr.vmem [resolvable:$true] %s2579_s16 }
  0x23   : > { %2928 = vmatpush3.bf16.msra.mxu1 %v3280_v34  ;;  %s3368_s28 = scalar_lea.vmem %s4371_s16, 2048  ;;  %p3375_p1 = scmp.lt.s32.totalorder %s4371_s16, %s3373_s17 }
  0x24   : > { %2962 = vmatpush3.bf16.msra.mxu0 %v3253_v11  ;;  %2929 = vmatprep.subr.bf16.mxu1 %v3282_v39  ;;  %v3277_v11 = vld [vmem:[%s4421_s2 + $0xd0] sm:$0xff]   ;;  %p3369_p12 = scmp.ne.s32.totalorder %s4371_s16, %s3368_s28  ;;  %p3376_p2 = scmp.lt.s32.totalorder %s3374_s15, %s3368_s28 }
  0x25   : > { %2963 = vmatprep.subr.bf16.mxu0 %v3254_v12 }
  0x26   : > { %p3370_p13 = pnand %p3369_p12, %p3538_p5  ;;  %p3377_p3 = por %p3376_p2, %p3375_p1 }
  0x27   : > { %2930 = vmatpush3.bf16.msra.mxu1 %v3282_v39 }
  0x28   : > { %2964 = vmatpush3.bf16.msra.mxu0 %v3254_v12  ;;  %2931 = vmatprep.subr.bf16.mxu1 %v3284_v41  ;;  %v3279_v12 = vld [vmem:[%s4421_s2 + $0xd8] sm:$0xff]   ;;  %p3371_p0 = pneg %p3370_p13 }
  0x29   : > { %2965 = vmatprep.subr.bf16.mxu0 %v3255_v13 }
  0x2a   : > { %p3378_p4 = pnand %p3377_p3, %p3371_p0 }
  0x2b   : > { %2932 = vmatpush3.bf16.msra.mxu1 %v3284_v41 }
  0x2c   : > { %2966 = vmatpush3.bf16.msra.mxu0 %v3255_v13  ;;  %2933 = vmatprep.subr.bf16.mxu1 %v3286_v45  ;;  %v3283_v13 = vld [vmem:[%s4421_s2 + $0xe8] sm:$0xff]  }
  0x2d   : > { %2983 = vmatprep.subr.bf16.mxu0 %v3256_v16 }
  0x2f   : > { %2968 = vmatmul.mubr.bf16.vlgmr.msra.gmra.mrb[0].mxu0 %v3609_v17  ;;  %2934 = vmatpush3.bf16.msra.mxu1 %v3286_v45 }
  0x30   : > { %2984 = vmatpush3.bf16.msra.mxu0 %v3256_v16  ;;  %2971 = vmatprep.mubr.bf16.mxu0 %v3586_v10  ;;  %v1454_v16 = vpack.c.bf16 %v3772_v0, %v3758_v58 }
  0x31   : > { %2985 = vmatprep.subr.bf16.mxu0 %v3257_v19 }
  0x32   : > { %2936 = vmatmul.mubr.bf16.vlgmr.msra.gmra.mrb[0].mxu1 %v3642_v27 }
  0x33   : > { %2939 = vmatprep.mubr.bf16.mxu1 %v3649_v29 }
  0x34   : > { %2986 = vmatpush3.bf16.msra.mxu0 %v3257_v19 }
  0x35   : > { %2987 = vmatprep.subr.bf16.mxu0 %v3258_v23 }
  0x37   : > { %2972 = vmatmul.mubr.bf16.gmra.mrb[4].mxu0 %v3642_v27 }
  0x38   : > { %2988 = vmatpush3.bf16.msra.mxu0 %v3258_v23  ;;  %2975 = vmatprep.mubr.bf16.mxu0 %v3649_v29 }
  0x39   : > { %2989 = vmatprep.subr.bf16.mxu0 %v3259_v30 }
  0x3a   : > { %2940 = vmatmul.mubr.bf16.gmra.mrb[4].mxu1 %v3676_v37 }
  0x3b   : > { %2943 = vmatprep.mubr.bf16.mxu1 %v3686_v40 }
  0x3c   : > { %2990 = vmatpush3.bf16.msra.mxu0 %v3259_v30 }
  0x3d   : > { %2991 = vmatprep.subr.bf16.mxu0 %v3260_v33 }
  0x3f   : > { %2976 = vmatmul.mubr.bf16.gmra.mrb[8].mxu0 %v3676_v37 }
  0x40   : > { %2992 = vmatpush3.bf16.msra.mxu0 %v3260_v33  ;;  %2979 = vmatprep.mubr.bf16.mxu0 %v3686_v40 }
  0x41   : > { %2993 = vmatprep.subr.bf16.mxu0 %v3261_v38 }
  0x42   : > { %2944 = vmatmul.mubr.bf16.gmra.mrb[8].mxu1 %v3707_v46 }
  0x43   : > { %2947 = vmatprep.mubr.bf16.mxu1 %v534_v62 }
  0x44   : > { %2994 = vmatpush3.bf16.msra.mxu0 %v3261_v38 }
  0x45   : > { %2995 = vmatprep.subr.bf16.mxu0 %v3262_v44 }
  0x47   : > { %2980 = vmatmul.mubr.bf16.gmra.mrb[12].mxu0 %v3707_v46 }
  0x48   : > { %2996 = vmatpush3.bf16.msra.mxu0 %v3262_v44  ;;  %2999 = vmatprep.mubr.bf16.mxu0 %v979_v48  ;;  %v3834_v44 = vld [vmem:[%s4422_s3] ss:$0 sm:$0xff] }
  0x49   : > { %2997 = vmatprep.subr.bf16.mxu0 %v3263_v47 }
  0x4a   : > { %2948 = vmatmul.mubr.bf16.gmra.mrb[12].mxu1 %v535_v3 }
  0x4c   : > { %2998 = vmatpush3.bf16.msra.mxu0 %v3263_v47 }
  0x4d   : > { %3015 = vmatprep.subr.bf16.mxu0 %v3264_v49 }
  0x4f   : > { %3000 = vmatmul.mubr.bf16.vlgmr.msra.gmra.mrb[0].mxu0 %v3721_v50 }
  0x50   : > { %3016 = vmatpush3.bf16.msra.mxu0 %v3264_v49  ;;  %3003 = vmatprep.mubr.bf16.mxu0 %v3725_v51 }
  0x51   : > { %3017 = vmatprep.subr.bf16.mxu0 %v3265_v52 }
  0x54   : > { %3018 = vmatpush3.bf16.msra.mxu0 %v3265_v52 }
  0x55   : > { %3019 = vmatprep.subr.bf16.mxu0 %v3266_v53 }
  0x57   : > { %3004 = vmatmul.mubr.bf16.gmra.mrb[4].mxu0 %v3739_v54 }
  0x58   : > { %3020 = vmatpush3.bf16.msra.mxu0 %v3266_v53  ;;  %3007 = vmatprep.mubr.bf16.mxu0 %v3743_v55 }
  0x59   : > { %3021 = vmatprep.subr.bf16.mxu0 %v3267_v56 }
  0x5c   : > { %3022 = vmatpush3.bf16.msra.mxu0 %v3267_v56 }
  0x5d   : > { %3023 = vmatprep.subr.bf16.mxu0 %v3268_v57 }
  0x5f   : > { %3008 = vmatmul.mubr.bf16.gmra.mrb[8].mxu0 %v984_v59 }
  0x60   : > { %3024 = vmatpush3.bf16.msra.mxu0 %v3268_v57  ;;  %3011 = vmatprep.mubr.bf16.mxu0 %v985_v61 }
  0x61   : > { %3025 = vmatprep.subr.bf16.mxu0 %v3269_v63 }
  0x64   : > { %3026 = vmatpush3.bf16.msra.mxu0 %v3269_v63 }
  0x65   : > { %3027 = vmatprep.subr.bf16.mxu0 %v3270_v2 }
  0x67   : > { %3012 = vmatmul.mubr.bf16.gmra.mrb[12].mxu0 %v986_v4 }
  0x68   : > { %3028 = vmatpush3.bf16.msra.mxu0 %v3270_v2  ;;  %3031 = vmatprep.mubr.bf16.mxu0 %v3609_v17 }
  0x69   : > { %3029 = vmatprep.subr.bf16.mxu0 %v3271_v5 }
  0x6c   : > { %3030 = vmatpush3.bf16.msra.mxu0 %v3271_v5 }
  0x6d   : > { %3047 = vmatprep.subr.bf16.mxu0 %v3273_v6 }
  0x6f   : > { %3032 = vmatmul.mubr.bf16.vlgmr.msra.gmra.mrb[0].mxu0 %v3586_v10  ;;  %v3281_v10 = vld [vmem:[%s4421_s2 + $0xe0] sm:$0xff]  }
  0x70   : > { %3048 = vmatpush3.bf16.msra.mxu0 %v3273_v6  ;;  %3035 = vmatprep.mubr.bf16.mxu0 %v3642_v27 }
  0x71   : > { %3049 = vmatprep.subr.bf16.mxu0 %v3275_v9 }
  0x74   : > { %3050 = vmatpush3.bf16.msra.mxu0 %v3275_v9 }
  0x75   : > { %3051 = vmatprep.subr.bf16.mxu0 %v3277_v11 }
  0x77   : > { %3036 = vmatmul.mubr.bf16.gmra.mrb[4].mxu0 %v3649_v29 }
  0x78   : > { %3052 = vmatpush3.bf16.msra.mxu0 %v3277_v11  ;;  %3039 = vmatprep.mubr.bf16.mxu0 %v3676_v37 }
  0x79   : > { %3053 = vmatprep.subr.bf16.mxu0 %v3279_v12 }
  0x7c   : > { %3054 = vmatpush3.bf16.msra.mxu0 %v3279_v12 }
  0x7d   : > { %3055 = vmatprep.subr.bf16.mxu0 %v3281_v10 }
  0x7f   : > { %3040 = vmatmul.mubr.bf16.gmra.mrb[8].mxu0 %v3686_v40 }
  0x80   : > { %3056 = vmatpush3.bf16.msra.mxu0 %v3281_v10  ;;  %3043 = vmatprep.mubr.bf16.mxu0 %v3707_v46 }
  0x81   : > { %3057 = vmatprep.subr.bf16.mxu0 %v3283_v13 }
  0x84   : > { %3058 = vmatpush3.bf16.msra.mxu0 %v3283_v13 }
  0x85   : > { %3059 = vmatprep.subr.bf16.mxu0 %v3285_v14 }
  0x87   : > { %3044 = vmatmul.mubr.bf16.gmra.mrb[12].mxu0 %v534_v62 }
  0x88   : > { %3060 = vmatpush3.bf16.msra.mxu0 %v3285_v14  ;;  %3063 = vmatprep.mubr.bf16.mxu0 %v3721_v50 }
  0x89   : > { %3061 = vmatprep.subr.bf16.mxu0 %v3287_v15 }
  0x8c   : > { %3062 = vmatpush3.bf16.msra.mxu0 %v3287_v15 }
  0x8f   : > { %3064 = vmatmul.mubr.bf16.vlgmr.msra.gmra.mrb[0].mxu0 %v3725_v51 }
  0x90   : > { %3067 = vmatprep.mubr.bf16.mxu0 %v3739_v54 }
  0x97   : > { %3068 = vmatmul.mubr.bf16.gmra.mrb[4].mxu0 %v3743_v55 }
  0x98   : > { %3071 = vmatprep.mubr.bf16.mxu0 %v984_v59 }
  0x9f   : > { %3072 = vmatmul.mubr.bf16.gmra.mrb[8].mxu0 %v985_v61 }
  0xa0   : > { %3075 = vmatprep.mubr.bf16.mxu0 %v986_v4 }
  0xa7   : > { %3076 = vmatmul.mubr.bf16.gmra.mrb[12].mxu0 %v1454_v16 }
 0x105   : > { %v2937_v17 = vpop.f32.mrb[0].mxu1 }
 0x106   : > { %v635_v18 = vpop.f32.mrb[1].mxu1 }
 0x107   : > { %v2938_v19 = vpop.f32.mrb[2].mxu1 }
 0x108   : > { %v638_v20 = vpop.f32.mrb[3].mxu1 }
 0x10d   : > { %v2941_v23 = vpop.f32.mrb[4].mxu1 }
 0x10e   : > { %v651_v24 = vpop.f32.mrb[5].mxu1 }
 0x10f   : > { %v2942_v27 = vpop.f32.mrb[6].mxu1 }
 0x110   : > { %v654_v28 = vpop.f32.mrb[7].mxu1 }
 0x115   : > { %v2945_v29 = vpop.f32.mrb[8].mxu1 }
 0x116   : > { %v667_v30 = vpop.f32.mrb[9].mxu1 }
 0x117   : > { %v2946_v33 = vpop.f32.mrb[10].mxu1 }
 0x118   : > { %v670_v34 = vpop.f32.mrb[11].mxu1 }
 0x11d   : > { %v3823_v37 = vpop.f32.mrb[12].mxu1 }
 0x11e   : > { %v3825_v38 = vpop.f32.mrb[13].mxu1 }
 0x11f   : > { %v3827_v39 = vpop.f32.mrb[14].mxu1 }
 0x120   : > { %v3829_v40 = vpop.f32.mrb[15].mxu1 }
 0x162   : > { %v3065_v41 = vpop.f32.mrb[0].mxu0 }
 0x163   : > { %v3143_v45 = vadd.f32 %v3065_v41, %v2937_v17  ;;  %v1554_v46 = vpop.f32.mrb[1].mxu0 }
 0x164   : > { %v3144_v47 = vadd.f32 %v1554_v46, %v635_v18  ;;  %v3066_v48 = vpop.f32.mrb[2].mxu0 }
 0x165   : > { %v1674_v49 = vadd.f32 %v3143_v45, %v3834_v44  ;;  %v3145_v50 = vadd.f32 %v3066_v48, %v2938_v19  ;;  %v1557_v51 = vpop.f32.mrb[3].mxu0 }
 0x166   : > { %v1672_v52 = vadd.f32 %v3144_v47, %v3834_v44  ;;  %v3146_v53 = vadd.f32 %v1557_v51, %v638_v20 }
 0x167   : > { %v1690_v54 = vmax.f32 %v1674_v49, 0.0  ;;  %v1675_v55 = vadd.f32 %v3145_v50, %v3834_v44 }
 0x168   : > { %v1688_v56 = vmax.f32 %v1672_v52, 0.0  ;;  %v1673_v57 = vadd.f32 %v3146_v53, %v3834_v44 }
 0x169   : > { %v1691_v59 = vmax.f32 %v1675_v55, 0.0  ;;  %v3841_v61 = vadd.f32 %v1690_v54, %v3621_v21 }
 0x16a   : > { %v1689_v62 = vmax.f32 %v1673_v57, 0.0  ;;  %v3069_v63 = vpop.f32.mrb[4].mxu0  ;;  %v3844_v2 = vadd.f32 %v1688_v56, %v3576_v7 }
 0x16b   : > { %v3147_v3 = vadd.f32 %v3069_v63, %v2941_v23  ;;  %1726 = vadd.xlane.f32.xlu1 %v3841_v61  ;;  %v1570_v4 = vpop.f32.mrb[5].mxu0  ;;  %v3849_v12 = vadd.f32 %v1691_v59, %v3624_v22 }
 0x16c   : > { %v3148_v5 = vadd.f32 %v1570_v4, %v651_v24  ;;  %1722 = vadd.xlane.f32.xlu0 %v3844_v2  ;;  %v3070_v6 = vpop.f32.mrb[6].mxu0  ;;  %v3854_v7 = vadd.f32 %v1689_v62, %v3579_v8 }
 0x16d   : > { %v3149_v9 = vadd.f32 %v3070_v6, %v2942_v27  ;;  %v1573_v11 = vpop.f32.mrb[7].mxu0  ;;  %v1678_v21 = vadd.f32 %v3147_v3, %v3834_v44 }
 0x16e   : > { %v1676_v10 = vadd.f32 %v3148_v5, %v3834_v44  ;;  %v3150_v13 = vadd.f32 %v1573_v11, %v654_v28 }
 0x16f   : > { %1728 = vadd.xlane.f32.xlu1 %v3849_v12  ;;  %v1679_v15 = vadd.f32 %v3149_v9, %v3834_v44  ;;  %v1694_v17 = vmax.f32 %v1678_v21, 0.0 }
 0x170   : > { %v1692_v14 = vmax.f32 %v1676_v10, 0.0  ;;  %v1677_v16 = vadd.f32 %v3150_v13, %v3834_v44  ;;  %1724 = vadd.xlane.f32.xlu0 %v3854_v7 }
 0x171   : > { %v1695_v24 = vmax.f32 %v1679_v15, 0.0 }
 0x172   : > { %v1693_v22 = vmax.f32 %v1677_v16, 0.0  ;;  %v3073_v18 = vpop.f32.mrb[8].mxu0  ;;  %v3861_v19 = vadd.f32 %v1692_v14, %v3635_v25  ;;  %v3871_v25 = vadd.f32 %v1694_v17, %v3655_v31 }
 0x173   : > { %v3151_v20 = vadd.f32 %v3073_v18, %v2945_v29  ;;  %v1586_v23 = vpop.f32.mrb[9].mxu0 }
 0x174   : > { %v3152_v8 = vadd.f32 %v1586_v23, %v667_v30  ;;  %1730 = vadd.xlane.f32.xlu0 %v3861_v19  ;;  %v3074_v27 = vpop.f32.mrb[10].mxu0  ;;  %v3865_v28 = vadd.f32 %v1693_v22, %v3638_v26  ;;  %v3877_v26 = vadd.f32 %v1695_v24, %v3658_v32 }
 0x175   : > { %v3153_v41 = vadd.f32 %v3074_v27, %v2946_v33  ;;  %v1589_v45 = vpop.f32.mrb[11].mxu0  ;;  %v1682_v46 = vadd.f32 %v3151_v20, %v3834_v44 }
 0x176   : > { %v1680_v47 = vadd.f32 %v3152_v8, %v3834_v44  ;;  %v3154_v48 = vadd.f32 %v1589_v45, %v670_v34  ;;  %1732 = vadd.xlane.f32.xlu1 %v3865_v28 }
 0x177   : > { %v1683_v30 = vadd.f32 %v3153_v41, %v3834_v44  ;;  %v1698_v33 = vmax.f32 %v1682_v46, 0.0 }
 0x178   : > { %v1696_v29 = vmax.f32 %v1680_v47, 0.0  ;;  %v1681_v49 = vadd.f32 %v3154_v48, %v3834_v44  ;;  %1734 = vadd.xlane.f32.xlu0 %v3871_v25 }
 0x179   : > { %v1699_v53 = vmax.f32 %v1683_v30, 0.0 }
 0x17a   : > { %v1697_v50 = vmax.f32 %v1681_v49, 0.0  ;;  %1736 = vadd.xlane.f32.xlu1 %v3877_v26  ;;  %v3077_v34 = vpop.f32.mrb[12].mxu0  ;;  %v3881_v51 = vadd.f32 %v1696_v29, %v3669_v35 }
 0x17b   : > { %v3155_v31 = vadd.f32 %v3077_v34, %v3823_v37  ;;  %v1602_v52 = vpop.f32.mrb[13].mxu0  ;;  %v3895_v37 = vadd.f32 %v1698_v33, %v3692_v42 }
 0x17c   : > { %v3156_v54 = vadd.f32 %v1602_v52, %v3825_v38  ;;  %1738 = vadd.xlane.f32.xlu0 %v3881_v51  ;;  %v3078_v55 = vpop.f32.mrb[14].mxu0  ;;  %v3887_v32 = vadd.f32 %v1697_v50, %v3672_v36 }
 0x17d   : > { %v3157_v56 = vadd.f32 %v3078_v55, %v3827_v39  ;;  %v1605_v57 = vpop.f32.mrb[15].mxu0  ;;  %v1686_v59 = vadd.f32 %v3155_v31, %v3834_v44  ;;  %v3901_v39 = vadd.f32 %v1699_v53, %v3695_v43 }
 0x17e   : > { %v1684_v35 = vadd.f32 %v3156_v54, %v3834_v44  ;;  %v3158_v62 = vadd.f32 %v1605_v57, %v3829_v40  ;;  %1740 = vadd.xlane.f32.xlu1 %v3887_v32 }
 0x17f   : > { %v1687_v63 = vadd.f32 %v3157_v56, %v3834_v44  ;;  %v1702_v3 = vmax.f32 %v1686_v59, 0.0 }
 0x180   : > { %v1700_v38 = vmax.f32 %v1684_v35, 0.0  ;;  %v1685_v36 = vadd.f32 %v3158_v62, %v3834_v44  ;;  %1742 = vadd.xlane.f32.xlu0 %v3895_v37 }
 0x181   : > { %v1703_v5 = vmax.f32 %v1687_v63, 0.0  ;;  %v3913_v44 = vadd.f32 %v1702_v3, %v3772_v0  ;;  %v3290_v63 = vld [vmem:[%s4425_s6 + $0x10] sm:$0xff]  }
 0x182   : > { %v1701_v4 = vmax.f32 %v1685_v36, 0.0  ;;  %1744 = vadd.xlane.f32.xlu1 %v3901_v39  ;;  %v3905_v40 = vadd.f32 %v1700_v38, %v3762_v60  ;;  %v3288_v60 = vld [vmem:[%s4425_s6] sm:$0xff]  }
 0x183   : > { %v3917_v43 = vadd.f32 %v1703_v5, %v3774_v1  ;;  %3079 = vmatprep.subr.bf16.mxu1 %v3288_v60 }
 0x184   : > { %1746 = vadd.xlane.f32.xlu0 %v3905_v40  ;;  %v3909_v42 = vadd.f32 %v1701_v4, %v3758_v58  ;;  %3080 = vmatpush3.bf16.msra.mxu1 %v3288_v60 }
 0x186   : > { %1748 = vadd.xlane.f32.xlu1 %v3909_v42 }
 0x188   : > { %1750 = vadd.xlane.f32.xlu0 %v3913_v44 }
 0x18a   : > { %1752 = vadd.xlane.f32.xlu1 %v3917_v43 }
 0x1f8   : > { %v1727_v58 = vpop.xlane.xlu1 %1726 }
 0x1f9   : > { %v1723_v6 = vpop.xlane.xlu0 %1722  ;;  %v1757_v9 = vmul.f32 0.0078125, %v1727_v58 }
 0x1fa   : > { %v1755_v11 = vmul.f32 0.0078125, %v1723_v6 }
 0x1fb   : > { %v3927_v1 = vsub.f32 %v3841_v61, %v1757_v9 }
 0x1fc   : > { %v3924_v0 = vsub.f32 %v3844_v2, %v1755_v11  ;;  %v1729_v21 = vpop.xlane.xlu1 %1728 }
 0x1fd   : > { %v1725_v10 = vpop.xlane.xlu0 %1724  ;;  %v1758_v13 = vmul.f32 0.0078125, %v1729_v21  ;;  %v1789_v18 = vmul.f32 %v3927_v1, %v3927_v1 }
 0x1fe   : > { %v1756_v14 = vmul.f32 0.0078125, %v1725_v10  ;;  %v1787_v15 = vmul.f32 %v3924_v0, %v3924_v0  ;;  %v3294_v10 = vld [vmem:[%s4425_s6 + $0x30] sm:$0xff]  }
 0x1ff   : > { %v3935_v22 = vsub.f32 %v3849_v12, %v1758_v13  ;;  %v3295_v13 = vld [vmem:[%s4425_s6 + $0x38] sm:$0xff]  }
 0x200   : > { %v3932_v16 = vsub.f32 %v3854_v7, %v1756_v14  ;;  %1803 = vadd.xlane.f32.xlu0 %v1787_v15  ;;  %v4027_v14 = vld [vmem:[%s4427_s8] sm:$0xff]  }
 0x201   : > { %v1731_v17 = vpop.xlane.xlu0 %1730  ;;  %v1790_v41 = vmul.f32 %v3935_v22, %v3935_v22 }
 0x202   : > { %v1759_v2 = vmul.f32 0.0078125, %v1731_v17  ;;  %v1788_v61 = vmul.f32 %v3932_v16, %v3932_v16 }
 0x203   : > { %v1733_v20 = vpop.xlane.xlu1 %1732 }
 0x204   : > { %v3942_v23 = vsub.f32 %v3861_v19, %v1759_v2  ;;  %v1760_v24 = vmul.f32 0.0078125, %v1733_v20  ;;  %1807 = vadd.xlane.f32.xlu0 %v1789_v18  ;;  %1805 = vadd.xlane.f32.xlu1 %v1788_v61 }
 0x205   : > { %v1735_v7 = vpop.xlane.xlu0 %1734 }
 0x206   : > { %v3945_v8 = vsub.f32 %v3865_v28, %v1760_v24  ;;  %v1761_v12 = vmul.f32 0.0078125, %v1735_v7  ;;  %v1791_v27 = vmul.f32 %v3942_v23, %v3942_v23 }
 0x207   : > { %v1737_v45 = vpop.xlane.xlu1 %1736 }
 0x208   : > { %v3952_v46 = vsub.f32 %v3871_v25, %v1761_v12  ;;  %v1762_v19 = vmul.f32 0.0078125, %v1737_v45  ;;  %1811 = vadd.xlane.f32.xlu0 %v1791_v27  ;;  %1809 = vadd.xlane.f32.xlu1 %v1790_v41  ;;  %v1792_v30 = vmul.f32 %v3945_v8, %v3945_v8 }
 0x209   : > { %v1739_v47 = vpop.xlane.xlu0 %1738 }
 0x20a   : > { %v3955_v48 = vsub.f32 %v3877_v26, %v1762_v19  ;;  %v1763_v28 = vmul.f32 0.0078125, %v1739_v47  ;;  %v1793_v29 = vmul.f32 %v3952_v46, %v3952_v46 }
 0x20b   : > { %v1741_v49 = vpop.xlane.xlu1 %1740 }
 0x20c   : > { %v3962_v33 = vsub.f32 %v3881_v51, %v1763_v28  ;;  %v1764_v25 = vmul.f32 0.0078125, %v1741_v49  ;;  %1815 = vadd.xlane.f32.xlu0 %v1793_v29  ;;  %1813 = vadd.xlane.f32.xlu1 %v1792_v30  ;;  %v1794_v52 = vmul.f32 %v3955_v48, %v3955_v48  ;;  %v3289_v51 = vld [vmem:[%s4425_s6 + $0x8] sm:$0xff]  }
 0x20d   : > { %v1743_v50 = vpop.xlane.xlu0 %1742  ;;  %3081 = vmatprep.subr.bf16.mxu1 %v3289_v51 }
 0x20e   : > { %v3965_v34 = vsub.f32 %v3887_v32, %v1764_v25  ;;  %v1765_v26 = vmul.f32 0.0078125, %v1743_v50  ;;  %v1795_v31 = vmul.f32 %v3962_v33, %v3962_v33  ;;  %3082 = vmatpush3.bf16.msra.mxu1 %v3289_v51 }
 0x20f   : > { %v1745_v53 = vpop.xlane.xlu1 %1744  ;;  %3083 = vmatprep.subr.bf16.mxu1 %v3290_v63 }
 0x210   : > { %v3975_v54 = vsub.f32 %v3895_v37, %v1765_v26  ;;  %v1766_v55 = vmul.f32 0.0078125, %v1745_v53  ;;  %1819 = vadd.xlane.f32.xlu0 %v1795_v31  ;;  %1817 = vadd.xlane.f32.xlu1 %v1794_v52  ;;  %v1796_v35 = vmul.f32 %v3965_v34, %v3965_v34 }
 0x211   : > { %v1747_v32 = vpop.xlane.xlu0 %1746 }
 0x212   : > { %v3978_v56 = vsub.f32 %v3901_v39, %v1766_v55  ;;  %v1767_v57 = vmul.f32 0.0078125, %v1747_v32  ;;  %v1797_v59 = vmul.f32 %v3975_v54, %v3975_v54  ;;  %3084 = vmatpush3.bf16.msra.mxu1 %v3290_v63 }
 0x213   : > { %v1749_v62 = vpop.xlane.xlu1 %1748 }
 0x214   : > { %v3985_v37 = vsub.f32 %v3905_v40, %v1767_v57  ;;  %v1768_v38 = vmul.f32 0.0078125, %v1749_v62  ;;  %1823 = vadd.xlane.f32.xlu0 %v1797_v59  ;;  %1821 = vadd.xlane.f32.xlu1 %v1796_v35  ;;  %v1798_v5 = vmul.f32 %v3978_v56, %v3978_v56  ;;  %v4034_v59 = vld [vmem:[%s4423_s4] ss:$0 sm:$0xff] }
 0x215   : > { %v1751_v36 = vpop.xlane.xlu0 %1750 }
 0x216   : > { %v3991_v39 = vsub.f32 %v3909_v42, %v1768_v38  ;;  %v1769_v3 = vmul.f32 0.0078125, %v1751_v36  ;;  %v1799_v4 = vmul.f32 %v3985_v37, %v3985_v37  ;;  %v3291_v42 = vld [vmem:[%s4425_s6 + $0x18] sm:$0xff]  }
 0x217   : > { %v1753_v40 = vpop.xlane.xlu1 %1752  ;;  %3085 = vmatprep.subr.bf16.mxu1 %v3291_v42 }
 0x218   : > { %v3998_v60 = vsub.f32 %v3913_v44, %v1769_v3  ;;  %v1770_v58 = vmul.f32 0.0078125, %v1753_v40  ;;  %1827 = vadd.xlane.f32.xlu0 %v1799_v4  ;;  %1825 = vadd.xlane.f32.xlu1 %v1798_v5  ;;  %v1800_v11 = vmul.f32 %v3991_v39, %v3991_v39  ;;  %v3292_v44 = vld [vmem:[%s4425_s6 + $0x20] sm:$0xff]  }
 0x219   : > { %3086 = vmatpush3.bf16.msra.mxu1 %v3291_v42 }
 0x21a   : > { %v4004_v6 = vsub.f32 %v3917_v43, %v1770_v58  ;;  %v1801_v9 = vmul.f32 %v3998_v60, %v3998_v60  ;;  %3087 = vmatprep.subr.bf16.mxu1 %v3292_v44  ;;  %v3293_v43 = vld [vmem:[%s4425_s6 + $0x28] sm:$0xff]  }
 0x21c   : > { %1831 = vadd.xlane.f32.xlu0 %v1801_v9  ;;  %1829 = vadd.xlane.f32.xlu1 %v1800_v11  ;;  %v1802_v21 = vmul.f32 %v4004_v6, %v4004_v6  ;;  %v4042_v11 = vld [vmem:[%s4424_s5] ss:$0 sm:$0xff] }
 0x21d   : > { %3088 = vmatpush3.bf16.msra.mxu1 %v3292_v44 }
 0x21e   : > { %3089 = vmatprep.subr.bf16.mxu1 %v3293_v43 }
 0x220   : > { %1833 = vadd.xlane.f32.xlu1 %v1802_v21 }
 0x221   : > { %3090 = vmatpush3.bf16.msra.mxu1 %v3293_v43 }
 0x222   : > { %3091 = vmatprep.subr.bf16.mxu1 %v3294_v10 }
 0x225   : > { %3092 = vmatpush3.bf16.msra.mxu1 %v3294_v10 }
 0x226   : > { %3093 = vmatprep.subr.bf16.mxu1 %v3295_v13 }
 0x229   : > { %3094 = vmatpush3.bf16.msra.mxu1 %v3295_v13 }
 0x22a   : > { %3111 = vmatprep.subr.bf16.mxu1 %v4027_v14 }
 0x28d   : > { %v1804_v15 = vpop.xlane.xlu0 %1803 }
 0x28e   : > { %v1835_v17 = vmul.f32 0.0078125, %v1804_v15 }
 0x290   : > { %v1851_v2 = vadd.f32 1e-05, %v1835_v17 }
 0x291   : > { %v1808_v18 = vpop.xlane.xlu0 %1807  ;;  %v1806_v61 = vpop.xlane.xlu1 %1805 }
 0x292   : > { %3304 = vrsqrt.f32 %v1851_v2  ;;  %v1837_v20 = vmul.f32 0.0078125, %v1808_v18  ;;  %v1836_v24 = vmul.f32 0.0078125, %v1806_v61 }
 0x294   : > { %v1853_v7 = vadd.f32 1e-05, %v1837_v20  ;;  %v1852_v12 = vadd.f32 1e-05, %v1836_v24 }
 0x295   : > { %v1812_v27 = vpop.xlane.xlu0 %1811  ;;  %v1810_v41 = vpop.xlane.xlu1 %1809 }
 0x296   : > { %3306 = vrsqrt.f32 %v1853_v7  ;;  %v1839_v45 = vmul.f32 0.0078125, %v1812_v27  ;;  %v1838_v19 = vmul.f32 0.0078125, %v1810_v41 }
 0x297   : > { %3308 = vrsqrt.f32 %v1852_v12 }
 0x298   : > { %v1855_v47 = vadd.f32 1e-05, %v1839_v45  ;;  %v1854_v28 = vadd.f32 1e-05, %v1838_v19 }
 0x299   : > { %v1816_v29 = vpop.xlane.xlu0 %1815  ;;  %v1814_v30 = vpop.xlane.xlu1 %1813 }
 0x29a   : > { %3310 = vrsqrt.f32 %v1855_v47  ;;  %v1841_v49 = vmul.f32 0.0078125, %v1816_v29  ;;  %v1840_v25 = vmul.f32 0.0078125, %v1814_v30 }
 0x29b   : > { %3312 = vrsqrt.f32 %v1854_v28 }
 0x29c   : > { %v3305_v50 = vpop.eup %3304  ;;  %v1857_v26 = vadd.f32 1e-05, %v1841_v49  ;;  %v1856_v31 = vadd.f32 1e-05, %v1840_v25 }
 0x29d   : > { %v1820_v52 = vpop.xlane.xlu0 %1819  ;;  %v1818_v53 = vpop.xlane.xlu1 %1817  ;;  %v1883_v32 = vmul.f32 %v3305_v50, %v3924_v0 }
 0x29e   : > { %3314 = vrsqrt.f32 %v1857_v26  ;;  %v1843_v51 = vmul.f32 0.0078125, %v1820_v52  ;;  %v1842_v55 = vmul.f32 0.0078125, %v1818_v53 }
 0x29f   : > { %3316 = vrsqrt.f32 %v1856_v31  ;;  %v1905_v0 = vmul.f32 %v4034_v59, %v1883_v32 }
 0x2a0   : > { %v3307_v57 = vpop.eup %3306  ;;  %v1859_v35 = vadd.f32 1e-05, %v1843_v51  ;;  %v1858_v62 = vadd.f32 1e-05, %v1842_v55 }
 0x2a1   : > { %v3309_v38 = vpop.eup %3308  ;;  %v1885_v63 = vmul.f32 %v3307_v57, %v3927_v1  ;;  %v1824_v36 = vpop.xlane.xlu0 %1823  ;;  %v4048_v17 = vadd.f32 %v4042_v11, %v1905_v0 }
 0x2a2   : > { %v1822_v3 = vpop.xlane.xlu1 %1821  ;;  %3318 = vrsqrt.f32 %v1859_v35  ;;  %v1845_v4 = vmul.f32 0.0078125, %v1824_v36  ;;  %v1884_v40 = vmul.f32 %v3309_v38, %v3932_v16 }
 0x2a3   : > { %v1844_v5 = vmul.f32 0.0078125, %v1822_v3  ;;  %3320 = vrsqrt.f32 %v1858_v62  ;;  %v1907_v21 = vmul.f32 %v4034_v59, %v1885_v63 }
 0x2a4   : > { %v3311_v58 = vpop.eup %3310  ;;  %v1861_v42 = vadd.f32 1e-05, %v1845_v4  ;;  %v1906_v1 = vmul.f32 %v4034_v59, %v1884_v40 }
 0x2a5   : > { %v1860_v9 = vadd.f32 1e-05, %v1844_v5  ;;  %v3313_v44 = vpop.eup %3312  ;;  %v1828_v43 = vpop.xlane.xlu0 %1827  ;;  %v1887_v18 = vmul.f32 %v3311_v58, %v3942_v23  ;;  %v4058_v45 = vadd.f32 %v4042_v11, %v1907_v21 }
 0x2a6   : > { %v1826_v10 = vpop.xlane.xlu1 %1825  ;;  %v1886_v16 = vmul.f32 %v3313_v44, %v3935_v22  ;;  %3322 = vrsqrt.f32 %v1861_v42  ;;  %v1847_v13 = vmul.f32 0.0078125, %v1828_v43  ;;  %v4051_v2 = vadd.f32 %v4042_v11, %v1906_v1 }
 0x2a7   : > { %v1846_v15 = vmul.f32 0.0078125, %v1826_v10  ;;  %3324 = vrsqrt.f32 %v1860_v9  ;;  %v1909_v30 = vmul.f32 %v4034_v59, %v1887_v18  ;;  %v3299_v9 = vld [vmem:[%s4427_s8 + $0x18] sm:$0xff]  }
 0x2a8   : > { %v3315_v61 = vpop.eup %3314  ;;  %v1908_v20 = vmul.f32 %v4034_v59, %v1886_v16  ;;  %v1863_v24 = vadd.f32 1e-05, %v1847_v13  ;;  %v1943_v22 = vpack.c.bf16 %v4051_v2, %v4048_v17 }
 0x2a9   : > { %v1862_v7 = vadd.f32 1e-05, %v1846_v15  ;;  %v3317_v12 = vpop.eup %3316  ;;  %v1832_v27 = vpop.xlane.xlu0 %1831  ;;  %v1889_v19 = vmul.f32 %v3315_v61, %v3952_v46  ;;  %v3297_v46 = vld [vmem:[%s4427_s8 + $0x8] sm:$0xff]   ;;  %v4076_v57 = vadd.f32 %v4042_v11, %v1909_v30  ;;  %v3300_v15 = vld [vmem:[%s4427_s8 + $0x20] sm:$0xff]  }
 0x2aa   : > { %v1830_v41 = vpop.xlane.xlu1 %1829  ;;  %3326 = vrsqrt.f32 %v1863_v24  ;;  %v1849_v47 = vmul.f32 0.0078125, %v1832_v27  ;;  %v4062_v23 = vadd.f32 %v4042_v11, %v1908_v20  ;;  %3095 = vmatprep.mubr.bf16.mxu1 %v1943_v22  ;;  %v1888_v29 = vmul.f32 %v3317_v12, %v3945_v8 }
 0x2ab   : > { %v1848_v28 = vmul.f32 0.0078125, %v1830_v41  ;;  %3328 = vrsqrt.f32 %v1862_v7  ;;  %v1911_v51 = vmul.f32 %v4034_v59, %v1889_v19 }
 0x2ac   : > { %v3319_v49 = vpop.eup %3318  ;;  %v1865_v25 = vadd.f32 1e-05, %v1849_v47  ;;  %v1944_v26 = vpack.c.bf16 %v4062_v23, %v4058_v45  ;;  %v1910_v53 = vmul.f32 %v4034_v59, %v1888_v29 }
 0x2ad   : > { %v1864_v50 = vadd.f32 1e-05, %v1848_v28  ;;  %v3321_v31 = vpop.eup %3320  ;;  %v1891_v8 = vmul.f32 %v3319_v49, %v3962_v33  ;;  %v3298_v33 = vld [vmem:[%s4427_s8 + $0x10] sm:$0xff]   ;;  %v4089_v3 = vadd.f32 %v4042_v11, %v1911_v51  ;;  %v3303_v49 = vld [vmem:[%s4427_s8 + $0x38] sm:$0xff]  }
 0x2ae   : > { %v1834_v52 = vpop.xlane.xlu1 %1833  ;;  %3330 = vrsqrt.f32 %v1865_v25  ;;  %3096 = vmatmul.mubr.bf16.vlgmr.msra.gmra.mrb[16].mxu1 %v1944_v26  ;;  %v1890_v32 = vmul.f32 %v3321_v31, %v3955_v48  ;;  %v4079_v35 = vadd.f32 %v4042_v11, %v1910_v53 }
 0x2af   : > { %v1850_v55 = vmul.f32 0.0078125, %v1834_v52  ;;  %3332 = vrsqrt.f32 %v1864_v50  ;;  %3112 = vmatpush3.bf16.msra.mxu1 %v4027_v14  ;;  %v1913_v4 = vmul.f32 %v4034_v59, %v1891_v8 }
 0x2b0   : > { %v3323_v62 = vpop.eup %3322  ;;  %v1912_v63 = vmul.f32 %v4034_v59, %v1890_v32  ;;  %3113 = vmatprep.subr.bf16.mxu1 %v3297_v46  ;;  %v1945_v48 = vpack.c.bf16 %v4079_v35, %v4076_v57 }
 0x2b1   : > { %v1866_v38 = vadd.f32 1e-05, %v1850_v55  ;;  %v3325_v36 = vpop.eup %3324  ;;  %v1893_v40 = vmul.f32 %v3323_v62, %v3975_v54  ;;  %v4104_v44 = vadd.f32 %v4042_v11, %v1913_v4 }
 0x2b2   : > { %v4093_v14 = vadd.f32 %v4042_v11, %v1912_v63  ;;  %v1892_v5 = vmul.f32 %v3325_v36, %v3965_v34  ;;  %3099 = vmatprep.mubr.bf16.mxu1 %v1945_v48 }
 0x2b3   : > { %3334 = vrsqrt.f32 %v1866_v38  ;;  %3114 = vmatpush3.bf16.msra.mxu1 %v3297_v46  ;;  %v1915_v21 = vmul.f32 %v4034_v59, %v1893_v40 }
 0x2b4   : > { %v3327_v0 = vpop.eup %3326  ;;  %v1946_v58 = vpack.c.bf16 %v4093_v14, %v4089_v3  ;;  %v1914_v42 = vmul.f32 %v4034_v59, %v1892_v5  ;;  %3115 = vmatprep.subr.bf16.mxu1 %v3298_v33 }
 0x2b5   : > { %v3329_v1 = vpop.eup %3328  ;;  %v1895_v43 = vmul.f32 %v3327_v0, %v3985_v37 }
 0x2b6   : > { %3100 = vmatmul.mubr.bf16.gmra.mrb[20].mxu1 %v1946_v58  ;;  %v4107_v34 = vadd.f32 %v4042_v11, %v1914_v42  ;;  %v1894_v54 = vmul.f32 %v3329_v1, %v3978_v56  ;;  %v4120_v56 = vadd.f32 %v4042_v11, %v1915_v21 }
 0x2b7   : > { %3116 = vmatpush3.bf16.msra.mxu1 %v3298_v33  ;;  %v1917_v24 = vmul.f32 %v4034_v59, %v1895_v43 }
 0x2b8   : > { %v3331_v10 = vpop.eup %3330  ;;  %v1947_v16 = vpack.c.bf16 %v4107_v34, %v4104_v44  ;;  %v1916_v13 = vmul.f32 %v4034_v59, %v1894_v54  ;;  %3117 = vmatprep.subr.bf16.mxu1 %v3299_v9 }
 0x2b9   : > { %v3333_v18 = vpop.eup %3332  ;;  %v1897_v61 = vmul.f32 %v3331_v10, %v3998_v60  ;;  %v3301_v60 = vld [vmem:[%s4427_s8 + $0x28] sm:$0xff]  }
 0x2ba   : > { %3103 = vmatprep.mubr.bf16.mxu1 %v1947_v16  ;;  %v4123_v37 = vadd.f32 %v4042_v11, %v1916_v13  ;;  %v1896_v20 = vmul.f32 %v3333_v18, %v3991_v39  ;;  %v4136_v39 = vadd.f32 %v4042_v11, %v1917_v24 }
 0x2bb   : > { %3118 = vmatpush3.bf16.msra.mxu1 %v3299_v9  ;;  %v1919_v41 = vmul.f32 %v4034_v59, %v1897_v61 }
 0x2bc   : > { %v1948_v12 = vpack.c.bf16 %v4123_v37, %v4120_v56  ;;  %v1918_v27 = vmul.f32 %v4034_v59, %v1896_v20  ;;  %3119 = vmatprep.subr.bf16.mxu1 %v3300_v15 }
 0x2bd   : > { %v3335_v7 = vpop.eup %3334  ;;  %v4145_v29 = vadd.f32 %v4042_v11, %v1919_v41 }
 0x2be   : > { %v1898_v22 = vmul.f32 %v3335_v7, %v4004_v6  ;;  %3104 = vmatmul.mubr.bf16.gmra.mrb[24].mxu1 %v1948_v12  ;;  %v4139_v19 = vadd.f32 %v4042_v11, %v1918_v27 }
 0x2bf   : > { %3120 = vmatpush3.bf16.msra.mxu1 %v3300_v15 }
 0x2c0   : > { %v1920_v47 = vmul.f32 %v4034_v59, %v1898_v22  ;;  %v1949_v28 = vpack.c.bf16 %v4139_v19, %v4136_v39  ;;  %3121 = vmatprep.subr.bf16.mxu1 %v3301_v60  ;;  %v3302_v59 = vld [vmem:[%s4427_s8 + $0x30] sm:$0xff]  }
 0x2c2   : > { %v4148_v6 = vadd.f32 %v4042_v11, %v1920_v47  ;;  %3107 = vmatprep.mubr.bf16.mxu1 %v1949_v28  ;;  %v2772_v11 = vld [vmem:[%s4426_s7] ss:$0 sm:$0xff] }
 0x2c3   : > { %3122 = vmatpush3.bf16.msra.mxu1 %v3301_v60 }
 0x2c4   : > { %v1950_v30 = vpack.c.bf16 %v4148_v6, %v4145_v29  ;;  %3123 = vmatprep.subr.bf16.mxu1 %v3302_v59 }
 0x2c6   : > { %3108 = vmatmul.mubr.bf16.gmra.mrb[28].mxu1 %v1950_v30 }
 0x2c7   : > { %3124 = vmatpush3.bf16.msra.mxu1 %v3302_v59 }
 0x2c8   : > { %3125 = vmatprep.subr.bf16.mxu1 %v3303_v49 }
 0x2cb   : > { %3126 = vmatpush3.bf16.msra.mxu1 %v3303_v49 }
 0x381   : > { %v3097_v25 = vpop.f32.mrb[16].mxu1 }
 0x382   : > { %v2065_v50 = vadd.f32 %v3097_v25, %v2772_v11  ;;  %v2056_v26 = vpop.f32.mrb[17].mxu1 }
 0x383   : > { %v2057_v46 = vadd.f32 %v2772_v11, %v2056_v26  ;;  %v3098_v31 = vpop.f32.mrb[18].mxu1 }
 0x384   : > { %v2068_v52 = vadd.f32 %v3098_v31, %v2772_v11  ;;  %v2059_v53 = vpop.f32.mrb[19].mxu1  ;;  %v2121_v8 = vmax.f32 %v2065_v50, 0.0 }
 0x385   : > { %v2060_v51 = vadd.f32 %v2772_v11, %v2059_v53  ;;  %v2119_v32 = vmax.f32 %v2057_v46, 0.0 }
 0x386   : > { %v2122_v55 = vmax.f32 %v2068_v52, 0.0 }
 0x387   : > { %v2120_v62 = vmax.f32 %v2060_v51, 0.0 }
 0x388   : > { %v2136_v38 = vpack.c.bf16 %v2122_v55, %v2121_v8  ;;  %v2781_v55 = vld [vmem:[%s4428_s9] ss:$0 sm:$0xff] }
 0x389   : > { %v2135_v63 = vpack.c.bf16 %v2120_v62, %v2119_v32  ;;  %v3101_v33 = vpop.f32.mrb[20].mxu1 }
 0x38a   : > { %v2081_v36 = vadd.f32 %v3101_v33, %v2772_v11  ;;  %v2072_v48 = vpop.f32.mrb[21].mxu1 }
 0x38b   : > { %v2073_v4 = vadd.f32 %v2772_v11, %v2072_v48  ;;  %v3102_v5 = vpop.f32.mrb[22].mxu1  ;;  %3127 = vmatprep.mubr.bf16.mxu1 %v2135_v63 }
 0x38c   : > { %v2084_v40 = vadd.f32 %v3102_v5, %v2772_v11  ;;  %v2075_v0 = vpop.f32.mrb[23].mxu1  ;;  %3128 = vmatmul.mubr.bf16.vlgmr.msra.gmra.mrb[32].mxu1 %v2136_v38  ;;  %v2125_v42 = vmax.f32 %v2081_v36, 0.0 }
 0x38d   : > { %v2076_v58 = vadd.f32 %v2772_v11, %v2075_v0  ;;  %v2123_v1 = vmax.f32 %v2073_v4, 0.0 }
 0x38e   : > { %v2126_v9 = vmax.f32 %v2084_v40, 0.0 }
 0x38f   : > { %v2124_v54 = vmax.f32 %v2076_v58, 0.0 }
 0x390   : > { %v2138_v21 = vpack.c.bf16 %v2126_v9, %v2125_v42 }
 0x391   : > { %v2137_v43 = vpack.c.bf16 %v2124_v54, %v2123_v1  ;;  %v3105_v10 = vpop.f32.mrb[24].mxu1 }
 0x392   : > { %v2097_v16 = vadd.f32 %v3105_v10, %v2772_v11  ;;  %v2088_v13 = vpop.f32.mrb[25].mxu1 }
 0x393   : > { %v2089_v15 = vadd.f32 %v2772_v11, %v2088_v13  ;;  %v3106_v18 = vpop.f32.mrb[26].mxu1  ;;  %3131 = vmatprep.mubr.bf16.mxu1 %v2137_v43 }
 0x394   : > { %v2100_v61 = vadd.f32 %v3106_v18, %v2772_v11  ;;  %v2091_v20 = vpop.f32.mrb[27].mxu1  ;;  %3132 = vmatmul.mubr.bf16.gmra.mrb[36].mxu1 %v2138_v21  ;;  %v2129_v7 = vmax.f32 %v2097_v16, 0.0 }
 0x395   : > { %v2092_v24 = vadd.f32 %v2772_v11, %v2091_v20  ;;  %v2127_v27 = vmax.f32 %v2089_v15, 0.0 }
 0x396   : > { %v2130_v12 = vmax.f32 %v2100_v61, 0.0 }
 0x397   : > { %v2128_v60 = vmax.f32 %v2092_v24, 0.0 }
 0x398   : > { %v2140_v22 = vpack.c.bf16 %v2130_v12, %v2129_v7 }
 0x399   : > { %v2139_v41 = vpack.c.bf16 %v2128_v60, %v2127_v27  ;;  %v3109_v47 = vpop.f32.mrb[28].mxu1 }
 0x39a   : > { %v2113_v28 = vadd.f32 %v3109_v47, %v2772_v11  ;;  %v2104_v30 = vpop.f32.mrb[29].mxu1 }
 0x39b   : > { %v2105_v59 = vadd.f32 %v2772_v11, %v2104_v30  ;;  %v3110_v49 = vpop.f32.mrb[30].mxu1  ;;  %3135 = vmatprep.mubr.bf16.mxu1 %v2139_v41 }
 0x39c   : > { %v2116_v25 = vadd.f32 %v3110_v49, %v2772_v11  ;;  %v2107_v50 = vpop.f32.mrb[31].mxu1  ;;  %3136 = vmatmul.mubr.bf16.gmra.mrb[40].mxu1 %v2140_v22  ;;  %v2133_v46 = vmax.f32 %v2113_v28, 0.0 }
 0x39d   : > { %v2108_v26 = vadd.f32 %v2772_v11, %v2107_v50  ;;  %v2131_v52 = vmax.f32 %v2105_v59, 0.0 }
 0x39e   : > { %v2134_v31 = vmax.f32 %v2116_v25, 0.0 }
 0x39f   : > { %v2132_v53 = vmax.f32 %v2108_v26, 0.0 }
 0x3a0   : > { %v2142_v51 = vpack.c.bf16 %v2134_v31, %v2133_v46 }
 0x3a1   : > { %v2141_v8 = vpack.c.bf16 %v2132_v53, %v2131_v52 }
 0x3a3   : > { %3139 = vmatprep.mubr.bf16.mxu1 %v2141_v8 }
 0x3a4   : > { %3140 = vmatmul.mubr.bf16.gmra.mrb[44].mxu1 %v2142_v51 }
 0x45f   : > { %v3129_v32 = vpop.f32.mrb[32].mxu1 }
 0x460   : > { %v2257_v62 = vadd.f32 %v3129_v32, %v2781_v55  ;;  %v2248_v38 = vpop.f32.mrb[33].mxu1 }
 0x461   : > { %v3130_v63 = vpop.f32.mrb[34].mxu1  ;;  %v2249_v33 = vadd.f32 %v2781_v55, %v2248_v38 }
 0x462   : > { %v2260_v36 = vadd.f32 %v3130_v63, %v2781_v55  ;;  %v2251_v48 = vpop.f32.mrb[35].mxu1  ;;  %v2313_v11 = vadd.f32 %v2257_v62, %v4058_v45 }
 0x463   : > { %v2252_v4 = vadd.f32 %v2781_v55, %v2251_v48  ;;  %v2311_v40 = vadd.f32 %v2249_v33, %v4048_v17 }
 0x464   : > { %2333 = vadd.xlane.f32.xlu0 %v2313_v11  ;;  %v2314_v5 = vadd.f32 %v2260_v36, %v4062_v23 }
 0x465   : > { %v2312_v9 = vadd.f32 %v2252_v4, %v4051_v2 }
 0x466   : > { %2335 = vadd.xlane.f32.xlu1 %v2314_v5 }
 0x467   : > { %v3133_v0 = vpop.f32.mrb[36].mxu1 }
 0x468   : > { %v2273_v58 = vadd.f32 %v3133_v0, %v2781_v55  ;;  %v2264_v42 = vpop.f32.mrb[37].mxu1  ;;  %2329 = vadd.xlane.f32.xlu0 %v2311_v40 }
 0x469   : > { %v3134_v1 = vpop.f32.mrb[38].mxu1  ;;  %v2265_v54 = vadd.f32 %v2781_v55, %v2264_v42 }
 0x46a   : > { %v2276_v21 = vadd.f32 %v3134_v1, %v2781_v55  ;;  %v2267_v43 = vpop.f32.mrb[39].mxu1  ;;  %2331 = vadd.xlane.f32.xlu1 %v2312_v9  ;;  %v2317_v45 = vadd.f32 %v2273_v58, %v4089_v3 }
 0x46b   : > { %v2268_v10 = vadd.f32 %v2781_v55, %v2267_v43  ;;  %v4174_v17 = vadd.f32 %v2265_v54, %v4076_v57 }
 0x46c   : > { %2341 = vadd.xlane.f32.xlu0 %v2317_v45  ;;  %v4170_v23 = vadd.f32 %v2276_v21, %v4093_v14 }
 0x46d   : > { %v4178_v15 = vadd.f32 %v2268_v10, %v4079_v35 }
 0x46e   : > { %2343 = vadd.xlane.f32.xlu1 %v4170_v23 }
 0x46f   : > { %v3137_v16 = vpop.f32.mrb[40].mxu1 }
 0x470   : > { %v2289_v13 = vadd.f32 %v3137_v16, %v2781_v55  ;;  %v2280_v2 = vpop.f32.mrb[41].mxu1  ;;  %2337 = vadd.xlane.f32.xlu0 %v4174_v17 }
 0x471   : > { %v3138_v18 = vpop.f32.mrb[42].mxu1  ;;  %v2281_v3 = vadd.f32 %v2781_v55, %v2280_v2 }
 0x472   : > { %v2292_v61 = vadd.f32 %v3138_v18, %v2781_v55  ;;  %v2283_v20 = vpop.f32.mrb[43].mxu1  ;;  %2339 = vadd.xlane.f32.xlu1 %v4178_v15  ;;  %v4182_v14 = vadd.f32 %v2289_v13, %v4120_v56 }
 0x473   : > { %v2284_v24 = vadd.f32 %v2781_v55, %v2283_v20  ;;  %v4190_v35 = vadd.f32 %v2281_v3, %v4104_v44 }
 0x474   : > { %2349 = vadd.xlane.f32.xlu0 %v4182_v14  ;;  %v4186_v57 = vadd.f32 %v2292_v61, %v4123_v37 }
 0x475   : > { %v4194_v27 = vadd.f32 %v2284_v24, %v4107_v34 }
 0x476   : > { %2351 = vadd.xlane.f32.xlu1 %v4186_v57 }
 0x477   : > { %v3141_v7 = vpop.f32.mrb[44].mxu1 }
 0x478   : > { %2345 = vadd.xlane.f32.xlu0 %v4190_v35  ;;  %v2296_v12 = vpop.f32.mrb[45].mxu1  ;;  %v2305_v41 = vadd.f32 %v3141_v7, %v2781_v55 }
 0x479   : > { %v2297_v56 = vadd.f32 %v2781_v55, %v2296_v12  ;;  %v3142_v60 = vpop.f32.mrb[46].mxu1 }
 0x47a   : > { %2347 = vadd.xlane.f32.xlu1 %v4194_v27  ;;  %v2299_v22 = vpop.f32.mrb[47].mxu1  ;;  %v2308_v28 = vadd.f32 %v3142_v60, %v2781_v55  ;;  %v4206_v34 = vadd.f32 %v2305_v41, %v4145_v29 }
 0x47b   : > { %v2300_v37 = vadd.f32 %v2781_v55, %v2299_v22  ;;  %v4198_v47 = vadd.f32 %v2297_v56, %v4136_v39 }
 0x47c   : > { %v4210_v30 = vadd.f32 %v2308_v28, %v4148_v6 }
 0x47d   : > { %2353 = vadd.xlane.f32.xlu0 %v4198_v47  ;;  %v4202_v44 = vadd.f32 %v2300_v37, %v4139_v19 }
 0x47f   : > { %2355 = vadd.xlane.f32.xlu1 %v4202_v44 }
 0x481   : > { %2357 = vadd.xlane.f32.xlu0 %v4206_v34 }
 0x483   : > { %2359 = vadd.xlane.f32.xlu1 %v4210_v30 }
 0x4f1   : > { %v2334_v39 = vpop.xlane.xlu0 %2333 }
 0x4f2   : > { %v2363_v59 = vmul.f32 0.0078125, %v2334_v39 }
 0x4f3   : > { %v2336_v49 = vpop.xlane.xlu1 %2335 }
 0x4f4   : > { %v4213_v25 = vsub.f32 %v2313_v11, %v2363_v59  ;;  %v2364_v50 = vmul.f32 0.0078125, %v2336_v49 }
 0x4f5   : > { %v2330_v19 = vpop.xlane.xlu0 %2329 }
 0x4f6   : > { %v4215_v26 = vsub.f32 %v2314_v5, %v2364_v50  ;;  %v2361_v46 = vmul.f32 0.0078125, %v2330_v19  ;;  %v2395_v29 = vmul.f32 %v4213_v25, %v4213_v25 }
 0x4f7   : > { %v2332_v31 = vpop.xlane.xlu1 %2331 }
 0x4f8   : > { %v4219_v52 = vsub.f32 %v2311_v40, %v2361_v46  ;;  %v2362_v6 = vmul.f32 0.0078125, %v2332_v31  ;;  %2413 = vadd.xlane.f32.xlu0 %v2395_v29  ;;  %v2396_v53 = vmul.f32 %v4215_v26, %v4215_v26 }
 0x4f9   : > { %v2342_v51 = vpop.xlane.xlu0 %2341 }
 0x4fa   : > { %v4223_v8 = vsub.f32 %v2312_v9, %v2362_v6  ;;  %v2367_v55 = vmul.f32 0.0078125, %v2342_v51  ;;  %2415 = vadd.xlane.f32.xlu1 %v2396_v53  ;;  %v2393_v32 = vmul.f32 %v4219_v52, %v4219_v52 }
 0x4fb   : > { %v2344_v62 = vpop.xlane.xlu1 %2343 }
 0x4fc   : > { %v4227_v38 = vsub.f32 %v2317_v45, %v2367_v55  ;;  %v2368_v63 = vmul.f32 0.0078125, %v2344_v62  ;;  %2409 = vadd.xlane.f32.xlu0 %v2393_v32  ;;  %v2394_v33 = vmul.f32 %v4223_v8, %v4223_v8 }
 0x4fd   : > { %v2338_v36 = vpop.xlane.xlu0 %2337 }
 0x4fe   : > { %v4232_v48 = vsub.f32 %v4170_v23, %v2368_v63  ;;  %v2365_v11 = vmul.f32 0.0078125, %v2338_v36  ;;  %2411 = vadd.xlane.f32.xlu1 %v2394_v33  ;;  %v2399_v4 = vmul.f32 %v4227_v38, %v4227_v38 }
 0x4ff   : > { %v2340_v5 = vpop.xlane.xlu1 %2339 }
 0x500   : > { %v4237_v40 = vsub.f32 %v4174_v17, %v2365_v11  ;;  %v2366_v0 = vmul.f32 0.0078125, %v2340_v5  ;;  %2421 = vadd.xlane.f32.xlu0 %v2399_v4  ;;  %v2400_v58 = vmul.f32 %v4232_v48, %v4232_v48 }
 0x501   : > { %v2350_v42 = vpop.xlane.xlu0 %2349 }
 0x502   : > { %v4242_v9 = vsub.f32 %v4178_v15, %v2366_v0  ;;  %v2371_v1 = vmul.f32 0.0078125, %v2350_v42  ;;  %2423 = vadd.xlane.f32.xlu1 %v2400_v58  ;;  %v2397_v54 = vmul.f32 %v4237_v40, %v4237_v40  ;;  %v4292_v42 = vld [vmem:[%s4429_s10] ss:$0 sm:$0xff] }
 0x503   : > { %v2352_v21 = vpop.xlane.xlu1 %2351 }
 0x504   : > { %v4247_v43 = vsub.f32 %v4182_v14, %v2371_v1  ;;  %v2372_v45 = vmul.f32 0.0078125, %v2352_v21  ;;  %2417 = vadd.xlane.f32.xlu0 %v2397_v54  ;;  %v2398_v10 = vmul.f32 %v4242_v9, %v4242_v9 }
 0x505   : > { %v2346_v23 = vpop.xlane.xlu0 %2345 }
 0x506   : > { %v4252_v17 = vsub.f32 %v4186_v57, %v2372_v45  ;;  %v2369_v16 = vmul.f32 0.0078125, %v2346_v23  ;;  %2419 = vadd.xlane.f32.xlu1 %v2398_v10  ;;  %v2403_v13 = vmul.f32 %v4247_v43, %v4247_v43  ;;  %v4300_v23 = vld [vmem:[%s4430_s11] ss:$0 sm:$0xff] }
 0x507   : > { %v2348_v2 = vpop.xlane.xlu1 %2347 }
 0x508   : > { %v4257_v15 = vsub.f32 %v4190_v35, %v2369_v16  ;;  %v2370_v18 = vmul.f32 0.0078125, %v2348_v2  ;;  %2429 = vadd.xlane.f32.xlu0 %v2403_v13  ;;  %v2404_v3 = vmul.f32 %v4252_v17, %v4252_v17 }
 0x50a   : > { %v4262_v61 = vsub.f32 %v4194_v27, %v2370_v18  ;;  %2431 = vadd.xlane.f32.xlu1 %v2404_v3  ;;  %v2354_v20 = vpop.xlane.xlu0 %2353  ;;  %v2401_v14 = vmul.f32 %v4257_v15, %v4257_v15 }
 0x50b   : > { %v2373_v24 = vmul.f32 0.0078125, %v2354_v20 }
 0x50c   : > { %v2356_v57 = vpop.xlane.xlu1 %2355  ;;  %2425 = vadd.xlane.f32.xlu0 %v2401_v14  ;;  %v2402_v35 = vmul.f32 %v4262_v61, %v4262_v61 }
 0x50d   : > { %v4269_v7 = vsub.f32 %v4198_v47, %v2373_v24  ;;  %v2374_v12 = vmul.f32 0.0078125, %v2356_v57 }
 0x50e   : > { %2427 = vadd.xlane.f32.xlu1 %v2402_v35  ;;  %v2358_v56 = vpop.xlane.xlu0 %2357 }
 0x50f   : > { %v4272_v27 = vsub.f32 %v4202_v44, %v2374_v12  ;;  %v2375_v60 = vmul.f32 0.0078125, %v2358_v56  ;;  %v2405_v22 = vmul.f32 %v4269_v7, %v4269_v7 }
 0x510   : > { %v2360_v41 = vpop.xlane.xlu1 %2359 }
 0x511   : > { %v4277_v37 = vsub.f32 %v4206_v34, %v2375_v60  ;;  %v2376_v28 = vmul.f32 0.0078125, %v2360_v41  ;;  %2433 = vadd.xlane.f32.xlu0 %v2405_v22  ;;  %v2406_v47 = vmul.f32 %v4272_v27, %v4272_v27 }
 0x513   : > { %v4282_v39 = vsub.f32 %v4210_v30, %v2376_v28  ;;  %2435 = vadd.xlane.f32.xlu1 %v2406_v47  ;;  %v2407_v44 = vmul.f32 %v4277_v37, %v4277_v37 }
 0x515   : > { %2437 = vadd.xlane.f32.xlu0 %v2407_v44  ;;  %v2408_v59 = vmul.f32 %v4282_v39, %v4282_v39 }
 0x517   : > { %2439 = vadd.xlane.f32.xlu1 %v2408_v59 }
 0x585   : > { %v2414_v49 = vpop.xlane.xlu0 %2413 }
 0x586   : > { %v2443_v34 = vmul.f32 0.0078125, %v2414_v49 }
 0x587   : > { %v2416_v50 = vpop.xlane.xlu1 %2415 }
 0x588   : > { %v2459_v19 = vadd.f32 1e-05, %v2443_v34  ;;  %v2444_v46 = vmul.f32 0.0078125, %v2416_v50 }
 0x589   : > { %v2410_v29 = vpop.xlane.xlu0 %2409 }
 0x58a   : > { %3336 = vrsqrt.f32 %v2459_v19  ;;  %v2460_v31 = vadd.f32 1e-05, %v2444_v46  ;;  %v2441_v30 = vmul.f32 0.0078125, %v2410_v29 }
 0x58b   : > { %v2412_v6 = vpop.xlane.xlu1 %2411 }
 0x58c   : > { %3338 = vrsqrt.f32 %v2460_v31  ;;  %v2457_v53 = vadd.f32 1e-05, %v2441_v30  ;;  %v2442_v51 = vmul.f32 0.0078125, %v2412_v6 }
 0x58d   : > { %v2422_v55 = vpop.xlane.xlu0 %2421 }
 0x58e   : > { %3340 = vrsqrt.f32 %v2457_v53  ;;  %v2458_v32 = vadd.f32 1e-05, %v2442_v51  ;;  %v2447_v62 = vmul.f32 0.0078125, %v2422_v55 }
 0x58f   : > { %v2424_v63 = vpop.xlane.xlu1 %2423 }
 0x590   : > { %3342 = vrsqrt.f32 %v2458_v32  ;;  %v2463_v33 = vadd.f32 1e-05, %v2447_v62  ;;  %v2448_v36 = vmul.f32 0.0078125, %v2424_v63 }
 0x591   : > { %v2418_v11 = vpop.xlane.xlu0 %2417 }
 0x592   : > { %3344 = vrsqrt.f32 %v2463_v33  ;;  %v2464_v4 = vadd.f32 1e-05, %v2448_v36  ;;  %v2445_v5 = vmul.f32 0.0078125, %v2418_v11 }
 0x593   : > { %v2420_v0 = vpop.xlane.xlu1 %2419 }
 0x594   : > { %v3337_v58 = vpop.eup %3336  ;;  %3346 = vrsqrt.f32 %v2464_v4  ;;  %v2461_v1 = vadd.f32 1e-05, %v2445_v5  ;;  %v2446_v54 = vmul.f32 0.0078125, %v2420_v0 }
 0x595   : > { %v2491_v21 = vmul.f32 %v3337_v58, %v4213_v25  ;;  %v2430_v45 = vpop.xlane.xlu0 %2429 }
 0x596   : > { %v3339_v10 = vpop.eup %3338  ;;  %3348 = vrsqrt.f32 %v2461_v1  ;;  %v2462_v16 = vadd.f32 1e-05, %v2446_v54  ;;  %v2451_v13 = vmul.f32 0.0078125, %v2430_v45 }
 0x597   : > { %v2513_v2 = vmul.f32 %v4292_v42, %v2491_v21  ;;  %v2492_v18 = vmul.f32 %v3339_v10, %v4215_v26  ;;  %v2432_v3 = vpop.xlane.xlu1 %2431 }
 0x598   : > { %v3341_v20 = vpop.eup %3340  ;;  %3350 = vrsqrt.f32 %v2462_v16  ;;  %v2467_v14 = vadd.f32 1e-05, %v2451_v13  ;;  %v2452_v24 = vmul.f32 0.0078125, %v2432_v3 }
 0x599   : > { %v2535_v25 = vadd.f32 %v4300_v23, %v2513_v2  ;;  %v2514_v57 = vmul.f32 %v4292_v42, %v2492_v18  ;;  %v2489_v35 = vmul.f32 %v3341_v20, %v4219_v52  ;;  %v2426_v12 = vpop.xlane.xlu0 %2425 }
 0x59a   : > { %v3343_v56 = vpop.eup %3342  ;;  %3352 = vrsqrt.f32 %v2467_v14  ;;  %v2468_v60 = vadd.f32 1e-05, %v2452_v24  ;;  %v2449_v22 = vmul.f32 0.0078125, %v2426_v12 }
 0x59b   : > { %2551 = vst [vmem:[%s4307_s26 + $0x10] sm:$0xff] %v2535_v25  ;;  %v2536_v26 = vadd.f32 %v4300_v23, %v2514_v57  ;;  %v2511_v41 = vmul.f32 %v4292_v42, %v2489_v35  ;;  %v2490_v28 = vmul.f32 %v3343_v56, %v4223_v8  ;;  %v2428_v47 = vpop.xlane.xlu1 %2427 }
 0x59c   : > { %v3345_v44 = vpop.eup %3344  ;;  %3354 = vrsqrt.f32 %v2468_v60  ;;  %v2465_v52 = vadd.f32 1e-05, %v2449_v22  ;;  %v2450_v59 = vmul.f32 0.0078125, %v2428_v47 }
 0x59d   : > { %2552 = vst [vmem:[%s4307_s26 + $0x18] sm:$0xff] %v2536_v26  ;;  %v2533_v49 = vadd.f32 %v4300_v23, %v2511_v41  ;;  %v2512_v34 = vmul.f32 %v4292_v42, %v2490_v28  ;;  %v2495_v50 = vmul.f32 %v3345_v44, %v4227_v38 }
 0x59e   : > { %v3347_v19 = vpop.eup %3346  ;;  %3356 = vrsqrt.f32 %v2465_v52  ;;  %v2466_v46 = vadd.f32 1e-05, %v2450_v59  ;;  %v2434_v29 = vpop.xlane.xlu0 %2433 }
 0x59f   : > { %2549 = vst [vmem:[%s4307_s26] sm:$0xff] %v2533_v49  ;;  %v2534_v8 = vadd.f32 %v4300_v23, %v2512_v34  ;;  %v2517_v31 = vmul.f32 %v4292_v42, %v2495_v50  ;;  %v2496_v30 = vmul.f32 %v3347_v19, %v4232_v48  ;;  %v2453_v6 = vmul.f32 0.0078125, %v2434_v29 }
 0x5a0   : > { %v3349_v53 = vpop.eup %3348  ;;  %3358 = vrsqrt.f32 %v2466_v46  ;;  %v2436_v51 = vpop.xlane.xlu1 %2435 }
 0x5a1   : > { %2550 = vst [vmem:[%s4307_s26 + $0x8] sm:$0xff] %v2534_v8  ;;  %v2539_v55 = vadd.f32 %v4300_v23, %v2517_v31  ;;  %v2518_v38 = vmul.f32 %v4292_v42, %v2496_v30  ;;  %v2493_v32 = vmul.f32 %v3349_v53, %v4237_v40  ;;  %v2469_v62 = vadd.f32 1e-05, %v2453_v6 }
 0x5a2   : > { %v3351_v63 = vpop.eup %3350  ;;  %v2454_v33 = vmul.f32 0.0078125, %v2436_v51  ;;  %v2438_v36 = vpop.xlane.xlu0 %2437 }
 0x5a3   : > { %2555 = vst [vmem:[%s4307_s26 + $0x30] sm:$0xff] %v2539_v55  ;;  %v2540_v11 = vadd.f32 %v4300_v23, %v2518_v38  ;;  %v2515_v48 = vmul.f32 %v4292_v42, %v2493_v32  ;;  %v2494_v4 = vmul.f32 %v3351_v63, %v4242_v9  ;;  %3360 = vrsqrt.f32 %v2469_v62 }
 0x5a4   : > { %v3353_v5 = vpop.eup %3352  ;;  %v2470_v0 = vadd.f32 1e-05, %v2454_v33  ;;  %v2455_v58 = vmul.f32 0.0078125, %v2438_v36  ;;  %v2440_v1 = vpop.xlane.xlu1 %2439 }
 0x5a5   : > { %2556 = vst [vmem:[%s4307_s26 + $0x38] sm:$0xff] %v2540_v11  ;;  %v2537_v40 = vadd.f32 %v4300_v23, %v2515_v48  ;;  %v2516_v54 = vmul.f32 %v4292_v42, %v2494_v4  ;;  %v2499_v21 = vmul.f32 %v3353_v5, %v4247_v43  ;;  %v2456_v45 = vmul.f32 0.0078125, %v2440_v1 }
 0x5a6   : > { %v3355_v10 = vpop.eup %3354  ;;  %3362 = vrsqrt.f32 %v2470_v0  ;;  %v2471_v16 = vadd.f32 1e-05, %v2455_v58 }
 0x5a7   : > { %2553 = vst [vmem:[%s4307_s26 + $0x20] sm:$0xff] %v2537_v40  ;;  %v2538_v9 = vadd.f32 %v4300_v23, %v2516_v54  ;;  %v2521_v13 = vmul.f32 %v4292_v42, %v2499_v21  ;;  %v2500_v2 = vmul.f32 %v3355_v10, %v4252_v17  ;;  %v2472_v18 = vadd.f32 1e-05, %v2456_v45 }
 0x5a8   : > { %v3357_v3 = vpop.eup %3356  ;;  %3364 = vrsqrt.f32 %v2471_v16 }
 0x5a9   : > { %2554 = vst [vmem:[%s4307_s26 + $0x28] sm:$0xff] %v2538_v9  ;;  %v2543_v43 = vadd.f32 %v4300_v23, %v2521_v13  ;;  %v2522_v20 = vmul.f32 %v4292_v42, %v2500_v2  ;;  %v2497_v14 = vmul.f32 %v3357_v3, %v4257_v15  ;;  %3366 = vrsqrt.f32 %v2472_v18 }
 0x5aa   : > { %v3359_v24 = vpop.eup %3358 }
 0x5ab   : > { %2559 = vst [vmem:[%s4307_s26 + $0x50] sm:$0xff] %v2543_v43  ;;  %v2544_v25 = vadd.f32 %v4300_v23, %v2522_v20  ;;  %v2519_v57 = vmul.f32 %v4292_v42, %v2497_v14  ;;  %v2498_v17 = vmul.f32 %v3359_v24, %v4262_v61 }
 0x5ad   : > { %v3361_v35 = vpop.eup %3360  ;;  %2560 = vst [vmem:[%s4307_s26 + $0x58] sm:$0xff] %v2544_v25  ;;  %v2541_v12 = vadd.f32 %v4300_v23, %v2519_v57  ;;  %v2520_v56 = vmul.f32 %v4292_v42, %v2498_v17 }
 0x5ae   : > { %v2501_v15 = vmul.f32 %v3361_v35, %v4269_v7 }
 0x5af   : > { %2557 = vst [vmem:[%s4307_s26 + $0x40] sm:$0xff] %v2541_v12  ;;  %v2542_v60 = vadd.f32 %v4300_v23, %v2520_v56 }
 0x5b0   : > { %v3363_v22 = vpop.eup %3362  ;;  %v2523_v26 = vmul.f32 %v4292_v42, %v2501_v15 }
 0x5b1   : > { %2558 = vst [vmem:[%s4307_s26 + $0x48] sm:$0xff] %v2542_v60  ;;  %v2502_v61 = vmul.f32 %v3363_v22, %v4272_v27 }
 0x5b2   : > { %v3365_v41 = vpop.eup %3364  ;;  %v2545_v28 = vadd.f32 %v4300_v23, %v2523_v26 }
 0x5b3   : > { %v3367_v47 = vpop.eup %3366  ;;  %v2524_v44 = vmul.f32 %v4292_v42, %v2502_v61  ;;  %v2503_v7 = vmul.f32 %v3365_v41, %v4277_v37 }
 0x5b4   : > { %2561 = vst [vmem:[%s4307_s26 + $0x60] sm:$0xff] %v2545_v28  ;;  %v2504_v52 = vmul.f32 %v3367_v47, %v4282_v39 }
 0x5b5   : > { %v2546_v59 = vadd.f32 %v4300_v23, %v2524_v44  ;;  %v2525_v27 = vmul.f32 %v4292_v42, %v2503_v7 }
 0x5b6   : > { %v2526_v49 = vmul.f32 %v4292_v42, %v2504_v52 }
 0x5b7   : > { %2562 = vst [vmem:[%s4307_s26 + $0x68] sm:$0xff] %v2546_v59  ;;  %v2547_v34 = vadd.f32 %v4300_v23, %v2525_v27 }
 0x5b8   : > { %v2548_v37 = vadd.f32 %v4300_v23, %v2526_v49 }
 0x5b9   : > { %2563 = vst [vmem:[%s4307_s26 + $0x70] sm:$0xff] %v2547_v34 }
 0x5ba   : > { %2564 = vst [vmem:[%s4307_s26 + $0x78] sm:$0xff] %v2548_v37 }
 0x5bb   : > { %3381 = shalt.err (!%p3378_p4)
}
 0x5bc   : > { %s3382_s18 = scalar_lea.hbm %s4369_s20, 2048  ;;  %s3386_s19 = scalar_lea.hbm %s4431_s12, 4096 }
 0x5bd   : > { %p3383_p7 = scmp.ne.s32.totalorder %s4369_s20, %s3382_s18  ;;  %p3387_p10 = scmp.lt.u32.totalorder %s4369_s20, %s4431_s12 }
 0x5be   : > { %p3388_p11 = scmp.lt.u32.totalorder %s3386_s19, %s3382_s18  ;;  %p3390_p13 = scmp.lt.u32.totalorder %s3382_s18, %s4369_s20 }
 0x5bf   : > { %p3384_p8 = pnand %p3383_p7, %p3538_p5 }
 0x5c0   : > { %p3389_p12 = por %p3388_p11, %p3387_p10 }
 0x5c1   : > { %p3385_p9 = pneg %p3384_p8 }
 0x5c2   : > { %p3391_p0 = por %p3390_p13, %p3389_p12 }
 0x5c4   : > { %p3392_p1 = pnand %p3391_p0, %p3385_p9 }
 0x5c6   : > { %3395 = shalt.err (!%p3392_p1)
}
 0x5c7   : > { %s3433_s28 = smov 128   ;;  %s3434_s15 = smov 8  }
 0x5c8   : > { %3207 = dma.vmem_to_hbm [thread:$0]  (%p3538_p5), %s4371_s16, 2048, %s4369_s20, %s4378_s25, %s3433_s28, %s3433_s28, %s3434_s15  }
 0x5c9 PF: > { %p3213_p2 = scmp.ge.s32.totalorder %s3430_s24, 2  ;;  %s2594_s26 = sand.u32 1, %s3418_s21  }
 0x5ca   : > { %s2595_s18 = scalar_lea.sflag [#allocation5], %s2594_s26 }
 0x5cb   : > { %p3210_p3 = pnand %p3213_p2, %p3542_p6 }
 0x5cd   : > { %3413 = dma.done.wait (!%p3210_p3), %s2595_s18, 2048  }
 0x5ce   : > { %3415 = vsyncadd (!%p3210_p3), %s2595_s18, 4294965248  ;;  %s4435_s30 = sld [smem:[#allocation7_spill]]  ;;  %p22_p4 = scmp.ge.s32.totalorder %s3525_s27, 4  }
 0x5cf   : > { %s4436_s21 = smov %s3422_s22  ;;  %s4437_s22 = smov %s3426_s23 }
 0x5d0   : > { %s4439_s24 = smov %s3525_s27  ;;  %24 = sbr.rel (!%p22_p4) target bundleno = 3 (0x3), region = 110 }
 0x5d4   : > { %s4438_s23 = smov %s4435_s30 }
 0x5d7   :  { %2600 = vsyncpa [#allocation5], 1 }
 0x5d8   :  { %2602 = vsyncpa [#allocation5 + $0x1], 1 }

// kernel: encoder_forward.2
= control target key start
LH: loop header
LB: loop body
LE: loop exit
PB: predicated region body
PF: predicated region fallthrough
CT: control target
= control target key end

     0   :  { %s3388_s21 = smov 0   ;;  %s4219_s0 = inlined_call_operand.vmem [shape: f32[416,128], index: 0, kind: input, shape index: {}, may-alias: {0,1}]   ;;  %s4220_s1 = inlined_call_operand.vmem [shape: f32[416,128], index: 1, kind: input, shape index: {}, may-alias: {0,1}]   ;;  %s4221_s2 = inlined_call_operand.vmem [shape: bf16[5,128,128], index: 2, kind: input, shape index: {}]   ;;  %s4222_s3 = inlined_call_operand.vmem [shape: f32[1,128], index: 3, kind: input, shape index: {}]   ;;  %s4223_s4 = inlined_call_operand.vmem [shape: f32[1,128], index: 4, kind: input, shape index: {}]   ;;  %s4224_s5 = inlined_call_operand.vmem [shape: f32[1,128], index: 5, kind: input, shape index: {}]   ;;  %s4225_s6 = inlined_call_operand.vmem [shape: bf16[128,128], index: 6, kind: input, shape index: {}]   ;;  %s4226_s7 = inlined_call_operand.vmem [shape: f32[1,128], index: 7, kind: input, shape index: {}]   ;;  %s4227_s8 = inlined_call_operand.vmem [shape: bf16[128,128], index: 8, kind: input, shape index: {}]   ;;  %s4228_s9 = inlined_call_operand.vmem [shape: f32[1,128], index: 9, kind: input, shape index: {}]   ;;  %s4229_s10 = inlined_call_operand.vmem [shape: f32[1,128], index: 10, kind: input, shape index: {}]   ;;  %s4230_s11 = inlined_call_operand.vmem [shape: f32[1,128], index: 11, kind: input, shape index: {}]   ;;  %s4231_s12 = inlined_call_operand.vmem [shape: f32[384,128], index: 12, kind: output, shape index: {}]  }
   0x1 LB: > { %s2635_s22 = sadd.s32 4294967295, %s3321_s21   ;;  %p2641_p0 = scmp.ge.s32.totalorder %s3321_s21, 1  ;;  %s3321_s21 = sphi %s3388_s21, %s22_s21  }
   0x2   : > { %p390_p1 = scmp.lt.s32.totalorder %s3321_s21, 4 }
   0x4   : > { %p391_p2 = pnand %p2641_p0, %p390_p1 }
   0x5   : > { %v3195_v0 = vld [vmem:[%s4221_s2] sm:$0xff] (!%p391_p2)   ;;  %s3399_s25 = sshll.u32 (!%p391_p2), %s2635_s22, 4  ;;  %v3196_v1 = vld [vmem:[%s4221_s2 + $0x8] sm:$0xff] (!%p391_p2)   ;;  %v3197_v2 = vld [vmem:[%s4221_s2 + $0x10] sm:$0xff] (!%p391_p2)  }
   0x6   : > { %394 = sbr.rel (%p391_p2) target bundleno = 1458 (0x5b2), region = 68  ;;  %p448_p3 = scmp.lt.s32.totalorder (!%p391_p2), %s3399_s25, 51  ;;  %2931 = vmatprep.subr.bf16.mxu0 (!%p391_p2), %v3195_v0  ;;  %v3198_v3 = vld [vmem:[%s4221_s2 + $0x18] sm:$0xff] (!%p391_p2)   ;;  %v3199_v9 = vld [vmem:[%s4221_s2 + $0x20] sm:$0xff] (!%p391_p2)   ;;  %v3200_v11 = vld [vmem:[%s4221_s2 + $0x28] sm:$0xff] (!%p391_p2)  }
   0x7   : > { %2932 = vmatpush3.bf16.msra.mxu0 (!%p391_p2), %v3195_v0  ;;  %v3201_v12 = vld [vmem:[%s4221_s2 + $0x30] sm:$0xff] (!%p391_p2)   ;;  %v3202_v13 = vld [vmem:[%s4221_s2 + $0x38] sm:$0xff] (!%p391_p2)   ;;  %v3203_v16 = vld [vmem:[%s4221_s2 + $0x40] sm:$0xff] (!%p391_p2)   ;;  %s2786_s14 = sadd.s32 (!%p391_p2), 16, %s3399_s25  ;;  %p468_p5 = scmp.lt.s32.totalorder (!%p391_p2), %s3399_s25, 47 }
   0x8   : > { %2933 = vmatprep.subr.bf16.mxu0 (!%p391_p2), %v3196_v1  ;;  %v3219_v18 = vld [vmem:[%s4221_s2 + $0x100] sm:$0xff] (!%p391_p2)   ;;  %v3204_v19 = vld [vmem:[%s4221_s2 + $0x48] sm:$0xff] (!%p391_p2)   ;;  %v3205_v23 = vld [vmem:[%s4221_s2 + $0x50] sm:$0xff] (!%p391_p2)   ;;  %p460_p4 = scmp.lt.s32.totalorder (!%p391_p2), %s2786_s14, 51 }
   0x9   : > { %2899 = vmatprep.subr.bf16.mxu1 (!%p391_p2), %v3219_v18  ;;  %v3221_v20 = vld [vmem:[%s4221_s2 + $0x108] sm:$0xff] (!%p391_p2)   ;;  %v3223_v24 = vld [vmem:[%s4221_s2 + $0x110] sm:$0xff] (!%p391_p2)   ;;  %v3225_v28 = vld [vmem:[%s4221_s2 + $0x118] sm:$0xff] (!%p391_p2)  }
   0xa   : > { %2900 = vmatpush3.bf16.msra.mxu1 (!%p391_p2), %v3219_v18  ;;  %v3206_v30 = vld [vmem:[%s4221_s2 + $0x58] sm:$0xff] (!%p391_p2)   ;;  %v3207_v33 = vld [vmem:[%s4221_s2 + $0x60] sm:$0xff] (!%p391_p2)   ;;  %v3208_v38 = vld [vmem:[%s4221_s2 + $0x68] sm:$0xff] (!%p391_p2)  }
   0xb   : > { %2934 = vmatpush3.bf16.msra.mxu0 (!%p391_p2), %v3196_v1  ;;  %2901 = vmatprep.subr.bf16.mxu1 (!%p391_p2), %v3221_v20  ;;  %v3227_v34 = vld [vmem:[%s4221_s2 + $0x120] sm:$0xff] (!%p391_p2)   ;;  %v3229_v39 = vld [vmem:[%s4221_s2 + $0x128] sm:$0xff] (!%p391_p2)   ;;  %v3231_v41 = vld [vmem:[%s4221_s2 + $0x130] sm:$0xff] (!%p391_p2)  }
   0xc   : > { %2935 = vmatprep.subr.bf16.mxu0 (!%p391_p2), %v3197_v2  ;;  %v3209_v44 = vld [vmem:[%s4221_s2 + $0x70] sm:$0xff] (!%p391_p2)   ;;  %v3233_v45 = vld [vmem:[%s4221_s2 + $0x138] sm:$0xff] (!%p391_p2)   ;;  %v3211_v49 = vld [vmem:[%s4221_s2 + $0x80] sm:$0xff] (!%p391_p2)  }
   0xd   : > { %s449_s28 = scalar_select %p448_p3, %s3399_s25, 51  ;;  %v3210_v47 = vld [vmem:[%s4221_s2 + $0x78] sm:$0xff]   ;;  %v3212_v52 = vld [vmem:[%s4221_s2 + $0x88] sm:$0xff]   ;;  %v3213_v53 = vld [vmem:[%s4221_s2 + $0x90] sm:$0xff]  }
   0xe   : > { %2902 = vmatpush3.bf16.msra.mxu1 %v3221_v20  ;;  %s4233_s14 = smov (!%p460_p4, %s2786_s14), 51  ;;  %v3214_v56 = vld [vmem:[%s4221_s2 + $0x98] sm:$0xff]   ;;  %v3215_v57 = vld [vmem:[%s4221_s2 + $0xa0] sm:$0xff]   ;;  %v3216_v63 = vld [vmem:[%s4221_s2 + $0xa8] sm:$0xff]   ;;  %s4235_s25 = smov (!%p468_p5, %s3399_s25), 47 }
   0xf   : > { %s2643_s13 = sshll.u32 %s449_s28, 3  ;;  %2936 = vmatpush3.bf16.msra.mxu0 %v3197_v2  ;;  %2903 = vmatprep.subr.bf16.mxu1 %v3223_v24  ;;  %s2646_s23 = sshll.u32 %s4233_s14, 3  ;;  %v3217_v2 = vld [vmem:[%s4221_s2 + $0xb0] sm:$0xff]  }
  0x10   : > { %s3412_s16 = scalar_lea.vmem %s4219_s0, %s2643_s13  ;;  %2937 = vmatprep.subr.bf16.mxu0 %v3198_v3  ;;  %s463_s27 = scalar_lea.vmem %s4220_s1, %s2646_s23 }
  0x11   : > { %v474_v4 = vld [vmem:[%s3412_s16] sm:$0xff]  ;;  %v3419_v5 = vld [vmem:[%s3412_s16 + $0x8] sm:$0xff]  ;;  %v3446_v14 = vld [vmem:[%s3412_s16 + $0x10] sm:$0xff]  ;;  %s2648_s13 = sshll.u32 %s4235_s25, 3 }
  0x12   : > { %v748_v6 = vpack.c.bf16 %v3419_v5, %v474_v4  ;;  %v3423_v7 = vld [vmem:[%s3412_s16 + $0x20] sm:$0xff]  ;;  %v3426_v8 = vld [vmem:[%s3412_s16 + $0x28] sm:$0xff]  ;;  %v3449_v15 = vld [vmem:[%s3412_s16 + $0x18] sm:$0xff]  ;;  %2904 = vmatpush3.bf16.msra.mxu1 %v3223_v24  ;;  %v981_v48 = vpack.c.bf16 %v3446_v14, %v3419_v5  ;;  %s4153_s18 = scalar_lea.vmem %s4231_s12, %s2648_s13 }
  0x13   : > { %v3433_v10 = vpack.c.bf16 %v3426_v8, %v3423_v7  ;;  %2938 = vmatpush3.bf16.msra.mxu0 %v3198_v3  ;;  %v3456_v17 = vpack.c.bf16 %v3449_v15, %v3446_v14  ;;  %v3468_v21 = vld [vmem:[%s3412_s16 + $0x30] sm:$0xff]  ;;  %v3471_v22 = vld [vmem:[%s3412_s16 + $0x38] sm:$0xff]  ;;  %v3482_v25 = vld [vmem:[%s3412_s16 + $0x40] sm:$0xff]  ;;  %2905 = vmatprep.subr.bf16.mxu1 %v3225_v28  ;;  %v3568_v50 = vpack.c.bf16 %v3423_v7, %v3449_v15 }
  0x14   : > { %2947 = vmatprep.mubr.bf16.mxu0 %v748_v6  ;;  %2939 = vmatprep.subr.bf16.mxu0 %v3199_v9  ;;  %v3485_v26 = vld [vmem:[%s3412_s16 + $0x48] sm:$0xff]  ;;  %v3489_v27 = vpack.c.bf16 %v3471_v22, %v3468_v21  ;;  %v3502_v31 = vld [vmem:[%s3412_s16 + $0x50] sm:$0xff]  ;;  %v3505_v32 = vld [vmem:[%s3412_s16 + $0x58] sm:$0xff]  ;;  %v3572_v51 = vpack.c.bf16 %v3468_v21, %v3426_v8  ;;  %v3586_v54 = vpack.c.bf16 %v3482_v25, %v3471_v22 }
  0x15   : > { %2915 = vmatprep.mubr.bf16.mxu1 %v3433_v10  ;;  %v3496_v29 = vpack.c.bf16 %v3485_v26, %v3482_v25  ;;  %v3516_v35 = vld [vmem:[%s3412_s16 + $0x60] sm:$0xff]  ;;  %v3519_v36 = vld [vmem:[%s3412_s16 + $0x68] sm:$0xff]  ;;  %v3523_v37 = vpack.c.bf16 %v3505_v32, %v3502_v31  ;;  %v3539_v42 = vld [vmem:[%s3412_s16 + $0x70] sm:$0xff]  ;;  %v3590_v55 = vpack.c.bf16 %v3502_v31, %v3485_v26 }
  0x16   : > { %2906 = vmatpush3.bf16.msra.mxu1 %v3225_v28  ;;  %v3533_v40 = vpack.c.bf16 %v3519_v36, %v3516_v35  ;;  %v3542_v43 = vld [vmem:[%s3412_s16 + $0x78] sm:$0xff]  ;;  %v3605_v58 = vld [vmem:[%s463_s27 + $0x8] sm:$0xff]  ;;  %v986_v59 = vpack.c.bf16 %v3516_v35, %v3505_v32  ;;  %v3609_v60 = vld [vmem:[%s463_s27] sm:$0xff]  ;;  %v987_v61 = vpack.c.bf16 %v3539_v42, %v3519_v36 }
  0x17   : > { %2940 = vmatpush3.bf16.msra.mxu0 %v3199_v9  ;;  %2907 = vmatprep.subr.bf16.mxu1 %v3227_v34  ;;  %v3554_v46 = vpack.c.bf16 %v3542_v43, %v3539_v42  ;;  %v536_v62 = vpack.c.bf16 %v3605_v58, %v3609_v60  ;;  %v3619_v0 = vld [vmem:[%s463_s27 + $0x10] sm:$0xff]  ;;  %v3621_v1 = vld [vmem:[%s463_s27 + $0x18] sm:$0xff]  ;;  %v988_v4 = vpack.c.bf16 %v3609_v60, %v3542_v43  ;;  %v3220_v6 = vld [vmem:[%s4221_s2 + $0xc0] sm:$0xff]  }
  0x18   : > { %2941 = vmatprep.subr.bf16.mxu0 %v3200_v11  ;;  %v537_v3 = vpack.c.bf16 %v3621_v1, %v3619_v0  ;;  %v3218_v5 = vld [vmem:[%s4221_s2 + $0xb8] sm:$0xff]   ;;  %v3222_v9 = vld [vmem:[%s4221_s2 + $0xc8] sm:$0xff]   ;;  %v3232_v14 = vld [vmem:[%s4221_s2 + $0xf0] sm:$0xff]  }
  0x19   : > { %v3234_v15 = vld [vmem:[%s4221_s2 + $0xf8] sm:$0xff]  }
  0x1a   : > { %2908 = vmatpush3.bf16.msra.mxu1 %v3227_v34 }
  0x1b   : > { %2942 = vmatpush3.bf16.msra.mxu0 %v3200_v11  ;;  %2909 = vmatprep.subr.bf16.mxu1 %v3229_v39  ;;  %v3224_v11 = vld [vmem:[%s4221_s2 + $0xd0] sm:$0xff]  }
  0x1c   : > { %2943 = vmatprep.subr.bf16.mxu0 %v3201_v12 }
  0x1e   : > { %2910 = vmatpush3.bf16.msra.mxu1 %v3229_v39 }
  0x1f   : > { %2944 = vmatpush3.bf16.msra.mxu0 %v3201_v12  ;;  %2911 = vmatprep.subr.bf16.mxu1 %v3231_v41  ;;  %v3226_v12 = vld [vmem:[%s4221_s2 + $0xd8] sm:$0xff]  }
  0x20   : > { %2945 = vmatprep.subr.bf16.mxu0 %v3202_v13 }
  0x22   : > { %2912 = vmatpush3.bf16.msra.mxu1 %v3231_v41 }
  0x23   : > { %2946 = vmatpush3.bf16.msra.mxu0 %v3202_v13  ;;  %2913 = vmatprep.subr.bf16.mxu1 %v3233_v45  ;;  %v3230_v13 = vld [vmem:[%s4221_s2 + $0xe8] sm:$0xff]  }
  0x24   : > { %2963 = vmatprep.subr.bf16.mxu0 %v3203_v16 }
  0x26   : > { %2948 = vmatmul.mubr.bf16.vlgmr.msra.gmra.mrb[0].mxu0 %v3456_v17  ;;  %2914 = vmatpush3.bf16.msra.mxu1 %v3233_v45 }
  0x27   : > { %2964 = vmatpush3.bf16.msra.mxu0 %v3203_v16  ;;  %2951 = vmatprep.mubr.bf16.mxu0 %v3433_v10  ;;  %v1456_v16 = vpack.c.bf16 %v3619_v0, %v3605_v58 }
  0x28   : > { %2965 = vmatprep.subr.bf16.mxu0 %v3204_v19 }
  0x29   : > { %2916 = vmatmul.mubr.bf16.vlgmr.msra.gmra.mrb[0].mxu1 %v3489_v27 }
  0x2a   : > { %2919 = vmatprep.mubr.bf16.mxu1 %v3496_v29 }
  0x2b   : > { %2966 = vmatpush3.bf16.msra.mxu0 %v3204_v19 }
  0x2c   : > { %2967 = vmatprep.subr.bf16.mxu0 %v3205_v23 }
  0x2e   : > { %2952 = vmatmul.mubr.bf16.gmra.mrb[4].mxu0 %v3489_v27 }
  0x2f   : > { %2968 = vmatpush3.bf16.msra.mxu0 %v3205_v23  ;;  %2955 = vmatprep.mubr.bf16.mxu0 %v3496_v29 }
  0x30   : > { %2969 = vmatprep.subr.bf16.mxu0 %v3206_v30 }
  0x31   : > { %2920 = vmatmul.mubr.bf16.gmra.mrb[4].mxu1 %v3523_v37 }
  0x32   : > { %2923 = vmatprep.mubr.bf16.mxu1 %v3533_v40 }
  0x33   : > { %2970 = vmatpush3.bf16.msra.mxu0 %v3206_v30 }
  0x34   : > { %2971 = vmatprep.subr.bf16.mxu0 %v3207_v33 }
  0x36   : > { %2956 = vmatmul.mubr.bf16.gmra.mrb[8].mxu0 %v3523_v37 }
  0x37   : > { %2972 = vmatpush3.bf16.msra.mxu0 %v3207_v33  ;;  %2959 = vmatprep.mubr.bf16.mxu0 %v3533_v40 }
  0x38   : > { %2973 = vmatprep.subr.bf16.mxu0 %v3208_v38 }
  0x39   : > { %2924 = vmatmul.mubr.bf16.gmra.mrb[8].mxu1 %v3554_v46 }
  0x3a   : > { %2927 = vmatprep.mubr.bf16.mxu1 %v536_v62 }
  0x3b   : > { %2974 = vmatpush3.bf16.msra.mxu0 %v3208_v38 }
  0x3c   : > { %2975 = vmatprep.subr.bf16.mxu0 %v3209_v44 }
  0x3e   : > { %2960 = vmatmul.mubr.bf16.gmra.mrb[12].mxu0 %v3554_v46 }
  0x3f   : > { %2976 = vmatpush3.bf16.msra.mxu0 %v3209_v44  ;;  %2979 = vmatprep.mubr.bf16.mxu0 %v981_v48  ;;  %v3681_v44 = vld [vmem:[%s4222_s3] ss:$0 sm:$0xff] }
  0x40   : > { %2977 = vmatprep.subr.bf16.mxu0 %v3210_v47 }
  0x41   : > { %2928 = vmatmul.mubr.bf16.gmra.mrb[12].mxu1 %v537_v3 }
  0x43   : > { %2978 = vmatpush3.bf16.msra.mxu0 %v3210_v47 }
  0x44   : > { %2995 = vmatprep.subr.bf16.mxu0 %v3211_v49 }
  0x46   : > { %2980 = vmatmul.mubr.bf16.vlgmr.msra.gmra.mrb[0].mxu0 %v3568_v50 }
  0x47   : > { %2996 = vmatpush3.bf16.msra.mxu0 %v3211_v49  ;;  %2983 = vmatprep.mubr.bf16.mxu0 %v3572_v51 }
  0x48   : > { %2997 = vmatprep.subr.bf16.mxu0 %v3212_v52 }
  0x4b   : > { %2998 = vmatpush3.bf16.msra.mxu0 %v3212_v52 }
  0x4c   : > { %2999 = vmatprep.subr.bf16.mxu0 %v3213_v53 }
  0x4e   : > { %2984 = vmatmul.mubr.bf16.gmra.mrb[4].mxu0 %v3586_v54 }
  0x4f   : > { %3000 = vmatpush3.bf16.msra.mxu0 %v3213_v53  ;;  %2987 = vmatprep.mubr.bf16.mxu0 %v3590_v55 }
  0x50   : > { %3001 = vmatprep.subr.bf16.mxu0 %v3214_v56 }
  0x53   : > { %3002 = vmatpush3.bf16.msra.mxu0 %v3214_v56 }
  0x54   : > { %3003 = vmatprep.subr.bf16.mxu0 %v3215_v57 }
  0x56   : > { %2988 = vmatmul.mubr.bf16.gmra.mrb[8].mxu0 %v986_v59 }
  0x57   : > { %3004 = vmatpush3.bf16.msra.mxu0 %v3215_v57  ;;  %2991 = vmatprep.mubr.bf16.mxu0 %v987_v61 }
  0x58   : > { %3005 = vmatprep.subr.bf16.mxu0 %v3216_v63 }
  0x5b   : > { %3006 = vmatpush3.bf16.msra.mxu0 %v3216_v63 }
  0x5c   : > { %3007 = vmatprep.subr.bf16.mxu0 %v3217_v2 }
  0x5e   : > { %2992 = vmatmul.mubr.bf16.gmra.mrb[12].mxu0 %v988_v4 }
  0x5f   : > { %3008 = vmatpush3.bf16.msra.mxu0 %v3217_v2  ;;  %3011 = vmatprep.mubr.bf16.mxu0 %v3456_v17 }
  0x60   : > { %3009 = vmatprep.subr.bf16.mxu0 %v3218_v5 }
  0x63   : > { %3010 = vmatpush3.bf16.msra.mxu0 %v3218_v5 }
  0x64   : > { %3027 = vmatprep.subr.bf16.mxu0 %v3220_v6 }
  0x66   : > { %3012 = vmatmul.mubr.bf16.vlgmr.msra.gmra.mrb[0].mxu0 %v3433_v10  ;;  %v3228_v10 = vld [vmem:[%s4221_s2 + $0xe0] sm:$0xff]  }
  0x67   : > { %3028 = vmatpush3.bf16.msra.mxu0 %v3220_v6  ;;  %3015 = vmatprep.mubr.bf16.mxu0 %v3489_v27 }
  0x68   : > { %3029 = vmatprep.subr.bf16.mxu0 %v3222_v9 }
  0x6b   : > { %3030 = vmatpush3.bf16.msra.mxu0 %v3222_v9 }
  0x6c   : > { %3031 = vmatprep.subr.bf16.mxu0 %v3224_v11 }
  0x6e   : > { %3016 = vmatmul.mubr.bf16.gmra.mrb[4].mxu0 %v3496_v29 }
  0x6f   : > { %3032 = vmatpush3.bf16.msra.mxu0 %v3224_v11  ;;  %3019 = vmatprep.mubr.bf16.mxu0 %v3523_v37 }
  0x70   : > { %3033 = vmatprep.subr.bf16.mxu0 %v3226_v12 }
  0x73   : > { %3034 = vmatpush3.bf16.msra.mxu0 %v3226_v12 }
  0x74   : > { %3035 = vmatprep.subr.bf16.mxu0 %v3228_v10 }
  0x76   : > { %3020 = vmatmul.mubr.bf16.gmra.mrb[8].mxu0 %v3533_v40 }
  0x77   : > { %3036 = vmatpush3.bf16.msra.mxu0 %v3228_v10  ;;  %3023 = vmatprep.mubr.bf16.mxu0 %v3554_v46 }
  0x78   : > { %3037 = vmatprep.subr.bf16.mxu0 %v3230_v13 }
  0x7b   : > { %3038 = vmatpush3.bf16.msra.mxu0 %v3230_v13 }
  0x7c   : > { %3039 = vmatprep.subr.bf16.mxu0 %v3232_v14 }
  0x7e   : > { %3024 = vmatmul.mubr.bf16.gmra.mrb[12].mxu0 %v536_v62 }
  0x7f   : > { %3040 = vmatpush3.bf16.msra.mxu0 %v3232_v14  ;;  %3043 = vmatprep.mubr.bf16.mxu0 %v3568_v50 }
  0x80   : > { %3041 = vmatprep.subr.bf16.mxu0 %v3234_v15 }
  0x83   : > { %3042 = vmatpush3.bf16.msra.mxu0 %v3234_v15 }
  0x86   : > { %3044 = vmatmul.mubr.bf16.vlgmr.msra.gmra.mrb[0].mxu0 %v3572_v51 }
  0x87   : > { %3047 = vmatprep.mubr.bf16.mxu0 %v3586_v54 }
  0x8e   : > { %3048 = vmatmul.mubr.bf16.gmra.mrb[4].mxu0 %v3590_v55 }
  0x8f   : > { %3051 = vmatprep.mubr.bf16.mxu0 %v986_v59 }
  0x96   : > { %3052 = vmatmul.mubr.bf16.gmra.mrb[8].mxu0 %v987_v61 }
  0x97   : > { %3055 = vmatprep.mubr.bf16.mxu0 %v988_v4 }
  0x9e   : > { %3056 = vmatmul.mubr.bf16.gmra.mrb[12].mxu0 %v1456_v16 }
  0xfc   : > { %v2917_v17 = vpop.f32.mrb[0].mxu1 }
  0xfd   : > { %v637_v18 = vpop.f32.mrb[1].mxu1 }
  0xfe   : > { %v2918_v19 = vpop.f32.mrb[2].mxu1 }
  0xff   : > { %v640_v20 = vpop.f32.mrb[3].mxu1 }
 0x104   : > { %v2921_v23 = vpop.f32.mrb[4].mxu1 }
 0x105   : > { %v653_v24 = vpop.f32.mrb[5].mxu1 }
 0x106   : > { %v2922_v27 = vpop.f32.mrb[6].mxu1 }
 0x107   : > { %v656_v28 = vpop.f32.mrb[7].mxu1 }
 0x10c   : > { %v2925_v29 = vpop.f32.mrb[8].mxu1 }
 0x10d   : > { %v669_v30 = vpop.f32.mrb[9].mxu1 }
 0x10e   : > { %v2926_v33 = vpop.f32.mrb[10].mxu1 }
 0x10f   : > { %v672_v34 = vpop.f32.mrb[11].mxu1 }
 0x114   : > { %v3670_v37 = vpop.f32.mrb[12].mxu1 }
 0x115   : > { %v3672_v38 = vpop.f32.mrb[13].mxu1 }
 0x116   : > { %v3674_v39 = vpop.f32.mrb[14].mxu1 }
 0x117   : > { %v3676_v40 = vpop.f32.mrb[15].mxu1 }
 0x159   : > { %v3045_v41 = vpop.f32.mrb[0].mxu0 }
 0x15a   : > { %v3123_v45 = vadd.f32 %v3045_v41, %v2917_v17  ;;  %v1556_v46 = vpop.f32.mrb[1].mxu0 }
 0x15b   : > { %v3124_v47 = vadd.f32 %v1556_v46, %v637_v18  ;;  %v3046_v48 = vpop.f32.mrb[2].mxu0 }
 0x15c   : > { %v1676_v49 = vadd.f32 %v3123_v45, %v3681_v44  ;;  %v3125_v50 = vadd.f32 %v3046_v48, %v2918_v19  ;;  %v1559_v51 = vpop.f32.mrb[3].mxu0 }
 0x15d   : > { %v1674_v52 = vadd.f32 %v3124_v47, %v3681_v44  ;;  %v3126_v53 = vadd.f32 %v1559_v51, %v640_v20 }
 0x15e   : > { %v1692_v54 = vmax.f32 %v1676_v49, 0.0  ;;  %v1677_v55 = vadd.f32 %v3125_v50, %v3681_v44 }
 0x15f   : > { %v1690_v56 = vmax.f32 %v1674_v52, 0.0  ;;  %v1675_v57 = vadd.f32 %v3126_v53, %v3681_v44 }
 0x160   : > { %v1693_v59 = vmax.f32 %v1677_v55, 0.0  ;;  %v3688_v61 = vadd.f32 %v1692_v54, %v3468_v21 }
 0x161   : > { %v1691_v62 = vmax.f32 %v1675_v57, 0.0  ;;  %v3049_v63 = vpop.f32.mrb[4].mxu0  ;;  %v3691_v2 = vadd.f32 %v1690_v56, %v3423_v7 }
 0x162   : > { %v3127_v3 = vadd.f32 %v3049_v63, %v2921_v23  ;;  %1728 = vadd.xlane.f32.xlu1 %v3688_v61  ;;  %v1572_v4 = vpop.f32.mrb[5].mxu0  ;;  %v3696_v12 = vadd.f32 %v1693_v59, %v3471_v22 }
 0x163   : > { %v3128_v5 = vadd.f32 %v1572_v4, %v653_v24  ;;  %1724 = vadd.xlane.f32.xlu0 %v3691_v2  ;;  %v3050_v6 = vpop.f32.mrb[6].mxu0  ;;  %v3701_v7 = vadd.f32 %v1691_v62, %v3426_v8 }
 0x164   : > { %v3129_v9 = vadd.f32 %v3050_v6, %v2922_v27  ;;  %v1575_v11 = vpop.f32.mrb[7].mxu0  ;;  %v1680_v21 = vadd.f32 %v3127_v3, %v3681_v44 }
 0x165   : > { %v1678_v10 = vadd.f32 %v3128_v5, %v3681_v44  ;;  %v3130_v13 = vadd.f32 %v1575_v11, %v656_v28 }
 0x166   : > { %1730 = vadd.xlane.f32.xlu1 %v3696_v12  ;;  %v1681_v15 = vadd.f32 %v3129_v9, %v3681_v44  ;;  %v1696_v17 = vmax.f32 %v1680_v21, 0.0 }
 0x167   : > { %v1694_v14 = vmax.f32 %v1678_v10, 0.0  ;;  %v1679_v16 = vadd.f32 %v3130_v13, %v3681_v44  ;;  %1726 = vadd.xlane.f32.xlu0 %v3701_v7 }
 0x168   : > { %v1697_v24 = vmax.f32 %v1681_v15, 0.0 }
 0x169   : > { %v1695_v22 = vmax.f32 %v1679_v16, 0.0  ;;  %v3053_v18 = vpop.f32.mrb[8].mxu0  ;;  %v3708_v19 = vadd.f32 %v1694_v14, %v3482_v25  ;;  %v3718_v25 = vadd.f32 %v1696_v17, %v3502_v31 }
 0x16a   : > { %v3131_v20 = vadd.f32 %v3053_v18, %v2925_v29  ;;  %v1588_v23 = vpop.f32.mrb[9].mxu0 }
 0x16b   : > { %v3132_v8 = vadd.f32 %v1588_v23, %v669_v30  ;;  %1732 = vadd.xlane.f32.xlu0 %v3708_v19  ;;  %v3054_v27 = vpop.f32.mrb[10].mxu0  ;;  %v3712_v28 = vadd.f32 %v1695_v22, %v3485_v26  ;;  %v3724_v26 = vadd.f32 %v1697_v24, %v3505_v32 }
 0x16c   : > { %v3133_v41 = vadd.f32 %v3054_v27, %v2926_v33  ;;  %v1591_v45 = vpop.f32.mrb[11].mxu0  ;;  %v1684_v46 = vadd.f32 %v3131_v20, %v3681_v44 }
 0x16d   : > { %v1682_v47 = vadd.f32 %v3132_v8, %v3681_v44  ;;  %v3134_v48 = vadd.f32 %v1591_v45, %v672_v34  ;;  %1734 = vadd.xlane.f32.xlu1 %v3712_v28 }
 0x16e   : > { %v1685_v30 = vadd.f32 %v3133_v41, %v3681_v44  ;;  %v1700_v33 = vmax.f32 %v1684_v46, 0.0 }
 0x16f   : > { %v1698_v29 = vmax.f32 %v1682_v47, 0.0  ;;  %v1683_v49 = vadd.f32 %v3134_v48, %v3681_v44  ;;  %1736 = vadd.xlane.f32.xlu0 %v3718_v25 }
 0x170   : > { %v1701_v53 = vmax.f32 %v1685_v30, 0.0 }
 0x171   : > { %v1699_v50 = vmax.f32 %v1683_v49, 0.0  ;;  %1738 = vadd.xlane.f32.xlu1 %v3724_v26  ;;  %v3057_v34 = vpop.f32.mrb[12].mxu0  ;;  %v3728_v51 = vadd.f32 %v1698_v29, %v3516_v35 }
 0x172   : > { %v3135_v31 = vadd.f32 %v3057_v34, %v3670_v37  ;;  %v1604_v52 = vpop.f32.mrb[13].mxu0  ;;  %v3742_v37 = vadd.f32 %v1700_v33, %v3539_v42 }
 0x173   : > { %v3136_v54 = vadd.f32 %v1604_v52, %v3672_v38  ;;  %1740 = vadd.xlane.f32.xlu0 %v3728_v51  ;;  %v3058_v55 = vpop.f32.mrb[14].mxu0  ;;  %v3734_v32 = vadd.f32 %v1699_v50, %v3519_v36 }
 0x174   : > { %v3137_v56 = vadd.f32 %v3058_v55, %v3674_v39  ;;  %v1607_v57 = vpop.f32.mrb[15].mxu0  ;;  %v1688_v59 = vadd.f32 %v3135_v31, %v3681_v44  ;;  %v3748_v39 = vadd.f32 %v1701_v53, %v3542_v43 }
 0x175   : > { %v1686_v35 = vadd.f32 %v3136_v54, %v3681_v44  ;;  %v3138_v62 = vadd.f32 %v1607_v57, %v3676_v40  ;;  %1742 = vadd.xlane.f32.xlu1 %v3734_v32 }
 0x176   : > { %v1689_v63 = vadd.f32 %v3137_v56, %v3681_v44  ;;  %v1704_v3 = vmax.f32 %v1688_v59, 0.0 }
 0x177   : > { %v1702_v38 = vmax.f32 %v1686_v35, 0.0  ;;  %v1687_v36 = vadd.f32 %v3138_v62, %v3681_v44  ;;  %1744 = vadd.xlane.f32.xlu0 %v3742_v37 }
 0x178   : > { %v1705_v5 = vmax.f32 %v1689_v63, 0.0  ;;  %v3760_v44 = vadd.f32 %v1704_v3, %v3619_v0  ;;  %v3237_v63 = vld [vmem:[%s4225_s6 + $0x10] sm:$0xff]  }
 0x179   : > { %v1703_v4 = vmax.f32 %v1687_v36, 0.0  ;;  %1746 = vadd.xlane.f32.xlu1 %v3748_v39  ;;  %v3752_v40 = vadd.f32 %v1702_v38, %v3609_v60  ;;  %v3235_v60 = vld [vmem:[%s4225_s6] sm:$0xff]  }
 0x17a   : > { %v3764_v43 = vadd.f32 %v1705_v5, %v3621_v1  ;;  %3059 = vmatprep.subr.bf16.mxu1 %v3235_v60 }
 0x17b   : > { %1748 = vadd.xlane.f32.xlu0 %v3752_v40  ;;  %v3756_v42 = vadd.f32 %v1703_v4, %v3605_v58  ;;  %3060 = vmatpush3.bf16.msra.mxu1 %v3235_v60 }
 0x17d   : > { %1750 = vadd.xlane.f32.xlu1 %v3756_v42 }
 0x17f   : > { %1752 = vadd.xlane.f32.xlu0 %v3760_v44 }
 0x181   : > { %1754 = vadd.xlane.f32.xlu1 %v3764_v43 }
 0x1ef   : > { %v1729_v58 = vpop.xlane.xlu1 %1728 }
 0x1f0   : > { %v1725_v6 = vpop.xlane.xlu0 %1724  ;;  %v1759_v9 = vmul.f32 0.0078125, %v1729_v58 }
 0x1f1   : > { %v1757_v11 = vmul.f32 0.0078125, %v1725_v6 }
 0x1f2   : > { %v3774_v1 = vsub.f32 %v3688_v61, %v1759_v9 }
 0x1f3   : > { %v3771_v0 = vsub.f32 %v3691_v2, %v1757_v11  ;;  %v1731_v21 = vpop.xlane.xlu1 %1730 }
 0x1f4   : > { %v1727_v10 = vpop.xlane.xlu0 %1726  ;;  %v1760_v13 = vmul.f32 0.0078125, %v1731_v21  ;;  %v1791_v18 = vmul.f32 %v3774_v1, %v3774_v1 }
 0x1f5   : > { %v1758_v14 = vmul.f32 0.0078125, %v1727_v10  ;;  %v1789_v15 = vmul.f32 %v3771_v0, %v3771_v0  ;;  %v3241_v10 = vld [vmem:[%s4225_s6 + $0x30] sm:$0xff]  }
 0x1f6   : > { %v3782_v22 = vsub.f32 %v3696_v12, %v1760_v13  ;;  %v3242_v13 = vld [vmem:[%s4225_s6 + $0x38] sm:$0xff]  }
 0x1f7   : > { %v3779_v16 = vsub.f32 %v3701_v7, %v1758_v14  ;;  %1805 = vadd.xlane.f32.xlu0 %v1789_v15  ;;  %v3874_v14 = vld [vmem:[%s4227_s8] sm:$0xff]  }
 0x1f8   : > { %v1733_v17 = vpop.xlane.xlu0 %1732  ;;  %v1792_v41 = vmul.f32 %v3782_v22, %v3782_v22 }
 0x1f9   : > { %v1761_v2 = vmul.f32 0.0078125, %v1733_v17  ;;  %v1790_v61 = vmul.f32 %v3779_v16, %v3779_v16 }
 0x1fa   : > { %v1735_v20 = vpop.xlane.xlu1 %1734 }
 0x1fb   : > { %v3789_v23 = vsub.f32 %v3708_v19, %v1761_v2  ;;  %v1762_v24 = vmul.f32 0.0078125, %v1735_v20  ;;  %1809 = vadd.xlane.f32.xlu0 %v1791_v18  ;;  %1807 = vadd.xlane.f32.xlu1 %v1790_v61 }
 0x1fc   : > { %v1737_v7 = vpop.xlane.xlu0 %1736 }
 0x1fd   : > { %v3792_v8 = vsub.f32 %v3712_v28, %v1762_v24  ;;  %v1763_v12 = vmul.f32 0.0078125, %v1737_v7  ;;  %v1793_v27 = vmul.f32 %v3789_v23, %v3789_v23 }
 0x1fe   : > { %v1739_v45 = vpop.xlane.xlu1 %1738 }
 0x1ff   : > { %v3799_v46 = vsub.f32 %v3718_v25, %v1763_v12  ;;  %v1764_v19 = vmul.f32 0.0078125, %v1739_v45  ;;  %1813 = vadd.xlane.f32.xlu0 %v1793_v27  ;;  %1811 = vadd.xlane.f32.xlu1 %v1792_v41  ;;  %v1794_v30 = vmul.f32 %v3792_v8, %v3792_v8 }
 0x200   : > { %v1741_v47 = vpop.xlane.xlu0 %1740 }
 0x201   : > { %v3802_v48 = vsub.f32 %v3724_v26, %v1764_v19  ;;  %v1765_v28 = vmul.f32 0.0078125, %v1741_v47  ;;  %v1795_v29 = vmul.f32 %v3799_v46, %v3799_v46 }
 0x202   : > { %v1743_v49 = vpop.xlane.xlu1 %1742 }
 0x203   : > { %v3809_v33 = vsub.f32 %v3728_v51, %v1765_v28  ;;  %v1766_v25 = vmul.f32 0.0078125, %v1743_v49  ;;  %1817 = vadd.xlane.f32.xlu0 %v1795_v29  ;;  %1815 = vadd.xlane.f32.xlu1 %v1794_v30  ;;  %v1796_v52 = vmul.f32 %v3802_v48, %v3802_v48  ;;  %v3236_v51 = vld [vmem:[%s4225_s6 + $0x8] sm:$0xff]  }
 0x204   : > { %v1745_v50 = vpop.xlane.xlu0 %1744  ;;  %3061 = vmatprep.subr.bf16.mxu1 %v3236_v51 }
 0x205   : > { %v3812_v34 = vsub.f32 %v3734_v32, %v1766_v25  ;;  %v1767_v26 = vmul.f32 0.0078125, %v1745_v50  ;;  %v1797_v31 = vmul.f32 %v3809_v33, %v3809_v33  ;;  %3062 = vmatpush3.bf16.msra.mxu1 %v3236_v51 }
 0x206   : > { %v1747_v53 = vpop.xlane.xlu1 %1746  ;;  %3063 = vmatprep.subr.bf16.mxu1 %v3237_v63 }
 0x207   : > { %v3822_v54 = vsub.f32 %v3742_v37, %v1767_v26  ;;  %v1768_v55 = vmul.f32 0.0078125, %v1747_v53  ;;  %1821 = vadd.xlane.f32.xlu0 %v1797_v31  ;;  %1819 = vadd.xlane.f32.xlu1 %v1796_v52  ;;  %v1798_v35 = vmul.f32 %v3812_v34, %v3812_v34 }
 0x208   : > { %v1749_v32 = vpop.xlane.xlu0 %1748 }
 0x209   : > { %v3825_v56 = vsub.f32 %v3748_v39, %v1768_v55  ;;  %v1769_v57 = vmul.f32 0.0078125, %v1749_v32  ;;  %v1799_v59 = vmul.f32 %v3822_v54, %v3822_v54  ;;  %3064 = vmatpush3.bf16.msra.mxu1 %v3237_v63 }
 0x20a   : > { %v1751_v62 = vpop.xlane.xlu1 %1750 }
 0x20b   : > { %v3832_v37 = vsub.f32 %v3752_v40, %v1769_v57  ;;  %v1770_v38 = vmul.f32 0.0078125, %v1751_v62  ;;  %1825 = vadd.xlane.f32.xlu0 %v1799_v59  ;;  %1823 = vadd.xlane.f32.xlu1 %v1798_v35  ;;  %v1800_v5 = vmul.f32 %v3825_v56, %v3825_v56  ;;  %v3881_v59 = vld [vmem:[%s4223_s4] ss:$0 sm:$0xff] }
 0x20c   : > { %v1753_v36 = vpop.xlane.xlu0 %1752 }
 0x20d   : > { %v3838_v39 = vsub.f32 %v3756_v42, %v1770_v38  ;;  %v1771_v3 = vmul.f32 0.0078125, %v1753_v36  ;;  %v1801_v4 = vmul.f32 %v3832_v37, %v3832_v37  ;;  %v3238_v42 = vld [vmem:[%s4225_s6 + $0x18] sm:$0xff]  }
 0x20e   : > { %v1755_v40 = vpop.xlane.xlu1 %1754  ;;  %3065 = vmatprep.subr.bf16.mxu1 %v3238_v42 }
 0x20f   : > { %v3845_v60 = vsub.f32 %v3760_v44, %v1771_v3  ;;  %v1772_v58 = vmul.f32 0.0078125, %v1755_v40  ;;  %1829 = vadd.xlane.f32.xlu0 %v1801_v4  ;;  %1827 = vadd.xlane.f32.xlu1 %v1800_v5  ;;  %v1802_v11 = vmul.f32 %v3838_v39, %v3838_v39  ;;  %v3239_v44 = vld [vmem:[%s4225_s6 + $0x20] sm:$0xff]  }
 0x210   : > { %3066 = vmatpush3.bf16.msra.mxu1 %v3238_v42 }
 0x211   : > { %v3851_v6 = vsub.f32 %v3764_v43, %v1772_v58  ;;  %v1803_v9 = vmul.f32 %v3845_v60, %v3845_v60  ;;  %3067 = vmatprep.subr.bf16.mxu1 %v3239_v44  ;;  %v3240_v43 = vld [vmem:[%s4225_s6 + $0x28] sm:$0xff]  }
 0x213   : > { %1833 = vadd.xlane.f32.xlu0 %v1803_v9  ;;  %1831 = vadd.xlane.f32.xlu1 %v1802_v11  ;;  %v1804_v21 = vmul.f32 %v3851_v6, %v3851_v6  ;;  %v3889_v11 = vld [vmem:[%s4224_s5] ss:$0 sm:$0xff] }
 0x214   : > { %3068 = vmatpush3.bf16.msra.mxu1 %v3239_v44 }
 0x215   : > { %3069 = vmatprep.subr.bf16.mxu1 %v3240_v43 }
 0x217   : > { %1835 = vadd.xlane.f32.xlu1 %v1804_v21 }
 0x218   : > { %3070 = vmatpush3.bf16.msra.mxu1 %v3240_v43 }
 0x219   : > { %3071 = vmatprep.subr.bf16.mxu1 %v3241_v10 }
 0x21c   : > { %3072 = vmatpush3.bf16.msra.mxu1 %v3241_v10 }
 0x21d   : > { %3073 = vmatprep.subr.bf16.mxu1 %v3242_v13 }
 0x220   : > { %3074 = vmatpush3.bf16.msra.mxu1 %v3242_v13 }
 0x221   : > { %3091 = vmatprep.subr.bf16.mxu1 %v3874_v14 }
 0x284   : > { %v1806_v15 = vpop.xlane.xlu0 %1805 }
 0x285   : > { %v1837_v17 = vmul.f32 0.0078125, %v1806_v15 }
 0x287   : > { %v1853_v2 = vadd.f32 1e-05, %v1837_v17 }
 0x288   : > { %v1810_v18 = vpop.xlane.xlu0 %1809  ;;  %v1808_v61 = vpop.xlane.xlu1 %1807 }
 0x289   : > { %3251 = vrsqrt.f32 %v1853_v2  ;;  %v1839_v20 = vmul.f32 0.0078125, %v1810_v18  ;;  %v1838_v24 = vmul.f32 0.0078125, %v1808_v61 }
 0x28b   : > { %v1855_v7 = vadd.f32 1e-05, %v1839_v20  ;;  %v1854_v12 = vadd.f32 1e-05, %v1838_v24 }
 0x28c   : > { %v1814_v27 = vpop.xlane.xlu0 %1813  ;;  %v1812_v41 = vpop.xlane.xlu1 %1811 }
 0x28d   : > { %3253 = vrsqrt.f32 %v1855_v7  ;;  %v1841_v45 = vmul.f32 0.0078125, %v1814_v27  ;;  %v1840_v19 = vmul.f32 0.0078125, %v1812_v41 }
 0x28e   : > { %3255 = vrsqrt.f32 %v1854_v12 }
 0x28f   : > { %v1857_v47 = vadd.f32 1e-05, %v1841_v45  ;;  %v1856_v28 = vadd.f32 1e-05, %v1840_v19 }
 0x290   : > { %v1818_v29 = vpop.xlane.xlu0 %1817  ;;  %v1816_v30 = vpop.xlane.xlu1 %1815 }
 0x291   : > { %3257 = vrsqrt.f32 %v1857_v47  ;;  %v1843_v49 = vmul.f32 0.0078125, %v1818_v29  ;;  %v1842_v25 = vmul.f32 0.0078125, %v1816_v30 }
 0x292   : > { %3259 = vrsqrt.f32 %v1856_v28 }
 0x293   : > { %v3252_v50 = vpop.eup %3251  ;;  %v1859_v26 = vadd.f32 1e-05, %v1843_v49  ;;  %v1858_v31 = vadd.f32 1e-05, %v1842_v25 }
 0x294   : > { %v1822_v52 = vpop.xlane.xlu0 %1821  ;;  %v1820_v53 = vpop.xlane.xlu1 %1819  ;;  %v1885_v32 = vmul.f32 %v3252_v50, %v3771_v0 }
 0x295   : > { %3261 = vrsqrt.f32 %v1859_v26  ;;  %v1845_v51 = vmul.f32 0.0078125, %v1822_v52  ;;  %v1844_v55 = vmul.f32 0.0078125, %v1820_v53 }
 0x296   : > { %3263 = vrsqrt.f32 %v1858_v31  ;;  %v1907_v0 = vmul.f32 %v3881_v59, %v1885_v32 }
 0x297   : > { %v3254_v57 = vpop.eup %3253  ;;  %v1861_v35 = vadd.f32 1e-05, %v1845_v51  ;;  %v1860_v62 = vadd.f32 1e-05, %v1844_v55 }
 0x298   : > { %v3256_v38 = vpop.eup %3255  ;;  %v1887_v63 = vmul.f32 %v3254_v57, %v3774_v1  ;;  %v1826_v36 = vpop.xlane.xlu0 %1825  ;;  %v3895_v17 = vadd.f32 %v3889_v11, %v1907_v0 }
 0x299   : > { %v1824_v3 = vpop.xlane.xlu1 %1823  ;;  %3265 = vrsqrt.f32 %v1861_v35  ;;  %v1847_v4 = vmul.f32 0.0078125, %v1826_v36  ;;  %v1886_v40 = vmul.f32 %v3256_v38, %v3779_v16 }
 0x29a   : > { %v1846_v5 = vmul.f32 0.0078125, %v1824_v3  ;;  %3267 = vrsqrt.f32 %v1860_v62  ;;  %v1909_v21 = vmul.f32 %v3881_v59, %v1887_v63 }
 0x29b   : > { %v3258_v58 = vpop.eup %3257  ;;  %v1863_v42 = vadd.f32 1e-05, %v1847_v4  ;;  %v1908_v1 = vmul.f32 %v3881_v59, %v1886_v40 }
 0x29c   : > { %v1862_v9 = vadd.f32 1e-05, %v1846_v5  ;;  %v3260_v44 = vpop.eup %3259  ;;  %v1830_v43 = vpop.xlane.xlu0 %1829  ;;  %v1889_v18 = vmul.f32 %v3258_v58, %v3789_v23  ;;  %v3905_v45 = vadd.f32 %v3889_v11, %v1909_v21 }
 0x29d   : > { %v1828_v10 = vpop.xlane.xlu1 %1827  ;;  %v1888_v16 = vmul.f32 %v3260_v44, %v3782_v22  ;;  %3269 = vrsqrt.f32 %v1863_v42  ;;  %v1849_v13 = vmul.f32 0.0078125, %v1830_v43  ;;  %v3898_v2 = vadd.f32 %v3889_v11, %v1908_v1 }
 0x29e   : > { %v1848_v15 = vmul.f32 0.0078125, %v1828_v10  ;;  %3271 = vrsqrt.f32 %v1862_v9  ;;  %v1911_v30 = vmul.f32 %v3881_v59, %v1889_v18  ;;  %v3246_v9 = vld [vmem:[%s4227_s8 + $0x18] sm:$0xff]  }
 0x29f   : > { %v3262_v61 = vpop.eup %3261  ;;  %v1910_v20 = vmul.f32 %v3881_v59, %v1888_v16  ;;  %v1865_v24 = vadd.f32 1e-05, %v1849_v13  ;;  %v1945_v22 = vpack.c.bf16 %v3898_v2, %v3895_v17 }
 0x2a0   : > { %v1864_v7 = vadd.f32 1e-05, %v1848_v15  ;;  %v3264_v12 = vpop.eup %3263  ;;  %v1834_v27 = vpop.xlane.xlu0 %1833  ;;  %v1891_v19 = vmul.f32 %v3262_v61, %v3799_v46  ;;  %v3244_v46 = vld [vmem:[%s4227_s8 + $0x8] sm:$0xff]   ;;  %v3923_v57 = vadd.f32 %v3889_v11, %v1911_v30  ;;  %v3247_v15 = vld [vmem:[%s4227_s8 + $0x20] sm:$0xff]  }
 0x2a1   : > { %v1832_v41 = vpop.xlane.xlu1 %1831  ;;  %3273 = vrsqrt.f32 %v1865_v24  ;;  %v1851_v47 = vmul.f32 0.0078125, %v1834_v27  ;;  %v3909_v23 = vadd.f32 %v3889_v11, %v1910_v20  ;;  %3075 = vmatprep.mubr.bf16.mxu1 %v1945_v22  ;;  %v1890_v29 = vmul.f32 %v3264_v12, %v3792_v8 }
 0x2a2   : > { %v1850_v28 = vmul.f32 0.0078125, %v1832_v41  ;;  %3275 = vrsqrt.f32 %v1864_v7  ;;  %v1913_v51 = vmul.f32 %v3881_v59, %v1891_v19 }
 0x2a3   : > { %v3266_v49 = vpop.eup %3265  ;;  %v1867_v25 = vadd.f32 1e-05, %v1851_v47  ;;  %v1946_v26 = vpack.c.bf16 %v3909_v23, %v3905_v45  ;;  %v1912_v53 = vmul.f32 %v3881_v59, %v1890_v29 }
 0x2a4   : > { %v1866_v50 = vadd.f32 1e-05, %v1850_v28  ;;  %v3268_v31 = vpop.eup %3267  ;;  %v1893_v8 = vmul.f32 %v3266_v49, %v3809_v33  ;;  %v3245_v33 = vld [vmem:[%s4227_s8 + $0x10] sm:$0xff]   ;;  %v3936_v3 = vadd.f32 %v3889_v11, %v1913_v51  ;;  %v3250_v49 = vld [vmem:[%s4227_s8 + $0x38] sm:$0xff]  }
 0x2a5   : > { %v1836_v52 = vpop.xlane.xlu1 %1835  ;;  %3277 = vrsqrt.f32 %v1867_v25  ;;  %3076 = vmatmul.mubr.bf16.vlgmr.msra.gmra.mrb[16].mxu1 %v1946_v26  ;;  %v1892_v32 = vmul.f32 %v3268_v31, %v3802_v48  ;;  %v3926_v35 = vadd.f32 %v3889_v11, %v1912_v53 }
 0x2a6   : > { %v1852_v55 = vmul.f32 0.0078125, %v1836_v52  ;;  %3279 = vrsqrt.f32 %v1866_v50  ;;  %3092 = vmatpush3.bf16.msra.mxu1 %v3874_v14  ;;  %v1915_v4 = vmul.f32 %v3881_v59, %v1893_v8 }
 0x2a7   : > { %v3270_v62 = vpop.eup %3269  ;;  %v1914_v63 = vmul.f32 %v3881_v59, %v1892_v32  ;;  %3093 = vmatprep.subr.bf16.mxu1 %v3244_v46  ;;  %v1947_v48 = vpack.c.bf16 %v3926_v35, %v3923_v57 }
 0x2a8   : > { %v1868_v38 = vadd.f32 1e-05, %v1852_v55  ;;  %v3272_v36 = vpop.eup %3271  ;;  %v1895_v40 = vmul.f32 %v3270_v62, %v3822_v54  ;;  %v3951_v44 = vadd.f32 %v3889_v11, %v1915_v4 }
 0x2a9   : > { %v3940_v14 = vadd.f32 %v3889_v11, %v1914_v63  ;;  %v1894_v5 = vmul.f32 %v3272_v36, %v3812_v34  ;;  %3079 = vmatprep.mubr.bf16.mxu1 %v1947_v48 }
 0x2aa   : > { %3281 = vrsqrt.f32 %v1868_v38  ;;  %3094 = vmatpush3.bf16.msra.mxu1 %v3244_v46  ;;  %v1917_v21 = vmul.f32 %v3881_v59, %v1895_v40 }
 0x2ab   : > { %v3274_v0 = vpop.eup %3273  ;;  %v1948_v58 = vpack.c.bf16 %v3940_v14, %v3936_v3  ;;  %v1916_v42 = vmul.f32 %v3881_v59, %v1894_v5  ;;  %3095 = vmatprep.subr.bf16.mxu1 %v3245_v33 }
 0x2ac   : > { %v3276_v1 = vpop.eup %3275  ;;  %v1897_v43 = vmul.f32 %v3274_v0, %v3832_v37 }
 0x2ad   : > { %3080 = vmatmul.mubr.bf16.gmra.mrb[20].mxu1 %v1948_v58  ;;  %v3954_v34 = vadd.f32 %v3889_v11, %v1916_v42  ;;  %v1896_v54 = vmul.f32 %v3276_v1, %v3825_v56  ;;  %v3967_v56 = vadd.f32 %v3889_v11, %v1917_v21 }
 0x2ae   : > { %3096 = vmatpush3.bf16.msra.mxu1 %v3245_v33  ;;  %v1919_v24 = vmul.f32 %v3881_v59, %v1897_v43 }
 0x2af   : > { %v3278_v10 = vpop.eup %3277  ;;  %v1949_v16 = vpack.c.bf16 %v3954_v34, %v3951_v44  ;;  %v1918_v13 = vmul.f32 %v3881_v59, %v1896_v54  ;;  %3097 = vmatprep.subr.bf16.mxu1 %v3246_v9 }
 0x2b0   : > { %v3280_v18 = vpop.eup %3279  ;;  %v1899_v61 = vmul.f32 %v3278_v10, %v3845_v60  ;;  %v3248_v60 = vld [vmem:[%s4227_s8 + $0x28] sm:$0xff]  }
 0x2b1   : > { %3083 = vmatprep.mubr.bf16.mxu1 %v1949_v16  ;;  %v3970_v37 = vadd.f32 %v3889_v11, %v1918_v13  ;;  %v1898_v20 = vmul.f32 %v3280_v18, %v3838_v39  ;;  %v3983_v39 = vadd.f32 %v3889_v11, %v1919_v24 }
 0x2b2   : > { %3098 = vmatpush3.bf16.msra.mxu1 %v3246_v9  ;;  %v1921_v41 = vmul.f32 %v3881_v59, %v1899_v61 }
 0x2b3   : > { %v1950_v12 = vpack.c.bf16 %v3970_v37, %v3967_v56  ;;  %v1920_v27 = vmul.f32 %v3881_v59, %v1898_v20  ;;  %3099 = vmatprep.subr.bf16.mxu1 %v3247_v15 }
 0x2b4   : > { %v3282_v7 = vpop.eup %3281  ;;  %v3992_v29 = vadd.f32 %v3889_v11, %v1921_v41 }
 0x2b5   : > { %v1900_v22 = vmul.f32 %v3282_v7, %v3851_v6  ;;  %3084 = vmatmul.mubr.bf16.gmra.mrb[24].mxu1 %v1950_v12  ;;  %v3986_v19 = vadd.f32 %v3889_v11, %v1920_v27 }
 0x2b6   : > { %3100 = vmatpush3.bf16.msra.mxu1 %v3247_v15 }
 0x2b7   : > { %v1922_v47 = vmul.f32 %v3881_v59, %v1900_v22  ;;  %v1951_v28 = vpack.c.bf16 %v3986_v19, %v3983_v39  ;;  %3101 = vmatprep.subr.bf16.mxu1 %v3248_v60  ;;  %v3249_v59 = vld [vmem:[%s4227_s8 + $0x30] sm:$0xff]  }
 0x2b9   : > { %v3995_v6 = vadd.f32 %v3889_v11, %v1922_v47  ;;  %3087 = vmatprep.mubr.bf16.mxu1 %v1951_v28  ;;  %v2756_v11 = vld [vmem:[%s4226_s7] ss:$0 sm:$0xff] }
 0x2ba   : > { %3102 = vmatpush3.bf16.msra.mxu1 %v3248_v60 }
 0x2bb   : > { %v1952_v30 = vpack.c.bf16 %v3995_v6, %v3992_v29  ;;  %3103 = vmatprep.subr.bf16.mxu1 %v3249_v59 }
 0x2bd   : > { %3088 = vmatmul.mubr.bf16.gmra.mrb[28].mxu1 %v1952_v30 }
 0x2be   : > { %3104 = vmatpush3.bf16.msra.mxu1 %v3249_v59 }
 0x2bf   : > { %3105 = vmatprep.subr.bf16.mxu1 %v3250_v49 }
 0x2c2   : > { %3106 = vmatpush3.bf16.msra.mxu1 %v3250_v49 }
 0x378   : > { %v3077_v25 = vpop.f32.mrb[16].mxu1 }
 0x379   : > { %v2067_v50 = vadd.f32 %v3077_v25, %v2756_v11  ;;  %v2058_v26 = vpop.f32.mrb[17].mxu1 }
 0x37a   : > { %v2059_v46 = vadd.f32 %v2756_v11, %v2058_v26  ;;  %v3078_v31 = vpop.f32.mrb[18].mxu1 }
 0x37b   : > { %v2070_v52 = vadd.f32 %v3078_v31, %v2756_v11  ;;  %v2061_v53 = vpop.f32.mrb[19].mxu1  ;;  %v2123_v8 = vmax.f32 %v2067_v50, 0.0 }
 0x37c   : > { %v2062_v51 = vadd.f32 %v2756_v11, %v2061_v53  ;;  %v2121_v32 = vmax.f32 %v2059_v46, 0.0 }
 0x37d   : > { %v2124_v55 = vmax.f32 %v2070_v52, 0.0 }
 0x37e   : > { %v2122_v62 = vmax.f32 %v2062_v51, 0.0 }
 0x37f   : > { %v2138_v38 = vpack.c.bf16 %v2124_v55, %v2123_v8  ;;  %v2765_v55 = vld [vmem:[%s4228_s9] ss:$0 sm:$0xff] }
 0x380   : > { %v2137_v63 = vpack.c.bf16 %v2122_v62, %v2121_v32  ;;  %v3081_v33 = vpop.f32.mrb[20].mxu1 }
 0x381   : > { %v2083_v36 = vadd.f32 %v3081_v33, %v2756_v11  ;;  %v2074_v48 = vpop.f32.mrb[21].mxu1 }
 0x382   : > { %v2075_v4 = vadd.f32 %v2756_v11, %v2074_v48  ;;  %v3082_v5 = vpop.f32.mrb[22].mxu1  ;;  %3107 = vmatprep.mubr.bf16.mxu1 %v2137_v63 }
 0x383   : > { %v2086_v40 = vadd.f32 %v3082_v5, %v2756_v11  ;;  %v2077_v0 = vpop.f32.mrb[23].mxu1  ;;  %3108 = vmatmul.mubr.bf16.vlgmr.msra.gmra.mrb[32].mxu1 %v2138_v38  ;;  %v2127_v42 = vmax.f32 %v2083_v36, 0.0 }
 0x384   : > { %v2078_v58 = vadd.f32 %v2756_v11, %v2077_v0  ;;  %v2125_v1 = vmax.f32 %v2075_v4, 0.0 }
 0x385   : > { %v2128_v9 = vmax.f32 %v2086_v40, 0.0 }
 0x386   : > { %v2126_v54 = vmax.f32 %v2078_v58, 0.0 }
 0x387   : > { %v2140_v21 = vpack.c.bf16 %v2128_v9, %v2127_v42 }
 0x388   : > { %v2139_v43 = vpack.c.bf16 %v2126_v54, %v2125_v1  ;;  %v3085_v10 = vpop.f32.mrb[24].mxu1 }
 0x389   : > { %v2099_v16 = vadd.f32 %v3085_v10, %v2756_v11  ;;  %v2090_v13 = vpop.f32.mrb[25].mxu1 }
 0x38a   : > { %v2091_v15 = vadd.f32 %v2756_v11, %v2090_v13  ;;  %v3086_v18 = vpop.f32.mrb[26].mxu1  ;;  %3111 = vmatprep.mubr.bf16.mxu1 %v2139_v43 }
 0x38b   : > { %v2102_v61 = vadd.f32 %v3086_v18, %v2756_v11  ;;  %v2093_v20 = vpop.f32.mrb[27].mxu1  ;;  %3112 = vmatmul.mubr.bf16.gmra.mrb[36].mxu1 %v2140_v21  ;;  %v2131_v7 = vmax.f32 %v2099_v16, 0.0 }
 0x38c   : > { %v2094_v24 = vadd.f32 %v2756_v11, %v2093_v20  ;;  %v2129_v27 = vmax.f32 %v2091_v15, 0.0 }
 0x38d   : > { %v2132_v12 = vmax.f32 %v2102_v61, 0.0 }
 0x38e   : > { %v2130_v60 = vmax.f32 %v2094_v24, 0.0 }
 0x38f   : > { %v2142_v22 = vpack.c.bf16 %v2132_v12, %v2131_v7 }
 0x390   : > { %v2141_v41 = vpack.c.bf16 %v2130_v60, %v2129_v27  ;;  %v3089_v47 = vpop.f32.mrb[28].mxu1 }
 0x391   : > { %v2115_v28 = vadd.f32 %v3089_v47, %v2756_v11  ;;  %v2106_v30 = vpop.f32.mrb[29].mxu1 }
 0x392   : > { %v2107_v59 = vadd.f32 %v2756_v11, %v2106_v30  ;;  %v3090_v49 = vpop.f32.mrb[30].mxu1  ;;  %3115 = vmatprep.mubr.bf16.mxu1 %v2141_v41 }
 0x393   : > { %v2118_v25 = vadd.f32 %v3090_v49, %v2756_v11  ;;  %v2109_v50 = vpop.f32.mrb[31].mxu1  ;;  %3116 = vmatmul.mubr.bf16.gmra.mrb[40].mxu1 %v2142_v22  ;;  %v2135_v46 = vmax.f32 %v2115_v28, 0.0 }
 0x394   : > { %v2110_v26 = vadd.f32 %v2756_v11, %v2109_v50  ;;  %v2133_v52 = vmax.f32 %v2107_v59, 0.0 }
 0x395   : > { %v2136_v31 = vmax.f32 %v2118_v25, 0.0 }
 0x396   : > { %v2134_v53 = vmax.f32 %v2110_v26, 0.0 }
 0x397   : > { %v2144_v51 = vpack.c.bf16 %v2136_v31, %v2135_v46 }
 0x398   : > { %v2143_v8 = vpack.c.bf16 %v2134_v53, %v2133_v52 }
 0x39a   : > { %3119 = vmatprep.mubr.bf16.mxu1 %v2143_v8 }
 0x39b   : > { %3120 = vmatmul.mubr.bf16.gmra.mrb[44].mxu1 %v2144_v51 }
 0x456   : > { %v3109_v32 = vpop.f32.mrb[32].mxu1 }
 0x457   : > { %v2259_v62 = vadd.f32 %v3109_v32, %v2765_v55  ;;  %v2250_v38 = vpop.f32.mrb[33].mxu1 }
 0x458   : > { %v3110_v63 = vpop.f32.mrb[34].mxu1  ;;  %v2251_v33 = vadd.f32 %v2765_v55, %v2250_v38 }
 0x459   : > { %v2262_v36 = vadd.f32 %v3110_v63, %v2765_v55  ;;  %v2253_v48 = vpop.f32.mrb[35].mxu1  ;;  %v2315_v11 = vadd.f32 %v2259_v62, %v3905_v45 }
 0x45a   : > { %v2254_v4 = vadd.f32 %v2765_v55, %v2253_v48  ;;  %v2313_v40 = vadd.f32 %v2251_v33, %v3895_v17 }
 0x45b   : > { %2335 = vadd.xlane.f32.xlu0 %v2315_v11  ;;  %v2316_v5 = vadd.f32 %v2262_v36, %v3909_v23 }
 0x45c   : > { %v2314_v9 = vadd.f32 %v2254_v4, %v3898_v2 }
 0x45d   : > { %2337 = vadd.xlane.f32.xlu1 %v2316_v5 }
 0x45e   : > { %v3113_v0 = vpop.f32.mrb[36].mxu1 }
 0x45f   : > { %v2275_v58 = vadd.f32 %v3113_v0, %v2765_v55  ;;  %v2266_v42 = vpop.f32.mrb[37].mxu1  ;;  %2331 = vadd.xlane.f32.xlu0 %v2313_v40 }
 0x460   : > { %v3114_v1 = vpop.f32.mrb[38].mxu1  ;;  %v2267_v54 = vadd.f32 %v2765_v55, %v2266_v42 }
 0x461   : > { %v2278_v21 = vadd.f32 %v3114_v1, %v2765_v55  ;;  %v2269_v43 = vpop.f32.mrb[39].mxu1  ;;  %2333 = vadd.xlane.f32.xlu1 %v2314_v9  ;;  %v2319_v45 = vadd.f32 %v2275_v58, %v3936_v3 }
 0x462   : > { %v2270_v10 = vadd.f32 %v2765_v55, %v2269_v43  ;;  %v4021_v17 = vadd.f32 %v2267_v54, %v3923_v57 }
 0x463   : > { %2343 = vadd.xlane.f32.xlu0 %v2319_v45  ;;  %v4017_v23 = vadd.f32 %v2278_v21, %v3940_v14 }
 0x464   : > { %v4025_v15 = vadd.f32 %v2270_v10, %v3926_v35 }
 0x465   : > { %2345 = vadd.xlane.f32.xlu1 %v4017_v23 }
 0x466   : > { %v3117_v16 = vpop.f32.mrb[40].mxu1 }
 0x467   : > { %v2291_v13 = vadd.f32 %v3117_v16, %v2765_v55  ;;  %v2282_v2 = vpop.f32.mrb[41].mxu1  ;;  %2339 = vadd.xlane.f32.xlu0 %v4021_v17 }
 0x468   : > { %v3118_v18 = vpop.f32.mrb[42].mxu1  ;;  %v2283_v3 = vadd.f32 %v2765_v55, %v2282_v2 }
 0x469   : > { %v2294_v61 = vadd.f32 %v3118_v18, %v2765_v55  ;;  %v2285_v20 = vpop.f32.mrb[43].mxu1  ;;  %2341 = vadd.xlane.f32.xlu1 %v4025_v15  ;;  %v4029_v14 = vadd.f32 %v2291_v13, %v3967_v56 }
 0x46a   : > { %v2286_v24 = vadd.f32 %v2765_v55, %v2285_v20  ;;  %v4037_v35 = vadd.f32 %v2283_v3, %v3951_v44 }
 0x46b   : > { %2351 = vadd.xlane.f32.xlu0 %v4029_v14  ;;  %v4033_v57 = vadd.f32 %v2294_v61, %v3970_v37 }
 0x46c   : > { %v4041_v27 = vadd.f32 %v2286_v24, %v3954_v34 }
 0x46d   : > { %2353 = vadd.xlane.f32.xlu1 %v4033_v57 }
 0x46e   : > { %v3121_v7 = vpop.f32.mrb[44].mxu1 }
 0x46f   : > { %2347 = vadd.xlane.f32.xlu0 %v4037_v35  ;;  %v2298_v12 = vpop.f32.mrb[45].mxu1  ;;  %v2307_v41 = vadd.f32 %v3121_v7, %v2765_v55 }
 0x470   : > { %v2299_v56 = vadd.f32 %v2765_v55, %v2298_v12  ;;  %v3122_v60 = vpop.f32.mrb[46].mxu1 }
 0x471   : > { %2349 = vadd.xlane.f32.xlu1 %v4041_v27  ;;  %v2301_v22 = vpop.f32.mrb[47].mxu1  ;;  %v2310_v28 = vadd.f32 %v3122_v60, %v2765_v55  ;;  %v4053_v34 = vadd.f32 %v2307_v41, %v3992_v29 }
 0x472   : > { %v2302_v37 = vadd.f32 %v2765_v55, %v2301_v22  ;;  %v4045_v47 = vadd.f32 %v2299_v56, %v3983_v39 }
 0x473   : > { %v4057_v30 = vadd.f32 %v2310_v28, %v3995_v6 }
 0x474   : > { %2355 = vadd.xlane.f32.xlu0 %v4045_v47  ;;  %v4049_v44 = vadd.f32 %v2302_v37, %v3986_v19 }
 0x476   : > { %2357 = vadd.xlane.f32.xlu1 %v4049_v44 }
 0x478   : > { %2359 = vadd.xlane.f32.xlu0 %v4053_v34 }
 0x47a   : > { %2361 = vadd.xlane.f32.xlu1 %v4057_v30 }
 0x4e8   : > { %v2336_v39 = vpop.xlane.xlu0 %2335 }
 0x4e9   : > { %v2365_v59 = vmul.f32 0.0078125, %v2336_v39 }
 0x4ea   : > { %v2338_v49 = vpop.xlane.xlu1 %2337 }
 0x4eb   : > { %v4060_v25 = vsub.f32 %v2315_v11, %v2365_v59  ;;  %v2366_v50 = vmul.f32 0.0078125, %v2338_v49 }
 0x4ec   : > { %v2332_v19 = vpop.xlane.xlu0 %2331 }
 0x4ed   : > { %v4062_v26 = vsub.f32 %v2316_v5, %v2366_v50  ;;  %v2363_v46 = vmul.f32 0.0078125, %v2332_v19  ;;  %v2397_v29 = vmul.f32 %v4060_v25, %v4060_v25 }
 0x4ee   : > { %v2334_v31 = vpop.xlane.xlu1 %2333 }
 0x4ef   : > { %v4066_v52 = vsub.f32 %v2313_v40, %v2363_v46  ;;  %v2364_v6 = vmul.f32 0.0078125, %v2334_v31  ;;  %2415 = vadd.xlane.f32.xlu0 %v2397_v29  ;;  %v2398_v53 = vmul.f32 %v4062_v26, %v4062_v26 }
 0x4f0   : > { %v2344_v51 = vpop.xlane.xlu0 %2343 }
 0x4f1   : > { %v4070_v8 = vsub.f32 %v2314_v9, %v2364_v6  ;;  %v2369_v55 = vmul.f32 0.0078125, %v2344_v51  ;;  %2417 = vadd.xlane.f32.xlu1 %v2398_v53  ;;  %v2395_v32 = vmul.f32 %v4066_v52, %v4066_v52 }
 0x4f2   : > { %v2346_v62 = vpop.xlane.xlu1 %2345 }
 0x4f3   : > { %v4074_v38 = vsub.f32 %v2319_v45, %v2369_v55  ;;  %v2370_v63 = vmul.f32 0.0078125, %v2346_v62  ;;  %2411 = vadd.xlane.f32.xlu0 %v2395_v32  ;;  %v2396_v33 = vmul.f32 %v4070_v8, %v4070_v8 }
 0x4f4   : > { %v2340_v36 = vpop.xlane.xlu0 %2339 }
 0x4f5   : > { %v4079_v48 = vsub.f32 %v4017_v23, %v2370_v63  ;;  %v2367_v11 = vmul.f32 0.0078125, %v2340_v36  ;;  %2413 = vadd.xlane.f32.xlu1 %v2396_v33  ;;  %v2401_v4 = vmul.f32 %v4074_v38, %v4074_v38 }
 0x4f6   : > { %v2342_v5 = vpop.xlane.xlu1 %2341 }
 0x4f7   : > { %v4084_v40 = vsub.f32 %v4021_v17, %v2367_v11  ;;  %v2368_v0 = vmul.f32 0.0078125, %v2342_v5  ;;  %2423 = vadd.xlane.f32.xlu0 %v2401_v4  ;;  %v2402_v58 = vmul.f32 %v4079_v48, %v4079_v48 }
 0x4f8   : > { %v2352_v42 = vpop.xlane.xlu0 %2351 }
 0x4f9   : > { %v4089_v9 = vsub.f32 %v4025_v15, %v2368_v0  ;;  %v2373_v1 = vmul.f32 0.0078125, %v2352_v42  ;;  %2425 = vadd.xlane.f32.xlu1 %v2402_v58  ;;  %v2399_v54 = vmul.f32 %v4084_v40, %v4084_v40  ;;  %v4140_v42 = vld [vmem:[%s4229_s10] ss:$0 sm:$0xff] }
 0x4fa   : > { %v2354_v21 = vpop.xlane.xlu1 %2353 }
 0x4fb   : > { %v4094_v43 = vsub.f32 %v4029_v14, %v2373_v1  ;;  %v2374_v45 = vmul.f32 0.0078125, %v2354_v21  ;;  %2419 = vadd.xlane.f32.xlu0 %v2399_v54  ;;  %v2400_v10 = vmul.f32 %v4089_v9, %v4089_v9 }
 0x4fc   : > { %v2348_v23 = vpop.xlane.xlu0 %2347 }
 0x4fd   : > { %v4099_v17 = vsub.f32 %v4033_v57, %v2374_v45  ;;  %v2371_v16 = vmul.f32 0.0078125, %v2348_v23  ;;  %2421 = vadd.xlane.f32.xlu1 %v2400_v10  ;;  %v2405_v13 = vmul.f32 %v4094_v43, %v4094_v43  ;;  %v4146_v23 = vld [vmem:[%s4230_s11] ss:$0 sm:$0xff] }
 0x4fe   : > { %v2350_v2 = vpop.xlane.xlu1 %2349 }
 0x4ff   : > { %v4104_v15 = vsub.f32 %v4037_v35, %v2371_v16  ;;  %v2372_v18 = vmul.f32 0.0078125, %v2350_v2  ;;  %2431 = vadd.xlane.f32.xlu0 %v2405_v13  ;;  %v2406_v3 = vmul.f32 %v4099_v17, %v4099_v17 }
 0x501   : > { %v4109_v61 = vsub.f32 %v4041_v27, %v2372_v18  ;;  %2433 = vadd.xlane.f32.xlu1 %v2406_v3  ;;  %v2356_v20 = vpop.xlane.xlu0 %2355  ;;  %v2403_v14 = vmul.f32 %v4104_v15, %v4104_v15 }
 0x502   : > { %v2375_v24 = vmul.f32 0.0078125, %v2356_v20 }
 0x503   : > { %v2358_v57 = vpop.xlane.xlu1 %2357  ;;  %2427 = vadd.xlane.f32.xlu0 %v2403_v14  ;;  %v2404_v35 = vmul.f32 %v4109_v61, %v4109_v61 }
 0x504   : > { %v4116_v7 = vsub.f32 %v4045_v47, %v2375_v24  ;;  %v2376_v12 = vmul.f32 0.0078125, %v2358_v57 }
 0x505   : > { %2429 = vadd.xlane.f32.xlu1 %v2404_v35  ;;  %v2360_v56 = vpop.xlane.xlu0 %2359 }
 0x506   : > { %v4119_v27 = vsub.f32 %v4049_v44, %v2376_v12  ;;  %v2377_v60 = vmul.f32 0.0078125, %v2360_v56  ;;  %v2407_v22 = vmul.f32 %v4116_v7, %v4116_v7 }
 0x507   : > { %v2362_v41 = vpop.xlane.xlu1 %2361 }
 0x508   : > { %v4124_v37 = vsub.f32 %v4053_v34, %v2377_v60  ;;  %v2378_v28 = vmul.f32 0.0078125, %v2362_v41  ;;  %2435 = vadd.xlane.f32.xlu0 %v2407_v22  ;;  %v2408_v47 = vmul.f32 %v4119_v27, %v4119_v27 }
 0x50a   : > { %v4129_v39 = vsub.f32 %v4057_v30, %v2378_v28  ;;  %2437 = vadd.xlane.f32.xlu1 %v2408_v47  ;;  %v2409_v44 = vmul.f32 %v4124_v37, %v4124_v37 }
 0x50c   : > { %2439 = vadd.xlane.f32.xlu0 %v2409_v44  ;;  %v2410_v59 = vmul.f32 %v4129_v39, %v4129_v39 }
 0x50e   : > { %2441 = vadd.xlane.f32.xlu1 %v2410_v59 }
 0x57c   : > { %v2416_v34 = vpop.xlane.xlu0 %2415 }
 0x57d   : > { %v2445_v49 = vmul.f32 0.0078125, %v2416_v34 }
 0x57e   : > { %v2418_v50 = vpop.xlane.xlu1 %2417 }
 0x57f   : > { %v2461_v19 = vadd.f32 1e-05, %v2445_v49  ;;  %v2446_v46 = vmul.f32 0.0078125, %v2418_v50 }
 0x580   : > { %v2412_v29 = vpop.xlane.xlu0 %2411 }
 0x581   : > { %3283 = vrsqrt.f32 %v2461_v19  ;;  %v2462_v30 = vadd.f32 1e-05, %v2446_v46  ;;  %v2443_v31 = vmul.f32 0.0078125, %v2412_v29 }
 0x582   : > { %v2414_v6 = vpop.xlane.xlu1 %2413 }
 0x583   : > { %3285 = vrsqrt.f32 %v2462_v30  ;;  %v2459_v53 = vadd.f32 1e-05, %v2443_v31  ;;  %v2444_v51 = vmul.f32 0.0078125, %v2414_v6 }
 0x584   : > { %v2424_v55 = vpop.xlane.xlu0 %2423 }
 0x585   : > { %3287 = vrsqrt.f32 %v2459_v53  ;;  %v2460_v32 = vadd.f32 1e-05, %v2444_v51  ;;  %v2449_v62 = vmul.f32 0.0078125, %v2424_v55 }
 0x586   : > { %v2426_v63 = vpop.xlane.xlu1 %2425 }
 0x587   : > { %3289 = vrsqrt.f32 %v2460_v32  ;;  %v2465_v33 = vadd.f32 1e-05, %v2449_v62  ;;  %v2450_v36 = vmul.f32 0.0078125, %v2426_v63 }
 0x588   : > { %v2420_v11 = vpop.xlane.xlu0 %2419 }
 0x589   : > { %3291 = vrsqrt.f32 %v2465_v33  ;;  %v2466_v4 = vadd.f32 1e-05, %v2450_v36  ;;  %v2447_v5 = vmul.f32 0.0078125, %v2420_v11 }
 0x58a   : > { %v2422_v0 = vpop.xlane.xlu1 %2421 }
 0x58b   : > { %v3284_v58 = vpop.eup %3283  ;;  %3293 = vrsqrt.f32 %v2466_v4  ;;  %v2463_v1 = vadd.f32 1e-05, %v2447_v5  ;;  %v2448_v54 = vmul.f32 0.0078125, %v2422_v0 }
 0x58c   : > { %v2493_v21 = vmul.f32 %v3284_v58, %v4060_v25  ;;  %v2432_v45 = vpop.xlane.xlu0 %2431 }
 0x58d   : > { %v3286_v10 = vpop.eup %3285  ;;  %3295 = vrsqrt.f32 %v2463_v1  ;;  %v2464_v16 = vadd.f32 1e-05, %v2448_v54  ;;  %v2453_v13 = vmul.f32 0.0078125, %v2432_v45 }
 0x58e   : > { %v2515_v2 = vmul.f32 %v4140_v42, %v2493_v21  ;;  %v2494_v18 = vmul.f32 %v3286_v10, %v4062_v26  ;;  %v2434_v3 = vpop.xlane.xlu1 %2433 }
 0x58f   : > { %v3288_v20 = vpop.eup %3287  ;;  %3297 = vrsqrt.f32 %v2464_v16  ;;  %v2469_v25 = vadd.f32 1e-05, %v2453_v13  ;;  %v2454_v14 = vmul.f32 0.0078125, %v2434_v3 }
 0x590   : > { %v2537_v24 = vadd.f32 %v4146_v23, %v2515_v2  ;;  %v2516_v57 = vmul.f32 %v4140_v42, %v2494_v18  ;;  %v2491_v35 = vmul.f32 %v3288_v20, %v4066_v52  ;;  %v2428_v12 = vpop.xlane.xlu0 %2427 }
 0x591   : > { %v3290_v26 = vpop.eup %3289  ;;  %3299 = vrsqrt.f32 %v2469_v25  ;;  %v2470_v56 = vadd.f32 1e-05, %v2454_v14  ;;  %v2451_v60 = vmul.f32 0.0078125, %v2428_v12 }
 0x592   : > { %2553 = vst [vmem:[%s4153_s18 + $0x10] sm:$0xff] %v2537_v24  ;;  %v2538_v22 = vadd.f32 %v4146_v23, %v2516_v57  ;;  %v2513_v41 = vmul.f32 %v4140_v42, %v2491_v35  ;;  %v2492_v28 = vmul.f32 %v3290_v26, %v4070_v8  ;;  %v2430_v47 = vpop.xlane.xlu1 %2429 }
 0x593   : > { %v3292_v44 = vpop.eup %3291  ;;  %3301 = vrsqrt.f32 %v2470_v56  ;;  %v2467_v59 = vadd.f32 1e-05, %v2451_v60  ;;  %v2452_v34 = vmul.f32 0.0078125, %v2430_v47 }
 0x594   : > { %2554 = vst [vmem:[%s4153_s18 + $0x18] sm:$0xff] %v2538_v22  ;;  %v2535_v52 = vadd.f32 %v4146_v23, %v2513_v41  ;;  %v2514_v49 = vmul.f32 %v4140_v42, %v2492_v28  ;;  %v2497_v50 = vmul.f32 %v3292_v44, %v4074_v38 }
 0x595   : > { %v3294_v19 = vpop.eup %3293  ;;  %3303 = vrsqrt.f32 %v2467_v59  ;;  %v2468_v46 = vadd.f32 1e-05, %v2452_v34  ;;  %v2436_v29 = vpop.xlane.xlu0 %2435 }
 0x596   : > { %2551 = vst [vmem:[%s4153_s18] sm:$0xff] %v2535_v52  ;;  %v2536_v8 = vadd.f32 %v4146_v23, %v2514_v49  ;;  %v2519_v30 = vmul.f32 %v4140_v42, %v2497_v50  ;;  %v2498_v31 = vmul.f32 %v3294_v19, %v4079_v48  ;;  %v2455_v6 = vmul.f32 0.0078125, %v2436_v29 }
 0x597   : > { %v3296_v53 = vpop.eup %3295  ;;  %3305 = vrsqrt.f32 %v2468_v46  ;;  %v2438_v51 = vpop.xlane.xlu1 %2437 }
 0x598   : > { %2552 = vst [vmem:[%s4153_s18 + $0x8] sm:$0xff] %v2536_v8  ;;  %v2541_v55 = vadd.f32 %v4146_v23, %v2519_v30  ;;  %v2520_v38 = vmul.f32 %v4140_v42, %v2498_v31  ;;  %v2495_v32 = vmul.f32 %v3296_v53, %v4084_v40  ;;  %v2471_v62 = vadd.f32 1e-05, %v2455_v6 }
 0x599   : > { %v3298_v63 = vpop.eup %3297  ;;  %v2456_v33 = vmul.f32 0.0078125, %v2438_v51  ;;  %v2440_v36 = vpop.xlane.xlu0 %2439 }
 0x59a   : > { %2557 = vst [vmem:[%s4153_s18 + $0x30] sm:$0xff] %v2541_v55  ;;  %v2542_v11 = vadd.f32 %v4146_v23, %v2520_v38  ;;  %v2517_v48 = vmul.f32 %v4140_v42, %v2495_v32  ;;  %v2496_v4 = vmul.f32 %v3298_v63, %v4089_v9  ;;  %3307 = vrsqrt.f32 %v2471_v62 }
 0x59b   : > { %v3300_v5 = vpop.eup %3299  ;;  %v2472_v0 = vadd.f32 1e-05, %v2456_v33  ;;  %v2457_v58 = vmul.f32 0.0078125, %v2440_v36  ;;  %v2442_v1 = vpop.xlane.xlu1 %2441 }
 0x59c   : > { %2558 = vst [vmem:[%s4153_s18 + $0x38] sm:$0xff] %v2542_v11  ;;  %v2539_v40 = vadd.f32 %v4146_v23, %v2517_v48  ;;  %v2518_v54 = vmul.f32 %v4140_v42, %v2496_v4  ;;  %v2501_v21 = vmul.f32 %v3300_v5, %v4094_v43  ;;  %v2458_v45 = vmul.f32 0.0078125, %v2442_v1 }
 0x59d   : > { %v3302_v10 = vpop.eup %3301  ;;  %3309 = vrsqrt.f32 %v2472_v0  ;;  %v2473_v16 = vadd.f32 1e-05, %v2457_v58 }
 0x59e   : > { %2555 = vst [vmem:[%s4153_s18 + $0x20] sm:$0xff] %v2539_v40  ;;  %v2540_v9 = vadd.f32 %v4146_v23, %v2518_v54  ;;  %v2523_v13 = vmul.f32 %v4140_v42, %v2501_v21  ;;  %v2502_v2 = vmul.f32 %v3302_v10, %v4099_v17  ;;  %v2474_v18 = vadd.f32 1e-05, %v2458_v45 }
 0x59f   : > { %v3304_v3 = vpop.eup %3303  ;;  %3311 = vrsqrt.f32 %v2473_v16 }
 0x5a0   : > { %2556 = vst [vmem:[%s4153_s18 + $0x28] sm:$0xff] %v2540_v9  ;;  %v2545_v43 = vadd.f32 %v4146_v23, %v2523_v13  ;;  %v2524_v20 = vmul.f32 %v4140_v42, %v2502_v2  ;;  %v2499_v25 = vmul.f32 %v3304_v3, %v4104_v15  ;;  %3313 = vrsqrt.f32 %v2474_v18 }
 0x5a1   : > { %v3306_v14 = vpop.eup %3305 }
 0x5a2   : > { %2561 = vst [vmem:[%s4153_s18 + $0x50] sm:$0xff] %v2545_v43  ;;  %v2546_v24 = vadd.f32 %v4146_v23, %v2524_v20  ;;  %v2521_v57 = vmul.f32 %v4140_v42, %v2499_v25  ;;  %v2500_v17 = vmul.f32 %v3306_v14, %v4109_v61 }
 0x5a4   : > { %v3308_v35 = vpop.eup %3307  ;;  %2562 = vst [vmem:[%s4153_s18 + $0x58] sm:$0xff] %v2546_v24  ;;  %v2543_v12 = vadd.f32 %v4146_v23, %v2521_v57  ;;  %v2522_v26 = vmul.f32 %v4140_v42, %v2500_v17 }
 0x5a5   : > { %v2503_v56 = vmul.f32 %v3308_v35, %v4116_v7 }
 0x5a6   : > { %2559 = vst [vmem:[%s4153_s18 + $0x40] sm:$0xff] %v2543_v12  ;;  %v2544_v15 = vadd.f32 %v4146_v23, %v2522_v26 }
 0x5a7   : > { %v3310_v60 = vpop.eup %3309  ;;  %v2525_v22 = vmul.f32 %v4140_v42, %v2503_v56 }
 0x5a8   : > { %2560 = vst [vmem:[%s4153_s18 + $0x48] sm:$0xff] %v2544_v15  ;;  %v2504_v61 = vmul.f32 %v3310_v60, %v4119_v27 }
 0x5a9   : > { %v3312_v41 = vpop.eup %3311  ;;  %v2547_v28 = vadd.f32 %v4146_v23, %v2525_v22 }
 0x5aa   : > { %v3314_v47 = vpop.eup %3313  ;;  %v2526_v44 = vmul.f32 %v4140_v42, %v2504_v61  ;;  %v2505_v7 = vmul.f32 %v3312_v41, %v4124_v37 }
 0x5ab   : > { %2563 = vst [vmem:[%s4153_s18 + $0x60] sm:$0xff] %v2547_v28  ;;  %v2506_v59 = vmul.f32 %v3314_v47, %v4129_v39 }
 0x5ac   : > { %v2548_v34 = vadd.f32 %v4146_v23, %v2526_v44  ;;  %v2527_v52 = vmul.f32 %v4140_v42, %v2505_v7 }
 0x5ad   : > { %v2528_v49 = vmul.f32 %v4140_v42, %v2506_v59 }
 0x5ae   : > { %2564 = vst [vmem:[%s4153_s18 + $0x68] sm:$0xff] %v2548_v34  ;;  %v2549_v27 = vadd.f32 %v4146_v23, %v2527_v52 }
 0x5af   : > { %v2550_v50 = vadd.f32 %v4146_v23, %v2528_v49 }
 0x5b0   : > { %2565 = vst [vmem:[%s4153_s18 + $0x70] sm:$0xff] %v2549_v27 }
 0x5b1   : > { %2566 = vst [vmem:[%s4153_s18 + $0x78] sm:$0xff] %v2550_v50 }
 0x5b2 PF: > { %s22_s21 = sadd.s32 1, %s3321_s21  }
 0x5b3   : > { %p19_p6 = scmp.ge.s32.totalorder %s22_s21, 5  }
 0x5b5   :  { %21 = sbr.rel (!%p19_p6) target bundleno = 1 (0x1), region = 105 }

</bundles_post_ra>
